<compile_context>
chip_gen: v7x
topology: tpu7x:2x2x1
jax: 0.10.0
libtpu: 0.0.40
codegen_flags: <defaults>
</compile_context>

<pallas_src>
import numpy as np

import jax
import jax.numpy as jnp
from jax.experimental import pallas as pl
from jax.experimental.pallas import tpu as pltpu

INV_SQRT2 = 0.7071067811865476
K = 5                      # conv kernel size (all convs)
TB_MAX = 128               # images (sublanes) per grid step
NEG_INF = -1e30            # finite: avoids inf-inf -> NaN in softmax
COMPUTE_DTYPE = jnp.bfloat16


# ---------------------------------------------------------------------------
# Static constant builders (run once, outside the hot path)
# ---------------------------------------------------------------------------
def make_gather3(h, w, pad, k=K, stride=2):
    """0/1 tensor G[kk, o, s]: output position o takes input pixel s at tap kk
    (stride-2, zero padding)."""
    ho = (h + 2 * pad - k) // stride + 1
    wo = (w + 2 * pad - k) // stride + 1
    g = np.zeros((k * k, ho * wo, h * w), dtype=np.float32)
    for kh in range(k):
        for kw in range(k):
            kk = kh * k + kw
            for oh in range(ho):
                ih = stride * oh + kh - pad
                if ih < 0 or ih >= h:
                    continue
                for ow_ in range(wo):
                    iw = stride * ow_ + kw - pad
                    if iw < 0 or iw >= w:
                        continue
                    g[kk, oh * wo + ow_, ih * w + iw] = 1.0
    return g


def conv_dense_matrix(w, g3, dtype):
    """torch conv weight [Cout, Cin, k, k] + gather G[kk, o, s] ->
    dense M[(ci, s), (co, o)] so that conv == act[TB, Cin*S] @ M."""
    cout, cin, k, _ = np.asarray(w).shape
    wr = np.asarray(w, np.float32).reshape(cout, cin, k * k)        # [co, ci, kk]
    m = np.einsum("kos,nck->csno", g3, wr)                          # [ci, S, co, OW]
    s_in, ow = g3.shape[2], g3.shape[1]
    return jnp.asarray(m.reshape(cin * s_in, cout * ow), dtype=dtype)


def conv_bias_row(b, ow):
    """bias per channel -> [1, Cout*OW] row matching the (co, o) lane order."""
    return jnp.asarray(np.repeat(np.asarray(b, np.float32), ow)[None, :])


# ---------------------------------------------------------------------------
# Fused forward kernel (all intermediates stay in VMEM / vregs)
# ---------------------------------------------------------------------------
def _gelu(x):  # exact (erf) GELU == torch.nn.GELU() default
    return 0.5 * x * (1.0 + jax.lax.erf(x * INV_SQRT2))


def _fused_forward_kernel(img_ref,
                          m11, b11, m12, b12, m13, b13,
                          m21, b21, m22, b22,
                          wl1, bl1, wl2a, bl2a, wl2b, bl2b,
                          wsm, bsm,
                          out_ref):
    def dense(act_f32, w_ref, b_ref):
        # bf16 MXU operands, f32 accumulation, f32 bias add.
        return jnp.dot(act_f32.astype(w_ref.dtype), w_ref[...],
                       preferred_element_type=jnp.float32) + b_ref[...]

    x = img_ref[...]                                  # [TB, 784] f32

    # ---- cnn_stack1 + linear_stack1 -> x1 : [TB, 32] -----------------------
    a = _gelu(dense(x, m11, b11))                     # [TB, 784]  (4ch x 196)
    a = _gelu(dense(a, m12, b12))                     # [TB, 288]  (8ch x 36)
    a = _gelu(dense(a, m13, b13))                     # [TB, 64]   (16ch x 4) == flatten order
    x1 = dense(a, wl1, bl1)                           # [TB, 32]

    # ---- cnn_stack2 + linear_stack2 -> x2 : [TB, 32] -----------------------
    c = _gelu(dense(x, m21, b21))                     # [TB, 784]
    c = _gelu(dense(c, m22, b22))                     # [TB, 392]  (8ch x 49) == flatten order
    h = jnp.tanh(dense(c, wl2a, bl2a))                # [TB, 128]
    x2 = dense(h, wl2b, bl2b)                         # [TB, 32]

    # ---- softmax head, lane-padded to 128 so the HBM store is unmasked -----
    logits = dense(x1 + x2, wsm, bsm)                 # [TB, 128]; pad lanes = -1e30
    m = jnp.max(logits, axis=-1, keepdims=True)
    e = jnp.exp(logits - m)
    out_ref[...] = (e / jnp.sum(e, axis=-1, keepdims=True)).astype(out_ref.dtype)


# ---------------------------------------------------------------------------
# JAX glue
# ---------------------------------------------------------------------------
def xavier_normal(key, shape, fan_in, fan_out):
    std = (2.0 / (fan_in + fan_out)) ** 0.5
    return std * jax.random.normal(key, shape, dtype=jnp.float32)


def init_params(key):
    """Torch-layout parameters (xavier_normal_ weights, zero biases)."""
    ks = jax.random.split(key, 9)
    p = {}
    p["c1_1_w"] = xavier_normal(ks[0], (4, 1, 5, 5), 1 * 25, 4 * 25)
    p["c1_2_w"] = xavier_normal(ks[1], (8, 4, 5, 5), 4 * 25, 8 * 25)
    p["c1_3_w"] = xavier_normal(ks[2], (16, 8, 5, 5), 8 * 25, 16 * 25)
    p["c2_1_w"] = xavier_normal(ks[3], (4, 1, 5, 5), 1 * 25, 4 * 25)
    p["c2_2_w"] = xavier_normal(ks[4], (8, 4, 5, 5), 4 * 25, 8 * 25)
    p["l1_w"] = xavier_normal(ks[5], (32, 64), 64, 32)
    p["l2a_w"] = xavier_normal(ks[6], (128, 392), 392, 128)
    p["l2b_w"] = xavier_normal(ks[7], (32, 128), 128, 32)
    p["sm_w"] = xavier_normal(ks[8], (10, 32), 32, 10)
    for name, n in [("c1_1_b", 4), ("c1_2_b", 8), ("c1_3_b", 16),
                    ("c2_1_b", 4), ("c2_2_b", 8),
                    ("l1_b", 32), ("l2a_b", 128), ("l2b_b", 32), ("sm_b", 10)]:
        p[name] = jnp.zeros((n,), dtype=jnp.float32)
    return p


def prepare_params(p, dtype=COMPUTE_DTYPE):
    """One-time fold of conv geometry + weights into dense matmul operands."""
    g0 = make_gather3(28, 28, pad=2)    # 28x28 -> 14x14 (shared geometry, both stacks)
    g12 = make_gather3(14, 14, pad=1)   # 14x14 -> 6x6
    g13 = make_gather3(6, 6, pad=1)     # 6x6   -> 2x2
    g22 = make_gather3(14, 14, pad=2)   # 14x14 -> 7x7
    return {
        "m11": conv_dense_matrix(p["c1_1_w"], g0, dtype),  "b11": conv_bias_row(p["c1_1_b"], 196),
        "m12": conv_dense_matrix(p["c1_2_w"], g12, dtype), "b12": conv_bias_row(p["c1_2_b"], 36),
        "m13": conv_dense_matrix(p["c1_3_w"], g13, dtype), "b13": conv_bias_row(p["c1_3_b"], 4),
        "m21": conv_dense_matrix(p["c2_1_w"], g0, dtype),  "b21": conv_bias_row(p["c2_1_b"], 196),
        "m22": conv_dense_matrix(p["c2_2_w"], g22, dtype), "b22": conv_bias_row(p["c2_2_b"], 49),
        # Linear weights pre-transposed once (torch y = x @ W.T + b).
        "wl1": jnp.asarray(p["l1_w"].T, dtype),   "bl1": p["l1_b"][None, :],
        "wl2a": jnp.asarray(p["l2a_w"].T, dtype), "bl2a": p["l2a_b"][None, :],
        "wl2b": jnp.asarray(p["l2b_w"].T, dtype), "bl2b": p["l2b_b"][None, :],
        # Head padded to 128 lanes; padded logits get -1e30 -> probability 0.
        "wsm": jnp.zeros((32, 128), dtype).at[:, :10].set(jnp.asarray(p["sm_w"].T, dtype)),
        "bsm": jnp.full((1, 128), NEG_INF, jnp.float32).at[0, :10].set(p["sm_b"]),
    }


_RESIDENT_NAMES = ("m11", "b11", "m12", "b12", "m13", "b13",
                   "m21", "b21", "m22", "b22",
                   "wl1", "bl1", "wl2a", "bl2a", "wl2b", "bl2b", "wsm", "bsm")


def forward(prep, x):
    """x: [B, 1, 28, 28] (NCHW) -> class probabilities [B, 10]."""
    b = x.shape[0]
    xs = x.reshape(b, 28 * 28)                        # Cin == 1
    tb = min(TB_MAX, ((b + 7) // 8) * 8)              # batch rows per grid step
    bp = ((b + tb - 1) // tb) * tb
    if bp != b:
        xs = jnp.pad(xs, ((0, bp - b), (0, 0)))
    nt = bp // tb

    resident = [prep[k] for k in _RESIDENT_NAMES]

    def res_spec(a):  # whole array resident in VMEM, same block every step
        return pl.BlockSpec(a.shape, lambda i: (0, 0))

    out = pl.pallas_call(
        _fused_forward_kernel,
        out_shape=jax.ShapeDtypeStruct((bp, 128), jnp.float32),
        grid=(nt,),
        in_specs=[pl.BlockSpec((tb, 28 * 28), lambda i: (i, 0))]
                 + [res_spec(a) for a in resident],
        out_specs=pl.BlockSpec((tb, 128), lambda i: (i, 0)),
        compiler_params=pltpu.CompilerParams(
            dimension_semantics=("parallel",),
            vmem_limit_bytes=32 * 1024 * 1024),
    )(xs, *resident)

    return out[:b, :10]


# ---------------------------------------------------------------------------
# Pure-JAX reference (f32) for a numerical sanity check
# ---------------------------------------------------------------------------
def reference_forward(p, x):
    def conv(a, w, bias, pad):
        y = jax.lax.conv_general_dilated(
            a, w, window_strides=(2, 2), padding=[(pad, pad), (pad, pad)],
            dimension_numbers=("NCHW", "OIHW", "NCHW"))
        return y + bias[None, :, None, None]

    a = _gelu(conv(x, p["c1_1_w"], p["c1_1_b"], 2))
    a = _gelu(conv(a, p["c1_2_w"], p["c1_2_b"], 1))
    a = _gelu(conv(a, p["c1_3_w"], p["c1_3_b"], 1))
    x1 = a.reshape(a.shape[0], -1) @ p["l1_w"].T + p["l1_b"]
    c = _gelu(conv(x, p["c2_1_w"], p["c2_1_b"], 2))
    c = _gelu(conv(c, p["c2_2_w"], p["c2_2_b"], 2))
    h = jnp.tanh(c.reshape(c.shape[0], -1) @ p["l2a_w"].T + p["l2a_b"])
    x2 = h @ p["l2b_w"].T + p["l2b_b"]
    logits = (x1 + x2) @ p["sm_w"].T + p["sm_b"]
    return jax.nn.softmax(logits, axis=-1)


if __name__ == "__main__":
    key = jax.random.PRNGKey(0)
    pkey, xkey = jax.random.split(key)
    params = init_params(pkey)
    prep = prepare_params(params)    # one-time weight re-layout (outside hot path)

    # Input implied by the module: 1-channel 28x28 images (MNIST-like), NCHW.
    x = jax.random.normal(xkey, (2, 1, 28, 28), dtype=jnp.float32)

    y = jax.jit(forward)(prep, x)
    y = jax.block_until_ready(y)

    assert y.shape == (2, 10)
    assert bool(jnp.all(jnp.isfinite(y)))
    assert bool(jnp.allclose(jnp.sum(y, axis=1), 1.0, atol=1e-5))
    y_ref = reference_forward(params, x)
    assert bool(jnp.max(jnp.abs(y - y_ref)) < 5e-2)   # bf16-operand tolerance
    print("KERNEL_OK")
</pallas_src>

<mosaic_0001>
module attributes {stable_mosaic.version = 11 : i64} {
  func.func @_fused_forward_kernel(%arg0: i32, %arg1: memref<8x784xf32, #tpu.memory_space<vmem>>, %arg2: memref<784x784xbf16, #tpu.memory_space<vmem>>, %arg3: memref<1x784xf32, #tpu.memory_space<vmem>>, %arg4: memref<784x288xbf16, #tpu.memory_space<vmem>>, %arg5: memref<1x288xf32, #tpu.memory_space<vmem>>, %arg6: memref<288x64xbf16, #tpu.memory_space<vmem>>, %arg7: memref<1x64xf32, #tpu.memory_space<vmem>>, %arg8: memref<784x784xbf16, #tpu.memory_space<vmem>>, %arg9: memref<1x784xf32, #tpu.memory_space<vmem>>, %arg10: memref<784x392xbf16, #tpu.memory_space<vmem>>, %arg11: memref<1x392xf32, #tpu.memory_space<vmem>>, %arg12: memref<64x32xbf16, #tpu.memory_space<vmem>>, %arg13: memref<1x32xf32, #tpu.memory_space<vmem>>, %arg14: memref<392x128xbf16, #tpu.memory_space<vmem>>, %arg15: memref<1x128xf32, #tpu.memory_space<vmem>>, %arg16: memref<128x32xbf16, #tpu.memory_space<vmem>>, %arg17: memref<1x32xf32, #tpu.memory_space<vmem>>, %arg18: memref<32x128xbf16, #tpu.memory_space<vmem>>, %arg19: memref<1x128xf32, #tpu.memory_space<vmem>>, %arg20: memref<8x128xf32, #tpu.memory_space<vmem>>) attributes {dimension_semantics = [#tpu.dimension_semantics<parallel>], iteration_bounds = array<i64: 1>, scalar_prefetch = 0 : i64, scratch_operands = 0 : i64, tpu.core_type = #tpu.core_type<tc>, window_params = [{transform_indices = @transform_0, window_bounds = array<i64: 8, 784>}, {pipeline_mode = #tpu.pipeline_mode<synchronous>, transform_indices = @transform_1, window_bounds = array<i64: 784, 784>}, {pipeline_mode = #tpu.pipeline_mode<synchronous>, transform_indices = @transform_2, window_bounds = array<i64: 1, 784>}, {pipeline_mode = #tpu.pipeline_mode<synchronous>, transform_indices = @transform_3, window_bounds = array<i64: 784, 288>}, {pipeline_mode = #tpu.pipeline_mode<synchronous>, transform_indices = @transform_4, window_bounds = array<i64: 1, 288>}, {pipeline_mode = #tpu.pipeline_mode<synchronous>, transform_indices = @transform_5, window_bounds = array<i64: 288, 64>}, {pipeline_mode = #tpu.pipeline_mode<synchronous>, transform_indices = @transform_6, window_bounds = array<i64: 1, 64>}, {pipeline_mode = #tpu.pipeline_mode<synchronous>, transform_indices = @transform_7, window_bounds = array<i64: 784, 784>}, {pipeline_mode = #tpu.pipeline_mode<synchronous>, transform_indices = @transform_8, window_bounds = array<i64: 1, 784>}, {pipeline_mode = #tpu.pipeline_mode<synchronous>, transform_indices = @transform_9, window_bounds = array<i64: 784, 392>}, {pipeline_mode = #tpu.pipeline_mode<synchronous>, transform_indices = @transform_10, window_bounds = array<i64: 1, 392>}, {pipeline_mode = #tpu.pipeline_mode<synchronous>, transform_indices = @transform_11, window_bounds = array<i64: 64, 32>}, {pipeline_mode = #tpu.pipeline_mode<synchronous>, transform_indices = @transform_12, window_bounds = array<i64: 1, 32>}, {pipeline_mode = #tpu.pipeline_mode<synchronous>, transform_indices = @transform_13, window_bounds = array<i64: 392, 128>}, {pipeline_mode = #tpu.pipeline_mode<synchronous>, transform_indices = @transform_14, window_bounds = array<i64: 1, 128>}, {pipeline_mode = #tpu.pipeline_mode<synchronous>, transform_indices = @transform_15, window_bounds = array<i64: 128, 32>}, {pipeline_mode = #tpu.pipeline_mode<synchronous>, transform_indices = @transform_16, window_bounds = array<i64: 1, 32>}, {pipeline_mode = #tpu.pipeline_mode<synchronous>, transform_indices = @transform_17, window_bounds = array<i64: 32, 128>}, {pipeline_mode = #tpu.pipeline_mode<synchronous>, transform_indices = @transform_18, window_bounds = array<i64: 1, 128>}, {transform_indices = @transform_19, window_bounds = array<i64: 8, 128>}]} {
    %c0 = arith.constant 0 : index
    %c0_0 = arith.constant 0 : index
    %0 = vector.load %arg1[%c0, %c0_0] : memref<8x784xf32, #tpu.memory_space<vmem>>, vector<8x784xf32>
    %1 = arith.truncf %0 : vector<8x784xf32> to vector<8x784xbf16>
    %c0_1 = arith.constant 0 : index
    %c0_2 = arith.constant 0 : index
    %2 = vector.load %arg2[%c0_1, %c0_2] : memref<784x784xbf16, #tpu.memory_space<vmem>>, vector<784x784xbf16>
    %cst = arith.constant dense<0.000000e+00> : vector<8x784xf32>
    %3 = tpu.matmul %1, %2, %cst {dimension_numbers = #tpu.dot_dimension_numbers<[1], [0], [0], [1], [0, 0, 1, 1], [], []>} : vector<8x784xbf16>, vector<784x784xbf16>, vector<8x784xf32> -> vector<8x784xf32>
    %c0_3 = arith.constant 0 : index
    %c0_4 = arith.constant 0 : index
    %4 = vector.load %arg3[%c0_3, %c0_4] : memref<1x784xf32, #tpu.memory_space<vmem>>, vector<1x784xf32>
    %5 = vector.broadcast %4 : vector<1x784xf32> to vector<8x784xf32>
    %6 = arith.addf %3, %5 : vector<8x784xf32>
    %cst_5 = arith.constant 5.000000e-01 : f32
    %7 = vector.broadcast %cst_5 : f32 to vector<8x784xf32>
    %8 = arith.mulf %7, %6 : vector<8x784xf32>
    %cst_6 = arith.constant 0.707106769 : f32
    %9 = vector.broadcast %cst_6 : f32 to vector<8x784xf32>
    %10 = arith.mulf %6, %9 : vector<8x784xf32>
    %11 = math.erf %10 : vector<8x784xf32>
    %cst_7 = arith.constant 1.000000e+00 : f32
    %12 = vector.broadcast %cst_7 : f32 to vector<8x784xf32>
    %13 = arith.addf %12, %11 : vector<8x784xf32>
    %14 = arith.mulf %8, %13 : vector<8x784xf32>
    %15 = arith.truncf %14 : vector<8x784xf32> to vector<8x784xbf16>
    %c0_8 = arith.constant 0 : index
    %c0_9 = arith.constant 0 : index
    %16 = vector.load %arg4[%c0_8, %c0_9] : memref<784x288xbf16, #tpu.memory_space<vmem>>, vector<784x288xbf16>
    %cst_10 = arith.constant dense<0.000000e+00> : vector<8x288xf32>
    %17 = tpu.matmul %15, %16, %cst_10 {dimension_numbers = #tpu.dot_dimension_numbers<[1], [0], [0], [1], [0, 0, 1, 1], [], []>} : vector<8x784xbf16>, vector<784x288xbf16>, vector<8x288xf32> -> vector<8x288xf32>
    %c0_11 = arith.constant 0 : index
    %c0_12 = arith.constant 0 : index
    %18 = vector.load %arg5[%c0_11, %c0_12] : memref<1x288xf32, #tpu.memory_space<vmem>>, vector<1x288xf32>
    %19 = vector.broadcast %18 : vector<1x288xf32> to vector<8x288xf32>
    %20 = arith.addf %17, %19 : vector<8x288xf32>
    %cst_13 = arith.constant 5.000000e-01 : f32
    %21 = vector.broadcast %cst_13 : f32 to vector<8x288xf32>
    %22 = arith.mulf %21, %20 : vector<8x288xf32>
    %cst_14 = arith.constant 0.707106769 : f32
    %23 = vector.broadcast %cst_14 : f32 to vector<8x288xf32>
    %24 = arith.mulf %20, %23 : vector<8x288xf32>
    %25 = math.erf %24 : vector<8x288xf32>
    %cst_15 = arith.constant 1.000000e+00 : f32
    %26 = vector.broadcast %cst_15 : f32 to vector<8x288xf32>
    %27 = arith.addf %26, %25 : vector<8x288xf32>
    %28 = arith.mulf %22, %27 : vector<8x288xf32>
    %29 = arith.truncf %28 : vector<8x288xf32> to vector<8x288xbf16>
    %c0_16 = arith.constant 0 : index
    %c0_17 = arith.constant 0 : index
    %30 = vector.load %arg6[%c0_16, %c0_17] : memref<288x64xbf16, #tpu.memory_space<vmem>>, vector<288x64xbf16>
    %cst_18 = arith.constant dense<0.000000e+00> : vector<8x64xf32>
    %31 = tpu.matmul %29, %30, %cst_18 {dimension_numbers = #tpu.dot_dimension_numbers<[1], [0], [0], [1], [0, 0, 1, 1], [], []>} : vector<8x288xbf16>, vector<288x64xbf16>, vector<8x64xf32> -> vector<8x64xf32>
    %c0_19 = arith.constant 0 : index
    %c0_20 = arith.constant 0 : index
    %32 = vector.load %arg7[%c0_19, %c0_20] : memref<1x64xf32, #tpu.memory_space<vmem>>, vector<1x64xf32>
    %33 = vector.broadcast %32 : vector<1x64xf32> to vector<8x64xf32>
    %34 = arith.addf %31, %33 : vector<8x64xf32>
    %cst_21 = arith.constant 5.000000e-01 : f32
    %35 = vector.broadcast %cst_21 : f32 to vector<8x64xf32>
    %36 = arith.mulf %35, %34 : vector<8x64xf32>
    %cst_22 = arith.constant 0.707106769 : f32
    %37 = vector.broadcast %cst_22 : f32 to vector<8x64xf32>
    %38 = arith.mulf %34, %37 : vector<8x64xf32>
    %39 = math.erf %38 : vector<8x64xf32>
    %cst_23 = arith.constant 1.000000e+00 : f32
    %40 = vector.broadcast %cst_23 : f32 to vector<8x64xf32>
    %41 = arith.addf %40, %39 : vector<8x64xf32>
    %42 = arith.mulf %36, %41 : vector<8x64xf32>
    %43 = arith.truncf %42 : vector<8x64xf32> to vector<8x64xbf16>
    %c0_24 = arith.constant 0 : index
    %c0_25 = arith.constant 0 : index
    %44 = vector.load %arg12[%c0_24, %c0_25] : memref<64x32xbf16, #tpu.memory_space<vmem>>, vector<64x32xbf16>
    %cst_26 = arith.constant dense<0.000000e+00> : vector<8x32xf32>
    %45 = tpu.matmul %43, %44, %cst_26 {dimension_numbers = #tpu.dot_dimension_numbers<[1], [0], [0], [1], [0, 0, 1, 1], [], []>} : vector<8x64xbf16>, vector<64x32xbf16>, vector<8x32xf32> -> vector<8x32xf32>
    %c0_27 = arith.constant 0 : index
    %c0_28 = arith.constant 0 : index
    %46 = vector.load %arg13[%c0_27, %c0_28] : memref<1x32xf32, #tpu.memory_space<vmem>>, vector<1x32xf32>
    %47 = vector.broadcast %46 : vector<1x32xf32> to vector<8x32xf32>
    %48 = arith.addf %45, %47 : vector<8x32xf32>
    %49 = arith.truncf %0 : vector<8x784xf32> to vector<8x784xbf16>
    %c0_29 = arith.constant 0 : index
    %c0_30 = arith.constant 0 : index
    %50 = vector.load %arg8[%c0_29, %c0_30] : memref<784x784xbf16, #tpu.memory_space<vmem>>, vector<784x784xbf16>
    %cst_31 = arith.constant dense<0.000000e+00> : vector<8x784xf32>
    %51 = tpu.matmul %49, %50, %cst_31 {dimension_numbers = #tpu.dot_dimension_numbers<[1], [0], [0], [1], [0, 0, 1, 1], [], []>} : vector<8x784xbf16>, vector<784x784xbf16>, vector<8x784xf32> -> vector<8x784xf32>
    %c0_32 = arith.constant 0 : index
    %c0_33 = arith.constant 0 : index
    %52 = vector.load %arg9[%c0_32, %c0_33] : memref<1x784xf32, #tpu.memory_space<vmem>>, vector<1x784xf32>
    %53 = vector.broadcast %52 : vector<1x784xf32> to vector<8x784xf32>
    %54 = arith.addf %51, %53 : vector<8x784xf32>
    %cst_34 = arith.constant 5.000000e-01 : f32
    %55 = vector.broadcast %cst_34 : f32 to vector<8x784xf32>
    %56 = arith.mulf %55, %54 : vector<8x784xf32>
    %cst_35 = arith.constant 0.707106769 : f32
    %57 = vector.broadcast %cst_35 : f32 to vector<8x784xf32>
    %58 = arith.mulf %54, %57 : vector<8x784xf32>
    %59 = math.erf %58 : vector<8x784xf32>
    %cst_36 = arith.constant 1.000000e+00 : f32
    %60 = vector.broadcast %cst_36 : f32 to vector<8x784xf32>
    %61 = arith.addf %60, %59 : vector<8x784xf32>
    %62 = arith.mulf %56, %61 : vector<8x784xf32>
    %63 = arith.truncf %62 : vector<8x784xf32> to vector<8x784xbf16>
    %c0_37 = arith.constant 0 : index
    %c0_38 = arith.constant 0 : index
    %64 = vector.load %arg10[%c0_37, %c0_38] : memref<784x392xbf16, #tpu.memory_space<vmem>>, vector<784x392xbf16>
    %cst_39 = arith.constant dense<0.000000e+00> : vector<8x392xf32>
    %65 = tpu.matmul %63, %64, %cst_39 {dimension_numbers = #tpu.dot_dimension_numbers<[1], [0], [0], [1], [0, 0, 1, 1], [], []>} : vector<8x784xbf16>, vector<784x392xbf16>, vector<8x392xf32> -> vector<8x392xf32>
    %c0_40 = arith.constant 0 : index
    %c0_41 = arith.constant 0 : index
    %66 = vector.load %arg11[%c0_40, %c0_41] : memref<1x392xf32, #tpu.memory_space<vmem>>, vector<1x392xf32>
    %67 = vector.broadcast %66 : vector<1x392xf32> to vector<8x392xf32>
    %68 = arith.addf %65, %67 : vector<8x392xf32>
    %cst_42 = arith.constant 5.000000e-01 : f32
    %69 = vector.broadcast %cst_42 : f32 to vector<8x392xf32>
    %70 = arith.mulf %69, %68 : vector<8x392xf32>
    %cst_43 = arith.constant 0.707106769 : f32
    %71 = vector.broadcast %cst_43 : f32 to vector<8x392xf32>
    %72 = arith.mulf %68, %71 : vector<8x392xf32>
    %73 = math.erf %72 : vector<8x392xf32>
    %cst_44 = arith.constant 1.000000e+00 : f32
    %74 = vector.broadcast %cst_44 : f32 to vector<8x392xf32>
    %75 = arith.addf %74, %73 : vector<8x392xf32>
    %76 = arith.mulf %70, %75 : vector<8x392xf32>
    %77 = arith.truncf %76 : vector<8x392xf32> to vector<8x392xbf16>
    %c0_45 = arith.constant 0 : index
    %c0_46 = arith.constant 0 : index
    %78 = vector.load %arg14[%c0_45, %c0_46] : memref<392x128xbf16, #tpu.memory_space<vmem>>, vector<392x128xbf16>
    %cst_47 = arith.constant dense<0.000000e+00> : vector<8x128xf32>
    %79 = tpu.matmul %77, %78, %cst_47 {dimension_numbers = #tpu.dot_dimension_numbers<[1], [0], [0], [1], [0, 0, 1, 1], [], []>} : vector<8x392xbf16>, vector<392x128xbf16>, vector<8x128xf32> -> vector<8x128xf32>
    %c0_48 = arith.constant 0 : index
    %c0_49 = arith.constant 0 : index
    %80 = vector.load %arg15[%c0_48, %c0_49] : memref<1x128xf32, #tpu.memory_space<vmem>>, vector<1x128xf32>
    %81 = vector.broadcast %80 : vector<1x128xf32> to vector<8x128xf32>
    %82 = arith.addf %79, %81 : vector<8x128xf32>
    %83 = math.tanh %82 : vector<8x128xf32>
    %84 = arith.truncf %83 : vector<8x128xf32> to vector<8x128xbf16>
    %c0_50 = arith.constant 0 : index
    %c0_51 = arith.constant 0 : index
    %85 = vector.load %arg16[%c0_50, %c0_51] : memref<128x32xbf16, #tpu.memory_space<vmem>>, vector<128x32xbf16>
    %cst_52 = arith.constant dense<0.000000e+00> : vector<8x32xf32>
    %86 = tpu.matmul %84, %85, %cst_52 {dimension_numbers = #tpu.dot_dimension_numbers<[1], [0], [0], [1], [0, 0, 1, 1], [], []>} : vector<8x128xbf16>, vector<128x32xbf16>, vector<8x32xf32> -> vector<8x32xf32>
    %c0_53 = arith.constant 0 : index
    %c0_54 = arith.constant 0 : index
    %87 = vector.load %arg17[%c0_53, %c0_54] : memref<1x32xf32, #tpu.memory_space<vmem>>, vector<1x32xf32>
    %88 = vector.broadcast %87 : vector<1x32xf32> to vector<8x32xf32>
    %89 = arith.addf %86, %88 : vector<8x32xf32>
    %90 = arith.addf %48, %89 : vector<8x32xf32>
    %91 = arith.truncf %90 : vector<8x32xf32> to vector<8x32xbf16>
    %c0_55 = arith.constant 0 : index
    %c0_56 = arith.constant 0 : index
    %92 = vector.load %arg18[%c0_55, %c0_56] : memref<32x128xbf16, #tpu.memory_space<vmem>>, vector<32x128xbf16>
    %cst_57 = arith.constant dense<0.000000e+00> : vector<8x128xf32>
    %93 = tpu.matmul %91, %92, %cst_57 {dimension_numbers = #tpu.dot_dimension_numbers<[1], [0], [0], [1], [0, 0, 1, 1], [], []>} : vector<8x32xbf16>, vector<32x128xbf16>, vector<8x128xf32> -> vector<8x128xf32>
    %c0_58 = arith.constant 0 : index
    %c0_59 = arith.constant 0 : index
    %94 = vector.load %arg19[%c0_58, %c0_59] : memref<1x128xf32, #tpu.memory_space<vmem>>, vector<1x128xf32>
    %95 = vector.broadcast %94 : vector<1x128xf32> to vector<8x128xf32>
    %96 = arith.addf %93, %95 : vector<8x128xf32>
    %cst_60 = arith.constant dense<0xFF800000> : vector<8xf32>
    %97 = vector.multi_reduction <maximumf>, %96, %cst_60 [1] : vector<8x128xf32> to vector<8xf32>
    %98 = vector.shape_cast %97 : vector<8xf32> to vector<8x1xf32>
    %99 = vector.broadcast %98 : vector<8x1xf32> to vector<8x128xf32>
    %100 = arith.subf %96, %99 : vector<8x128xf32>
    %101 = math.exp %100 : vector<8x128xf32>
    %cst_61 = arith.constant dense<0.000000e+00> : vector<8xf32>
    %102 = vector.multi_reduction <add>, %101, %cst_61 [1] : vector<8x128xf32> to vector<8xf32>
    %103 = vector.shape_cast %102 : vector<8xf32> to vector<8x1xf32>
    %104 = vector.broadcast %103 : vector<8x1xf32> to vector<8x128xf32>
    %105 = arith.divf %101, %104 : vector<8x128xf32>
    %c0_62 = arith.constant 0 : index
    %c0_63 = arith.constant 0 : index
    %106 = vector.load %arg20[%c0_62, %c0_63] : memref<8x128xf32, #tpu.memory_space<vmem>>, vector<8x128xf32>
    tpu.vector_store %arg20[%c0_62, %c0_63], %105 {strides = array<i32>} : memref<8x128xf32, #tpu.memory_space<vmem>>, vector<8x128xf32>,
    return
  }
  func.func @transform_0(%arg0: i32) -> (i32, i32) {
    %c0_i32 = arith.constant 0 : i32
    %c0_i32_0 = arith.constant 0 : i32
    return %arg0, %c0_i32 : i32, i32
  }
  func.func @transform_1(%arg0: i32) -> (i32, i32) {
    %c0_i32 = arith.constant 0 : i32
    %c0_i32_0 = arith.constant 0 : i32
    %c0_i32_1 = arith.constant 0 : i32
    return %c0_i32, %c0_i32_0 : i32, i32
  }
  func.func @transform_2(%arg0: i32) -> (i32, i32) {
    %c0_i32 = arith.constant 0 : i32
    %c0_i32_0 = arith.constant 0 : i32
    %c0_i32_1 = arith.constant 0 : i32
    return %c0_i32, %c0_i32_0 : i32, i32
  }
  func.func @transform_3(%arg0: i32) -> (i32, i32) {
    %c0_i32 = arith.constant 0 : i32
    %c0_i32_0 = arith.constant 0 : i32
    %c0_i32_1 = arith.constant 0 : i32
    return %c0_i32, %c0_i32_0 : i32, i32
  }
  func.func @transform_4(%arg0: i32) -> (i32, i32) {
    %c0_i32 = arith.constant 0 : i32
    %c0_i32_0 = arith.constant 0 : i32
    %c0_i32_1 = arith.constant 0 : i32
    return %c0_i32, %c0_i32_0 : i32, i32
  }
  func.func @transform_5(%arg0: i32) -> (i32, i32) {
    %c0_i32 = arith.constant 0 : i32
    %c0_i32_0 = arith.constant 0 : i32
    %c0_i32_1 = arith.constant 0 : i32
    return %c0_i32, %c0_i32_0 : i32, i32
  }
  func.func @transform_6(%arg0: i32) -> (i32, i32) {
    %c0_i32 = arith.constant 0 : i32
    %c0_i32_0 = arith.constant 0 : i32
    %c0_i32_1 = arith.constant 0 : i32
    return %c0_i32, %c0_i32_0 : i32, i32
  }
  func.func @transform_7(%arg0: i32) -> (i32, i32) {
    %c0_i32 = arith.constant 0 : i32
    %c0_i32_0 = arith.constant 0 : i32
    %c0_i32_1 = arith.constant 0 : i32
    return %c0_i32, %c0_i32_0 : i32, i32
  }
  func.func @transform_8(%arg0: i32) -> (i32, i32) {
    %c0_i32 = arith.constant 0 : i32
    %c0_i32_0 = arith.constant 0 : i32
    %c0_i32_1 = arith.constant 0 : i32
    return %c0_i32, %c0_i32_0 : i32, i32
  }
  func.func @transform_9(%arg0: i32) -> (i32, i32) {
    %c0_i32 = arith.constant 0 : i32
    %c0_i32_0 = arith.constant 0 : i32
    %c0_i32_1 = arith.constant 0 : i32
    return %c0_i32, %c0_i32_0 : i32, i32
  }
  func.func @transform_10(%arg0: i32) -> (i32, i32) {
    %c0_i32 = arith.constant 0 : i32
    %c0_i32_0 = arith.constant 0 : i32
    %c0_i32_1 = arith.constant 0 : i32
    return %c0_i32, %c0_i32_0 : i32, i32
  }
  func.func @transform_11(%arg0: i32) -> (i32, i32) {
    %c0_i32 = arith.constant 0 : i32
    %c0_i32_0 = arith.constant 0 : i32
    %c0_i32_1 = arith.constant 0 : i32
    return %c0_i32, %c0_i32_0 : i32, i32
  }
  func.func @transform_12(%arg0: i32) -> (i32, i32) {
    %c0_i32 = arith.constant 0 : i32
    %c0_i32_0 = arith.constant 0 : i32
    %c0_i32_1 = arith.constant 0 : i32
    return %c0_i32, %c0_i32_0 : i32, i32
  }
  func.func @transform_13(%arg0: i32) -> (i32, i32) {
    %c0_i32 = arith.constant 0 : i32
    %c0_i32_0 = arith.constant 0 : i32
    %c0_i32_1 = arith.constant 0 : i32
    return %c0_i32, %c0_i32_0 : i32, i32
  }
  func.func @transform_14(%arg0: i32) -> (i32, i32) {
    %c0_i32 = arith.constant 0 : i32
    %c0_i32_0 = arith.constant 0 : i32
    %c0_i32_1 = arith.constant 0 : i32
    return %c0_i32, %c0_i32_0 : i32, i32
  }
  func.func @transform_15(%arg0: i32) -> (i32, i32) {
    %c0_i32 = arith.constant 0 : i32
    %c0_i32_0 = arith.constant 0 : i32
    %c0_i32_1 = arith.constant 0 : i32
    return %c0_i32, %c0_i32_0 : i32, i32
  }
  func.func @transform_16(%arg0: i32) -> (i32, i32) {
    %c0_i32 = arith.constant 0 : i32
    %c0_i32_0 = arith.constant 0 : i32
    %c0_i32_1 = arith.constant 0 : i32
    return %c0_i32, %c0_i32_0 : i32, i32
  }
  func.func @transform_17(%arg0: i32) -> (i32, i32) {
    %c0_i32 = arith.constant 0 : i32
    %c0_i32_0 = arith.constant 0 : i32
    %c0_i32_1 = arith.constant 0 : i32
    return %c0_i32, %c0_i32_0 : i32, i32
  }
  func.func @transform_18(%arg0: i32) -> (i32, i32) {
    %c0_i32 = arith.constant 0 : i32
    %c0_i32_0 = arith.constant 0 : i32
    %c0_i32_1 = arith.constant 0 : i32
    return %c0_i32, %c0_i32_0 : i32, i32
  }
  func.func @transform_19(%arg0: i32) -> (i32, i32) {
    %c0_i32 = arith.constant 0 : i32
    %c0_i32_0 = arith.constant 0 : i32
    return %arg0, %c0_i32 : i32, i32
  }
}

</mosaic_0001>

<bundles_post_ra>
// kernel: forward.1
= control target key start
LH: loop header
LB: loop body
LE: loop exit
PB: predicated region body
PF: predicated region fallthrough
CT: control target
= control target key end

     0   :  { %vm2270_vm0 = vcmask 130048   ;;  %vm12711_vm1 = vmmov 0   ;;  %vm4461_vm2 = vcmask 261120   ;;  %vm4590_vm3 = vcmask 523264   ;;  %s16352_s1 = inlined_call_operand.vmem [shape: bf16[784,784], index: 1, kind: input, shape index: {}]   ;;  %s16353_s0 = inlined_call_operand.vmem [shape: f32[8,784], index: 0, kind: input, shape index: {}]   ;;  %s16354_s3 = inlined_call_operand.vmem [shape: bf16[784,288], index: 3, kind: input, shape index: {}]   ;;  %s16355_s2 = inlined_call_operand.vmem [shape: f32[1,784], index: 2, kind: input, shape index: {}]   ;;  %s16356_s4 = inlined_call_operand.vmem [shape: f32[1,288], index: 4, kind: input, shape index: {}]   ;;  %s16357_s5 = inlined_call_operand.vmem [shape: bf16[288,64], index: 5, kind: input, shape index: {}]   ;;  %s16358_s7 = inlined_call_operand.vmem [shape: bf16[784,784], index: 7, kind: input, shape index: {}]   ;;  %s16359_s11 = inlined_call_operand.vmem [shape: bf16[64,32], index: 11, kind: input, shape index: {}]   ;;  %s16360_s6 = inlined_call_operand.vmem [shape: f32[1,64], index: 6, kind: input, shape index: {}]   ;;  %s16361_s9 = inlined_call_operand.vmem [shape: bf16[784,392], index: 9, kind: input, shape index: {}]   ;;  %s16362_s8 = inlined_call_operand.vmem [shape: f32[1,784], index: 8, kind: input, shape index: {}]   ;;  %s16363_s13 = inlined_call_operand.vmem [shape: bf16[392,128], index: 13, kind: input, shape index: {}]   ;;  %s16364_s10 = inlined_call_operand.vmem [shape: f32[1,392], index: 10, kind: input, shape index: {}]   ;;  %s16365_s15 = inlined_call_operand.vmem [shape: bf16[128,32], index: 15, kind: input, shape index: {}]   ;;  %s16366_s17 = inlined_call_operand.vmem [shape: bf16[32,128], index: 17, kind: input, shape index: {}]   ;;  %s16367_s14 = inlined_call_operand.vmem [shape: f32[1,128], index: 14, kind: input, shape index: {}]   ;;  %s16368_s12 = inlined_call_operand.vmem [shape: f32[1,32], index: 12, kind: input, shape index: {}]   ;;  %s16369_s16 = inlined_call_operand.vmem [shape: f32[1,32], index: 16, kind: input, shape index: {}]   ;;  %s16370_s18 = inlined_call_operand.vmem [shape: f32[1,128], index: 18, kind: input, shape index: {}]   ;;  %s16371_s19 = inlined_call_operand.vmem [shape: f32[8,128], index: 19, kind: output, shape index: {}]  }
   0x1   :  { %16375 = sst [smem:[#allocation2_spill]] %s16352_s1  ;;  %vm9277_vm4 = vcmask 64512   ;;  %vm9281_vm5 = vcmask 1043456  }
   0x2   :  { %16376 = sst [smem:[#allocation3_spill]] %s16353_s0  ;;  %s16379_s20 = sld [smem:[#allocation2_spill]] }
   0x3   :  { %16377 = sst [smem:[#allocation4_spill]] %s16354_s3  ;;  %s16380_s26 = sld [smem:[#allocation3_spill]] }
   0x4   :  { %16378 = sst [smem:[#allocation5_spill]] %s16355_s2  ;;  %s16381_s28 = sld [smem:[#allocation4_spill]] }
   0x5   :  { %s16382_s27 = sld [smem:[#allocation5_spill]] }
   0x8   :  { %v11131_v0 = vld [vmem:[%s16379_s20 + $0x4] ss:$28 sps:$4 sm:$0xff]   ;;  %v11134_v2 = vld [vmem:[%s16379_s20 + $0xc] ss:$28 sps:$4 sm:$0xff]   ;;  %v11136_v3 = vld [vmem:[%s16379_s20 + $0x3c] ss:$28 sps:$4 sm:$0xff]  }
   0x9   :  { %v11133_v1 = vld [vmem:[%s16379_s20] ss:$28 sps:$4 sm:$0xff]   ;;  %2274 = vmatprep.subr.bf16.mxu0 %v11131_v0  ;;  %v11138_v4 = vld [vmem:[%s16379_s20 + $0x8] ss:$28 sps:$4 sm:$0xff]   ;;  %v11139_v5 = vld [vmem:[%s16379_s20 + $0x38] ss:$28 sps:$4 sm:$0xff]   ;;  %2438 = vmatprep.subr.bf16.mxu1 %v11134_v2 }
   0xa   :  { %2275 = vmatpush1.bf16.msra.mxu0 %v11133_v1  ;;  %v11140_v6 = vld [vmem:[%s16379_s20 + $0x44] ss:$28 sps:$4 sm:$0xff]   ;;  %2439 = vmatpush1.bf16.msra.mxu1 %v11138_v4  ;;  %v11142_v7 = vld [vmem:[%s16379_s20 + $0x74] ss:$28 sps:$4 sm:$0xff]   ;;  %v11146_v10 = vld [vmem:[%s16379_s20 + $0x7c] ss:$28 sps:$4 sm:$0xff]  }
   0xb   :  { %2276 = vmatprep.subr.bf16.mxu0 %v11136_v3  ;;  %2440 = vmatprep.subr.bf16.mxu1 %v11140_v6  ;;  %v11144_v8 = vld [vmem:[%s16379_s20 + $0x40] ss:$28 sps:$4 sm:$0xff]   ;;  %v11145_v9 = vld [vmem:[%s16379_s20 + $0x70] ss:$28 sps:$4 sm:$0xff]   ;;  %v11150_v12 = vld [vmem:[%s16379_s20 + $0x78] ss:$28 sps:$4 sm:$0xff]  }
   0xc   :  { %v11148_v11 = vld [vmem:[%s16379_s20 + $0xac] ss:$28 sps:$4 sm:$0xff]   ;;  %v11152_v13 = vld [vmem:[%s16379_s20 + $0xb4] ss:$28 sps:$4 sm:$0xff]   ;;  %v11154_v15 = vld [vmem:[%s16379_s20 + $0xe4] ss:$28 sps:$4 sm:$0xff]  }
   0xd   :  { %v11151_v14 = vld [vmem:[%s16379_s20 + $0xa8] ss:$28 sps:$4 sm:$0xff]   ;;  %v11156_v16 = vld [vmem:[%s16379_s20 + $0xb0] ss:$28 sps:$4 sm:$0xff]   ;;  %v11157_v18 = vld [vmem:[%s16379_s20 + $0xe0] ss:$28 sps:$4 sm:$0xff]  }
   0xe   :  { %2277 = vmatpush1.bf16.msra.mxu0 %v11139_v5  ;;  %2441 = vmatpush1.bf16.msra.mxu1 %v11144_v8  ;;  %v11158_v17 = vld [vmem:[%s16379_s20 + $0xec] ss:$28 sps:$4 sm:$0xff]   ;;  %v11160_v19 = vld [vmem:[%s16379_s20 + $0x11c] ss:$28 sps:$4 sm:$0xff]   ;;  %v11164_v21 = vld [vmem:[%s16379_s20 + $0x124] ss:$28 sps:$4 sm:$0xff]  }
   0xf   :  { %2278 = vmatprep.subr.bf16.mxu0 %v11142_v7  ;;  %2442 = vmatprep.subr.bf16.mxu1 %v11146_v10  ;;  %v11162_v20 = vld [vmem:[%s16379_s20 + $0xe8] ss:$28 sps:$4 sm:$0xff]   ;;  %v11163_v22 = vld [vmem:[%s16379_s20 + $0x118] ss:$28 sps:$4 sm:$0xff]   ;;  %v11168_v24 = vld [vmem:[%s16379_s20 + $0x120] ss:$28 sps:$4 sm:$0xff]  }
  0x10   :  { %v11166_v23 = vld [vmem:[%s16379_s20 + $0x154] ss:$28 sps:$4 sm:$0xff]   ;;  %v11170_v25 = vld [vmem:[%s16379_s20 + $0x15c] ss:$28 sps:$4 sm:$0xff]   ;;  %v11172_v27 = vld [vmem:[%s16379_s20 + $0x18c] ss:$28 sps:$4 sm:$0xff]  }
  0x11   :  { %v11169_v26 = vld [vmem:[%s16379_s20 + $0x150] ss:$28 sps:$4 sm:$0xff]   ;;  %v11174_v28 = vld [vmem:[%s16379_s20 + $0x158] ss:$28 sps:$4 sm:$0xff]   ;;  %v11175_v30 = vld [vmem:[%s16379_s20 + $0x188] ss:$28 sps:$4 sm:$0xff]  }
  0x12   :  { %2279 = vmatpush1.bf16.msra.mxu0 %v11145_v9  ;;  %2443 = vmatpush1.bf16.msra.mxu1 %v11150_v12  ;;  %v11176_v29 = vld [vmem:[%s16379_s20 + $0x194] ss:$28 sps:$4 sm:$0xff]   ;;  %v11178_v31 = vld [vmem:[%s16379_s20 + $0x1c4] ss:$28 sps:$4 sm:$0xff]   ;;  %v11182_v33 = vld [vmem:[%s16379_s20 + $0x1cc] ss:$28 sps:$4 sm:$0xff]  }
  0x13   :  { %2280 = vmatprep.subr.bf16.mxu0 %v11148_v11  ;;  %2444 = vmatprep.subr.bf16.mxu1 %v11152_v13  ;;  %v11180_v32 = vld [vmem:[%s16379_s20 + $0x190] ss:$28 sps:$4 sm:$0xff]   ;;  %v11181_v34 = vld [vmem:[%s16379_s20 + $0x1c0] ss:$28 sps:$4 sm:$0xff]   ;;  %v11186_v36 = vld [vmem:[%s16379_s20 + $0x1c8] ss:$28 sps:$4 sm:$0xff]  }
  0x14   :  { %v11184_v35 = vld [vmem:[%s16379_s20 + $0x1fc] ss:$28 sps:$4 sm:$0xff]   ;;  %v11188_v37 = vld [vmem:[%s16379_s20 + $0x204] ss:$28 sps:$4 sm:$0xff]   ;;  %v11190_v39 = vld [vmem:[%s16379_s20 + $0x234] ss:$28 sps:$4 sm:$0xff]  }
  0x15   :  { %v11187_v38 = vld [vmem:[%s16379_s20 + $0x1f8] ss:$28 sps:$4 sm:$0xff]   ;;  %v11192_v40 = vld [vmem:[%s16379_s20 + $0x200] ss:$28 sps:$4 sm:$0xff]   ;;  %v11193_v42 = vld [vmem:[%s16379_s20 + $0x230] ss:$28 sps:$4 sm:$0xff]  }
  0x16   :  { %2281 = vmatpush1.bf16.msra.mxu0 %v11151_v14  ;;  %2445 = vmatpush1.bf16.msra.mxu1 %v11156_v16  ;;  %v11194_v41 = vld [vmem:[%s16379_s20 + $0x23c] ss:$28 sps:$4 sm:$0xff]   ;;  %v11196_v43 = vld [vmem:[%s16379_s20 + $0x26c] ss:$28 sps:$4 sm:$0xff]   ;;  %v11200_v45 = vld [vmem:[%s16379_s20 + $0x274] ss:$28 sps:$4 sm:$0xff]  }
  0x17   :  { %2282 = vmatprep.subr.bf16.mxu0 %v11154_v15  ;;  %2446 = vmatprep.subr.bf16.mxu1 %v11158_v17  ;;  %v11198_v44 = vld [vmem:[%s16379_s20 + $0x238] ss:$28 sps:$4 sm:$0xff]   ;;  %v64_v46 = vld [vmem:[%s16380_s26 + $0x8] sm:$0xff]  ;;  %v11202_v49 = vld [vmem:[%s16379_s20 + $0x2a4] ss:$28 sps:$4 sm:$0xff]  }
  0x18   :  { %v11199_v47 = vld [vmem:[%s16379_s20 + $0x268] ss:$28 sps:$4 sm:$0xff]   ;;  %v12956_v48 = vpack.c.bf16 %v64_v46, %v64_v46  ;;  %v11204_v50 = vld [vmem:[%s16379_s20 + $0x270] ss:$28 sps:$4 sm:$0xff]   ;;  %v11205_v52 = vld [vmem:[%s16379_s20 + $0x2a0] ss:$28 sps:$4 sm:$0xff]  }
  0x19   :  { %v11206_v51 = vld [vmem:[%s16379_s20 + $0x2ac] ss:$28 sps:$4 sm:$0xff]   ;;  %v11208_v53 = vld [vmem:[%s16379_s20 + $0x2dc] ss:$28 sps:$4 sm:$0xff]   ;;  %v11212_v55 = vld [vmem:[%s16379_s20 + $0x2e4] ss:$28 sps:$4 sm:$0xff]  }
  0x1a   :  { %2283 = vmatpush1.bf16.msra.mxu0 %v11157_v18  ;;  %2447 = vmatpush1.bf16.msra.mxu1 %v11162_v20  ;;  %v11210_v54 = vld [vmem:[%s16379_s20 + $0x2a8] ss:$28 sps:$4 sm:$0xff]   ;;  %v11211_v56 = vld [vmem:[%s16379_s20 + $0x2d8] ss:$28 sps:$4 sm:$0xff]   ;;  %v11216_v58 = vld [vmem:[%s16379_s20 + $0x2e0] ss:$28 sps:$4 sm:$0xff]  }
  0x1b   :  { %2284 = vmatprep.subr.bf16.mxu0 %v11160_v19  ;;  %2448 = vmatprep.subr.bf16.mxu1 %v11164_v21  ;;  %v11214_v57 = vld [vmem:[%s16379_s20 + $0x314] ss:$28 sps:$4 sm:$0xff]   ;;  %v11218_v59 = vld [vmem:[%s16379_s20 + $0x31c] ss:$28 sps:$4 sm:$0xff]   ;;  %v11220_v61 = vld [vmem:[%s16379_s20 + $0x34c] ss:$28 sps:$4 sm:$0xff]  }
  0x1c   :  { %2306 = vmatprep.mubr.bf16.mxu0 %v12956_v48  ;;  %2470 = vmatprep.mubr.bf16.mxu1 %v12956_v48  ;;  %v11217_v60 = vld [vmem:[%s16379_s20 + $0x310] ss:$28 sps:$4 sm:$0xff]   ;;  %v11222_v62 = vld [vmem:[%s16379_s20 + $0x318] ss:$28 sps:$4 sm:$0xff]   ;;  %v11223_v63 = vld [vmem:[%s16379_s20 + $0x348] ss:$28 sps:$4 sm:$0xff]  }
  0x1d   :  { %v11224_v0 = vld [vmem:[%s16379_s20 + $0x354] ss:$28 sps:$4 sm:$0xff]   ;;  %v63_v1 = vld [vmem:[%s16380_s26] sm:$0xff]  ;;  %v11232_v5 = vld [vmem:[%s16379_s20 + $0x38c] ss:$28 sps:$4 sm:$0xff]  }
  0x1e   :  { %2285 = vmatpush1.bf16.msra.mxu0 %v11163_v22  ;;  %2449 = vmatpush1.bf16.msra.mxu1 %v11168_v24  ;;  %v11228_v2 = vld [vmem:[%s16379_s20 + $0x384] ss:$28 sps:$4 sm:$0xff]   ;;  %v11229_v3 = vld [vmem:[%s16379_s20 + $0x350] ss:$28 sps:$4 sm:$0xff]   ;;  %v13017_v4 = vpack.c.bf16 %v63_v1, %v63_v1  ;;  %v11235_v7 = vld [vmem:[%s16379_s20 + $0x3bc] ss:$28 sps:$4 sm:$0xff]  }
  0x1f   :  { %2286 = vmatprep.subr.bf16.mxu0 %v11166_v23  ;;  %2450 = vmatprep.subr.bf16.mxu1 %v11170_v25  ;;  %v11226_v6 = vld [vmem:[%s16379_s20 + $0x380] ss:$28 sps:$4 sm:$0xff]   ;;  %v11230_v8 = vld [vmem:[%s16379_s20 + $0x388] ss:$28 sps:$4 sm:$0xff]   ;;  %v11233_v10 = vld [vmem:[%s16379_s20 + $0x3b8] ss:$28 sps:$4 sm:$0xff]  }
  0x20   :  { %v11238_v9 = vld [vmem:[%s16379_s20 + $0x3c4] ss:$28 sps:$4 sm:$0xff]   ;;  %v11241_v11 = vld [vmem:[%s16379_s20 + $0x3f4] ss:$28 sps:$4 sm:$0xff]   ;;  %v11244_v13 = vld [vmem:[%s16379_s20 + $0x3fc] ss:$28 sps:$4 sm:$0xff]  }
  0x21   :  { %v11236_v12 = vld [vmem:[%s16379_s20 + $0x3c0] ss:$28 sps:$4 sm:$0xff]   ;;  %v11239_v14 = vld [vmem:[%s16379_s20 + $0x3f0] ss:$28 sps:$4 sm:$0xff]   ;;  %v11242_v16 = vld [vmem:[%s16379_s20 + $0x3f8] ss:$28 sps:$4 sm:$0xff]  }
  0x22   :  { %2287 = vmatpush1.bf16.msra.mxu0 %v11169_v26  ;;  %2451 = vmatpush1.bf16.msra.mxu1 %v11174_v28  ;;  %v11247_v15 = vld [vmem:[%s16379_s20 + $0x42c] ss:$28 sps:$4 sm:$0xff]   ;;  %v11250_v17 = vld [vmem:[%s16379_s20 + $0x434] ss:$28 sps:$4 sm:$0xff]   ;;  %v11253_v19 = vld [vmem:[%s16379_s20 + $0x464] ss:$28 sps:$4 sm:$0xff]  }
  0x23   :  { %2288 = vmatprep.subr.bf16.mxu0 %v11172_v27  ;;  %2452 = vmatprep.subr.bf16.mxu1 %v11176_v29  ;;  %v11245_v18 = vld [vmem:[%s16379_s20 + $0x428] ss:$28 sps:$4 sm:$0xff]   ;;  %v11248_v20 = vld [vmem:[%s16379_s20 + $0x430] ss:$28 sps:$4 sm:$0xff]   ;;  %v11251_v22 = vld [vmem:[%s16379_s20 + $0x460] ss:$28 sps:$4 sm:$0xff]  }
  0x24   :  { %v11256_v21 = vld [vmem:[%s16379_s20 + $0x46c] ss:$28 sps:$4 sm:$0xff]   ;;  %v11259_v23 = vld [vmem:[%s16379_s20 + $0x49c] ss:$28 sps:$4 sm:$0xff]   ;;  %v11262_v25 = vld [vmem:[%s16379_s20 + $0x4a4] ss:$28 sps:$4 sm:$0xff]  }
  0x25   :  { %v11254_v24 = vld [vmem:[%s16379_s20 + $0x468] ss:$28 sps:$4 sm:$0xff]   ;;  %v11257_v26 = vld [vmem:[%s16379_s20 + $0x498] ss:$28 sps:$4 sm:$0xff]   ;;  %v11260_v28 = vld [vmem:[%s16379_s20 + $0x4a0] ss:$28 sps:$4 sm:$0xff]  }
  0x26   :  { %2289 = vmatpush1.bf16.msra.mxu0 %v11175_v30  ;;  %2453 = vmatpush1.bf16.msra.mxu1 %v11180_v32  ;;  %v11265_v27 = vld [vmem:[%s16379_s20 + $0x4d4] ss:$28 sps:$4 sm:$0xff]   ;;  %v11268_v29 = vld [vmem:[%s16379_s20 + $0x4dc] ss:$28 sps:$4 sm:$0xff]  }
  0x27   :  { %2290 = vmatprep.subr.bf16.mxu0 %v11178_v31  ;;  %2454 = vmatprep.subr.bf16.mxu1 %v11182_v33  ;;  %v66_v30 = vld [vmem:[%s16380_s26 + $0x18] sm:$0xff]  ;;  %v11263_v31 = vld [vmem:[%s16379_s20 + $0x4d0] ss:$28 sps:$4 sm:$0xff]  }
  0x28   :  { %v13102_v32 = vpack.c.bf16 %v66_v30, %v66_v30  ;;  %v11271_v33 = vld [vmem:[%s16379_s20 + $0x50c] ss:$28 sps:$4 sm:$0xff]   ;;  %v11284_v46 = vld [vmem:[%s16379_s20 + $0x580] ss:$28 sps:$4 sm:$0xff]  }
  0x29   :  { %v11311_v1 = vld [vmem:[%s16379_s20 + $0x690] ss:$28 sps:$4 sm:$0xff]   ;;  %v11347_v30 = vld [vmem:[%s16379_s20 + $0x7e0] ss:$28 sps:$4 sm:$0xff]  }
  0x2a   :  { %2291 = vmatpush1.bf16.msra.mxu0 %v11181_v34  ;;  %2455 = vmatpush1.bf16.msra.mxu1 %v11186_v36  ;;  %v11266_v34 = vld [vmem:[%s16379_s20 + $0x4d8] ss:$28 sps:$4 sm:$0xff]   ;;  %v11269_v36 = vld [vmem:[%s16379_s20 + $0x508] ss:$28 sps:$4 sm:$0xff]  }
  0x2b   :  { %2292 = vmatprep.subr.bf16.mxu0 %v11184_v35  ;;  %2456 = vmatprep.subr.bf16.mxu1 %v11188_v37  ;;  %v11274_v35 = vld [vmem:[%s16379_s20 + $0x514] ss:$28 sps:$4 sm:$0xff]   ;;  %v11277_v37 = vld [vmem:[%s16379_s20 + $0x544] ss:$28 sps:$4 sm:$0xff]  }
  0x2e   :  { %2293 = vmatpush1.bf16.msra.mxu0 %v11187_v38  ;;  %2457 = vmatpush1.bf16.msra.mxu1 %v11192_v40  ;;  %v11272_v38 = vld [vmem:[%s16379_s20 + $0x510] ss:$28 sps:$4 sm:$0xff]   ;;  %v11275_v40 = vld [vmem:[%s16379_s20 + $0x540] ss:$28 sps:$4 sm:$0xff]  }
  0x2f   :  { %2294 = vmatprep.subr.bf16.mxu0 %v11190_v39  ;;  %2458 = vmatprep.subr.bf16.mxu1 %v11194_v41  ;;  %v11280_v39 = vld [vmem:[%s16379_s20 + $0x54c] ss:$28 sps:$4 sm:$0xff]   ;;  %v11283_v41 = vld [vmem:[%s16379_s20 + $0x57c] ss:$28 sps:$4 sm:$0xff]  }
  0x32   :  { %2295 = vmatpush1.bf16.msra.mxu0 %v11193_v42  ;;  %2459 = vmatpush1.bf16.msra.mxu1 %v11198_v44  ;;  %v11278_v42 = vld [vmem:[%s16379_s20 + $0x548] ss:$28 sps:$4 sm:$0xff]   ;;  %v11281_v44 = vld [vmem:[%s16379_s20 + $0x578] ss:$28 sps:$4 sm:$0xff]  }
  0x33   :  { %2296 = vmatprep.subr.bf16.mxu0 %v11196_v43  ;;  %2460 = vmatprep.subr.bf16.mxu1 %v11200_v45  ;;  %v11286_v43 = vld [vmem:[%s16379_s20 + $0x584] ss:$28 sps:$4 sm:$0xff]   ;;  %v11289_v45 = vld [vmem:[%s16379_s20 + $0x5b4] ss:$28 sps:$4 sm:$0xff]  }
  0x36   :  { %2297 = vmatpush1.bf16.msra.mxu0 %v11199_v47  ;;  %2461 = vmatpush1.bf16.msra.mxu1 %v11204_v50  ;;  %v11292_v47 = vld [vmem:[%s16379_s20 + $0x5bc] ss:$28 sps:$4 sm:$0xff]   ;;  %v11295_v50 = vld [vmem:[%s16379_s20 + $0x5ec] ss:$28 sps:$4 sm:$0xff]  }
  0x37   :  { %2298 = vmatprep.subr.bf16.mxu0 %v11202_v49  ;;  %2462 = vmatprep.subr.bf16.mxu1 %v11206_v51  ;;  %v11287_v49 = vld [vmem:[%s16379_s20 + $0x5b0] ss:$28 sps:$4 sm:$0xff]   ;;  %v11290_v51 = vld [vmem:[%s16379_s20 + $0x5b8] ss:$28 sps:$4 sm:$0xff]  }
  0x3a   :  { %2299 = vmatpush1.bf16.msra.mxu0 %v11205_v52  ;;  %2463 = vmatpush1.bf16.msra.mxu1 %v11210_v54  ;;  %v11298_v52 = vld [vmem:[%s16379_s20 + $0x5f4] ss:$28 sps:$4 sm:$0xff]   ;;  %v11301_v54 = vld [vmem:[%s16379_s20 + $0x624] ss:$28 sps:$4 sm:$0xff]  }
  0x3b   :  { %2300 = vmatprep.subr.bf16.mxu0 %v11208_v53  ;;  %2464 = vmatprep.subr.bf16.mxu1 %v11212_v55  ;;  %v11293_v53 = vld [vmem:[%s16379_s20 + $0x5e8] ss:$28 sps:$4 sm:$0xff]   ;;  %v11296_v55 = vld [vmem:[%s16379_s20 + $0x5f0] ss:$28 sps:$4 sm:$0xff]  }
  0x3e   :  { %2301 = vmatpush1.bf16.msra.mxu0 %v11211_v56  ;;  %2465 = vmatpush1.bf16.msra.mxu1 %v11216_v58  ;;  %v11304_v56 = vld [vmem:[%s16379_s20 + $0x62c] ss:$28 sps:$4 sm:$0xff]   ;;  %v11307_v58 = vld [vmem:[%s16379_s20 + $0x65c] ss:$28 sps:$4 sm:$0xff]  }
  0x3f   :  { %2302 = vmatprep.subr.bf16.mxu0 %v11214_v57  ;;  %2466 = vmatprep.subr.bf16.mxu1 %v11218_v59  ;;  %v11299_v57 = vld [vmem:[%s16379_s20 + $0x620] ss:$28 sps:$4 sm:$0xff]   ;;  %v11302_v59 = vld [vmem:[%s16379_s20 + $0x628] ss:$28 sps:$4 sm:$0xff]  }
  0x42   :  { %2303 = vmatpush1.bf16.msra.mxu0 %v11217_v60  ;;  %2467 = vmatpush1.bf16.msra.mxu1 %v11222_v62  ;;  %v11310_v60 = vld [vmem:[%s16379_s20 + $0x664] ss:$28 sps:$4 sm:$0xff]   ;;  %v11313_v62 = vld [vmem:[%s16379_s20 + $0x694] ss:$28 sps:$4 sm:$0xff]  }
  0x43   :  { %2304 = vmatprep.subr.bf16.mxu0 %v11220_v61  ;;  %2468 = vmatprep.subr.bf16.mxu1 %v11224_v0  ;;  %v11305_v61 = vld [vmem:[%s16379_s20 + $0x658] ss:$28 sps:$4 sm:$0xff]  }
  0x44   :  { %v11316_v0 = vld [vmem:[%s16379_s20 + $0x69c] ss:$28 sps:$4 sm:$0xff]  }
  0x46   :  { %2305 = vmatpush1.bf16.msra.mxu0 %v11223_v63  ;;  %2469 = vmatpush1.bf16.msra.mxu1 %v11229_v3  ;;  %v11308_v63 = vld [vmem:[%s16379_s20 + $0x660] ss:$28 sps:$4 sm:$0xff]   ;;  %v11314_v3 = vld [vmem:[%s16379_s20 + $0x698] ss:$28 sps:$4 sm:$0xff]  }
  0x47   :  { %2315 = vmatprep.subr.bf16.mxu0 %v11228_v2  ;;  %2479 = vmatprep.subr.bf16.mxu1 %v11232_v5  ;;  %v11319_v2 = vld [vmem:[%s16379_s20 + $0x6cc] ss:$28 sps:$4 sm:$0xff]   ;;  %v11322_v5 = vld [vmem:[%s16379_s20 + $0x6d4] ss:$28 sps:$4 sm:$0xff]  }
  0x49   :  { %2307 = vmatmul.mubr.bf16.vlgmr.msra.gmra.mrb[0].mxu0 %v13017_v4  ;;  %2471 = vmatmul.mubr.bf16.vlgmr.msra.gmra.mrb[0].mxu1 %v13017_v4 }
  0x4a   :  { %2316 = vmatpush1.bf16.msra.mxu0 %v11226_v6  ;;  %2480 = vmatpush1.bf16.msra.mxu1 %v11230_v8  ;;  %v11317_v6 = vld [vmem:[%s16379_s20 + $0x6c8] ss:$28 sps:$4 sm:$0xff]  }
  0x4b   :  { %2317 = vmatprep.subr.bf16.mxu0 %v11235_v7  ;;  %2481 = vmatprep.subr.bf16.mxu1 %v11238_v9  ;;  %v65_v7 = vld [vmem:[%s16380_s26 + $0x10] sm:$0xff]  ;;  %v11325_v8 = vld [vmem:[%s16379_s20 + $0x704] ss:$28 sps:$4 sm:$0xff]  }
  0x4c   :  { %2347 = vmatprep.mubr.bf16.mxu0 %v13102_v32  ;;  %2511 = vmatprep.mubr.bf16.mxu1 %v13102_v32  ;;  %v11320_v9 = vld [vmem:[%s16379_s20 + $0x6d0] ss:$28 sps:$4 sm:$0xff]  }
  0x4e   :  { %2318 = vmatpush1.bf16.msra.mxu0 %v11233_v10  ;;  %2482 = vmatpush1.bf16.msra.mxu1 %v11236_v12  ;;  %v13223_v10 = vpack.c.bf16 %v65_v7, %v65_v7  ;;  %v11323_v12 = vld [vmem:[%s16379_s20 + $0x700] ss:$28 sps:$4 sm:$0xff]  }
  0x4f   :  { %2319 = vmatprep.subr.bf16.mxu0 %v11241_v11  ;;  %2483 = vmatprep.subr.bf16.mxu1 %v11244_v13  ;;  %v11328_v11 = vld [vmem:[%s16379_s20 + $0x70c] ss:$28 sps:$4 sm:$0xff]   ;;  %v11331_v13 = vld [vmem:[%s16379_s20 + $0x73c] ss:$28 sps:$4 sm:$0xff]  }
  0x50   :  { %v11404_v7 = vld [vmem:[%s16379_s20 + $0x9e0] ss:$28 sps:$4 sm:$0xff]  }
  0x52   :  { %2320 = vmatpush1.bf16.msra.mxu0 %v11239_v14  ;;  %2484 = vmatpush1.bf16.msra.mxu1 %v11242_v16  ;;  %v68_v14 = vld [vmem:[%s16380_s26 + $0x28] sm:$0xff] }
  0x53   :  { %2321 = vmatprep.subr.bf16.mxu0 %v11247_v15  ;;  %2485 = vmatprep.subr.bf16.mxu1 %v11250_v17  ;;  %v11326_v15 = vld [vmem:[%s16379_s20 + $0x708] ss:$28 sps:$4 sm:$0xff]   ;;  %v13240_v16 = vpack.c.bf16 %v68_v14, %v68_v14  ;;  %v11418_v14 = vld [vmem:[%s16379_s20 + $0xa54] ss:$28 sps:$4 sm:$0xff]  }
  0x54   :  { %v11334_v17 = vld [vmem:[%s16379_s20 + $0x744] ss:$28 sps:$4 sm:$0xff]  }
  0x56   :  { %2322 = vmatpush1.bf16.msra.mxu0 %v11245_v18  ;;  %2486 = vmatpush1.bf16.msra.mxu1 %v11248_v20  ;;  %v11329_v18 = vld [vmem:[%s16379_s20 + $0x738] ss:$28 sps:$4 sm:$0xff]   ;;  %v11332_v20 = vld [vmem:[%s16379_s20 + $0x740] ss:$28 sps:$4 sm:$0xff]  }
  0x57   :  { %2323 = vmatprep.subr.bf16.mxu0 %v11253_v19  ;;  %2487 = vmatprep.subr.bf16.mxu1 %v11256_v21  ;;  %v11337_v19 = vld [vmem:[%s16379_s20 + $0x774] ss:$28 sps:$4 sm:$0xff]   ;;  %v11340_v21 = vld [vmem:[%s16379_s20 + $0x77c] ss:$28 sps:$4 sm:$0xff]  }
  0x5a   :  { %2324 = vmatpush1.bf16.msra.mxu0 %v11251_v22  ;;  %2488 = vmatpush1.bf16.msra.mxu1 %v11254_v24  ;;  %v11335_v22 = vld [vmem:[%s16379_s20 + $0x770] ss:$28 sps:$4 sm:$0xff]   ;;  %v11338_v24 = vld [vmem:[%s16379_s20 + $0x778] ss:$28 sps:$4 sm:$0xff]  }
  0x5b   :  { %2325 = vmatprep.subr.bf16.mxu0 %v11259_v23  ;;  %2489 = vmatprep.subr.bf16.mxu1 %v11262_v25  ;;  %v11343_v23 = vld [vmem:[%s16379_s20 + $0x7ac] ss:$28 sps:$4 sm:$0xff]   ;;  %v11346_v25 = vld [vmem:[%s16379_s20 + $0x7b4] ss:$28 sps:$4 sm:$0xff]  }
  0x5e   :  { %2326 = vmatpush1.bf16.msra.mxu0 %v11257_v26  ;;  %2490 = vmatpush1.bf16.msra.mxu1 %v11260_v28  ;;  %v11341_v26 = vld [vmem:[%s16379_s20 + $0x7a8] ss:$28 sps:$4 sm:$0xff]   ;;  %v11344_v28 = vld [vmem:[%s16379_s20 + $0x7b0] ss:$28 sps:$4 sm:$0xff]  }
  0x5f   :  { %2327 = vmatprep.subr.bf16.mxu0 %v11265_v27  ;;  %2491 = vmatprep.subr.bf16.mxu1 %v11268_v29  ;;  %v11349_v27 = vld [vmem:[%s16379_s20 + $0x7e4] ss:$28 sps:$4 sm:$0xff]   ;;  %v11352_v29 = vld [vmem:[%s16379_s20 + $0x7ec] ss:$28 sps:$4 sm:$0xff]  }
  0x62   :  { %2328 = vmatpush1.bf16.msra.mxu0 %v11263_v31  ;;  %2492 = vmatpush1.bf16.msra.mxu1 %v11266_v34  ;;  %v11355_v31 = vld [vmem:[%s16379_s20 + $0x81c] ss:$28 sps:$4 sm:$0xff]   ;;  %v11358_v34 = vld [vmem:[%s16379_s20 + $0x824] ss:$28 sps:$4 sm:$0xff]  }
  0x63   :  { %2329 = vmatprep.subr.bf16.mxu0 %v11271_v33  ;;  %2493 = vmatprep.subr.bf16.mxu1 %v11274_v35  ;;  %v11350_v33 = vld [vmem:[%s16379_s20 + $0x7e8] ss:$28 sps:$4 sm:$0xff]   ;;  %v11353_v35 = vld [vmem:[%s16379_s20 + $0x818] ss:$28 sps:$4 sm:$0xff]  }
  0x66   :  { %2330 = vmatpush1.bf16.msra.mxu0 %v11269_v36  ;;  %2494 = vmatpush1.bf16.msra.mxu1 %v11272_v38  ;;  %v11361_v36 = vld [vmem:[%s16379_s20 + $0x854] ss:$28 sps:$4 sm:$0xff]   ;;  %v11364_v38 = vld [vmem:[%s16379_s20 + $0x85c] ss:$28 sps:$4 sm:$0xff]  }
  0x67   :  { %2331 = vmatprep.subr.bf16.mxu0 %v11277_v37  ;;  %2495 = vmatprep.subr.bf16.mxu1 %v11280_v39  ;;  %v11356_v37 = vld [vmem:[%s16379_s20 + $0x820] ss:$28 sps:$4 sm:$0xff]   ;;  %v11359_v39 = vld [vmem:[%s16379_s20 + $0x850] ss:$28 sps:$4 sm:$0xff]  }
  0x6a   :  { %2332 = vmatpush1.bf16.msra.mxu0 %v11275_v40  ;;  %2496 = vmatpush1.bf16.msra.mxu1 %v11278_v42  ;;  %v11367_v40 = vld [vmem:[%s16379_s20 + $0x88c] ss:$28 sps:$4 sm:$0xff]   ;;  %v11370_v42 = vld [vmem:[%s16379_s20 + $0x894] ss:$28 sps:$4 sm:$0xff]  }
  0x6b   :  { %2333 = vmatprep.subr.bf16.mxu0 %v11283_v41  ;;  %2497 = vmatprep.subr.bf16.mxu1 %v11286_v43  ;;  %v11362_v41 = vld [vmem:[%s16379_s20 + $0x858] ss:$28 sps:$4 sm:$0xff]   ;;  %v11365_v43 = vld [vmem:[%s16379_s20 + $0x888] ss:$28 sps:$4 sm:$0xff]  }
  0x6e   :  { %2334 = vmatpush1.bf16.msra.mxu0 %v11281_v44  ;;  %2498 = vmatpush1.bf16.msra.mxu1 %v11284_v46  ;;  %v11373_v44 = vld [vmem:[%s16379_s20 + $0x8c4] ss:$28 sps:$4 sm:$0xff]   ;;  %v11376_v46 = vld [vmem:[%s16379_s20 + $0x8cc] ss:$28 sps:$4 sm:$0xff]  }
  0x6f   :  { %2335 = vmatprep.subr.bf16.mxu0 %v11289_v45  ;;  %2499 = vmatprep.subr.bf16.mxu1 %v11292_v47  ;;  %v11368_v45 = vld [vmem:[%s16379_s20 + $0x890] ss:$28 sps:$4 sm:$0xff]   ;;  %v11371_v47 = vld [vmem:[%s16379_s20 + $0x8c0] ss:$28 sps:$4 sm:$0xff]  }
  0x72   :  { %2336 = vmatpush1.bf16.msra.mxu0 %v11287_v49  ;;  %2500 = vmatpush1.bf16.msra.mxu1 %v11290_v51  ;;  %v11379_v49 = vld [vmem:[%s16379_s20 + $0x8fc] ss:$28 sps:$4 sm:$0xff]   ;;  %v11382_v51 = vld [vmem:[%s16379_s20 + $0x904] ss:$28 sps:$4 sm:$0xff]  }
  0x73   :  { %2337 = vmatprep.subr.bf16.mxu0 %v11295_v50  ;;  %2501 = vmatprep.subr.bf16.mxu1 %v11298_v52  ;;  %v11374_v50 = vld [vmem:[%s16379_s20 + $0x8c8] ss:$28 sps:$4 sm:$0xff]   ;;  %v11377_v52 = vld [vmem:[%s16379_s20 + $0x8f8] ss:$28 sps:$4 sm:$0xff]  }
  0x76   :  { %2338 = vmatpush1.bf16.msra.mxu0 %v11293_v53  ;;  %2502 = vmatpush1.bf16.msra.mxu1 %v11296_v55  ;;  %v11385_v53 = vld [vmem:[%s16379_s20 + $0x934] ss:$28 sps:$4 sm:$0xff]   ;;  %v11388_v55 = vld [vmem:[%s16379_s20 + $0x93c] ss:$28 sps:$4 sm:$0xff]  }
  0x77   :  { %2339 = vmatprep.subr.bf16.mxu0 %v11301_v54  ;;  %2503 = vmatprep.subr.bf16.mxu1 %v11304_v56  ;;  %v11380_v54 = vld [vmem:[%s16379_s20 + $0x900] ss:$28 sps:$4 sm:$0xff]   ;;  %v11383_v56 = vld [vmem:[%s16379_s20 + $0x930] ss:$28 sps:$4 sm:$0xff]  }
  0x7a   :  { %2340 = vmatpush1.bf16.msra.mxu0 %v11299_v57  ;;  %2504 = vmatpush1.bf16.msra.mxu1 %v11302_v59  ;;  %v11391_v57 = vld [vmem:[%s16379_s20 + $0x96c] ss:$28 sps:$4 sm:$0xff]   ;;  %v11394_v59 = vld [vmem:[%s16379_s20 + $0x974] ss:$28 sps:$4 sm:$0xff]  }
  0x7b   :  { %2341 = vmatprep.subr.bf16.mxu0 %v11307_v58  ;;  %2505 = vmatprep.subr.bf16.mxu1 %v11310_v60  ;;  %v11386_v58 = vld [vmem:[%s16379_s20 + $0x938] ss:$28 sps:$4 sm:$0xff]   ;;  %v11389_v60 = vld [vmem:[%s16379_s20 + $0x968] ss:$28 sps:$4 sm:$0xff]  }
  0x7e   :  { %2342 = vmatpush1.bf16.msra.mxu0 %v11305_v61  ;;  %2506 = vmatpush1.bf16.msra.mxu1 %v11308_v63  ;;  %v11397_v61 = vld [vmem:[%s16379_s20 + $0x9a4] ss:$28 sps:$4 sm:$0xff]   ;;  %v11400_v63 = vld [vmem:[%s16379_s20 + $0x9ac] ss:$28 sps:$4 sm:$0xff]  }
  0x7f   :  { %2343 = vmatprep.subr.bf16.mxu0 %v11313_v62  ;;  %2507 = vmatprep.subr.bf16.mxu1 %v11316_v0  ;;  %v11392_v62 = vld [vmem:[%s16379_s20 + $0x970] ss:$28 sps:$4 sm:$0xff]   ;;  %v11395_v0 = vld [vmem:[%s16379_s20 + $0x9a0] ss:$28 sps:$4 sm:$0xff]  }
  0x82   :  { %2344 = vmatpush1.bf16.msra.mxu0 %v11311_v1  ;;  %2508 = vmatpush1.bf16.msra.mxu1 %v11314_v3  ;;  %v11403_v1 = vld [vmem:[%s16379_s20 + $0x9dc] ss:$28 sps:$4 sm:$0xff]   ;;  %v11406_v3 = vld [vmem:[%s16379_s20 + $0x9e4] ss:$28 sps:$4 sm:$0xff]  }
  0x83   :  { %2345 = vmatprep.subr.bf16.mxu0 %v11319_v2  ;;  %2509 = vmatprep.subr.bf16.mxu1 %v11322_v5  ;;  %v11398_v2 = vld [vmem:[%s16379_s20 + $0x9a8] ss:$28 sps:$4 sm:$0xff]   ;;  %v11401_v5 = vld [vmem:[%s16379_s20 + $0x9d8] ss:$28 sps:$4 sm:$0xff]  }
  0x86   :  { %2346 = vmatpush1.bf16.msra.mxu0 %v11317_v6  ;;  %2510 = vmatpush1.bf16.msra.mxu1 %v11320_v9  ;;  %v11409_v6 = vld [vmem:[%s16379_s20 + $0xa14] ss:$28 sps:$4 sm:$0xff]   ;;  %v11412_v9 = vld [vmem:[%s16379_s20 + $0xa1c] ss:$28 sps:$4 sm:$0xff]  }
  0x87   :  { %2356 = vmatprep.subr.bf16.mxu0 %v11325_v8  ;;  %2520 = vmatprep.subr.bf16.mxu1 %v11328_v11  ;;  %v11407_v8 = vld [vmem:[%s16379_s20 + $0xa10] ss:$28 sps:$4 sm:$0xff]   ;;  %v11410_v11 = vld [vmem:[%s16379_s20 + $0xa18] ss:$28 sps:$4 sm:$0xff]  }
  0x89   :  { %2348 = vmatmul.mubr.bf16.vlgmr.msra.gmra.mrb[0].mxu0 %v13223_v10  ;;  %2512 = vmatmul.mubr.bf16.vlgmr.msra.gmra.mrb[0].mxu1 %v13223_v10 }
  0x8a   :  { %2357 = vmatpush1.bf16.msra.mxu0 %v11323_v12  ;;  %2388 = vmatprep.mubr.bf16.mxu0 %v13240_v16  ;;  %v11415_v12 = vld [vmem:[%s16379_s20 + $0xa4c] ss:$28 sps:$4 sm:$0xff]  }
  0x8b   :  { %2358 = vmatprep.subr.bf16.mxu0 %v11331_v13  ;;  %2521 = vmatpush1.bf16.msra.mxu1 %v11326_v15  ;;  %v11413_v13 = vld [vmem:[%s16379_s20 + $0xa48] ss:$28 sps:$4 sm:$0xff]  }
  0x8c   :  { %2552 = vmatprep.mubr.bf16.mxu1 %v13240_v16  ;;  %2522 = vmatprep.subr.bf16.mxu1 %v11334_v17  ;;  %v67_v15 = vld [vmem:[%s16380_s26 + $0x20] sm:$0xff] }
  0x8d   :  { %v11421_v17 = vld [vmem:[%s16379_s20 + $0xa84] ss:$28 sps:$4 sm:$0xff]  }
  0x8e   :  { %2359 = vmatpush1.bf16.msra.mxu0 %v11329_v18  ;;  %v11416_v18 = vld [vmem:[%s16379_s20 + $0xa50] ss:$28 sps:$4 sm:$0xff]  }
  0x8f   :  { %2360 = vmatprep.subr.bf16.mxu0 %v11337_v19  ;;  %2523 = vmatpush1.bf16.msra.mxu1 %v11332_v20  ;;  %v13429_v19 = vpack.c.bf16 %v67_v15, %v67_v15  ;;  %v11455_v20 = vld [vmem:[%s16379_s20 + $0x1d8] ss:$28 sps:$4 sm:$0xff]   ;;  %v11459_v15 = vld [vmem:[%s16379_s20 + $0x244] ss:$28 sps:$4 sm:$0xff]  }
  0x90   :  { %2524 = vmatprep.subr.bf16.mxu1 %v11340_v21  ;;  %v11419_v21 = vld [vmem:[%s16379_s20 + $0xa80] ss:$28 sps:$4 sm:$0xff]  }
  0x92   :  { %2361 = vmatpush1.bf16.msra.mxu0 %v11335_v22  ;;  %v11424_v22 = vld [vmem:[%s16379_s20 + $0xa8c] ss:$28 sps:$4 sm:$0xff]  }
  0x93   :  { %2362 = vmatprep.subr.bf16.mxu0 %v11343_v23  ;;  %2525 = vmatpush1.bf16.msra.mxu1 %v11338_v24  ;;  %v11456_v23 = vld [vmem:[%s16379_s20 + $0x18] ss:$28 sps:$4 sm:$0xff]   ;;  %v11460_v24 = vld [vmem:[%s16379_s20 + $0x210] ss:$28 sps:$4 sm:$0xff]  }
  0x94   :  { %2526 = vmatprep.subr.bf16.mxu1 %v11346_v25  ;;  %v12709_v25 = vmov 0  }
  0x96   :  { %2363 = vmatpush1.bf16.msra.mxu0 %v11341_v26  ;;  %v11461_v26 = vld [vmem:[%s16379_s20 + $0x50] ss:$28 sps:$4 sm:$0xff]  }
  0x97   :  { %2364 = vmatprep.subr.bf16.mxu0 %v11349_v27  ;;  %2527 = vmatpush1.bf16.msra.mxu1 %v11344_v28  ;;  %v11465_v27 = vld [vmem:[%s16379_s20 + $0x248] ss:$28 sps:$4 sm:$0xff]   ;;  %v69_v28 = vld [vmem:[%s16380_s26 + $0x30] sm:$0xff] }
  0x98   :  { %2528 = vmatprep.subr.bf16.mxu1 %v11352_v29  ;;  %v11466_v29 = vld [vmem:[%s16379_s20 + $0x88] ss:$28 sps:$4 sm:$0xff]  }
  0x9a   :  { %2365 = vmatpush1.bf16.msra.mxu0 %v11347_v30  ;;  %v13462_v30 = vpack.c.bf16 %v69_v28, %v69_v28  ;;  %v11540_v28 = vld [vmem:[%s16379_s20 + $0x910] ss:$28 sps:$4 sm:$0xff]  }
  0x9b   :  { %2366 = vmatprep.subr.bf16.mxu0 %v11355_v31  ;;  %2529 = vmatpush1.bf16.msra.mxu1 %v11350_v33  ;;  %v11470_v31 = vld [vmem:[%s16379_s20 + $0x280] ss:$28 sps:$4 sm:$0xff]   ;;  %v11422_v33 = vld [vmem:[%s16379_s20 + $0xa88] ss:$28 sps:$4 sm:$0xff]  }
  0x9c   :  { %2530 = vmatprep.subr.bf16.mxu1 %v11358_v34  ;;  %v11427_v34 = vld [vmem:[%s16379_s20 + $0x14] ss:$28 sps:$4 sm:$0xff]  }
  0x9e   :  { %2367 = vmatpush1.bf16.msra.mxu0 %v11353_v35  ;;  %v11471_v35 = vld [vmem:[%s16379_s20 + $0xc0] ss:$28 sps:$4 sm:$0xff]  }
  0x9f   :  { %2368 = vmatprep.subr.bf16.mxu0 %v11361_v36  ;;  %2531 = vmatpush1.bf16.msra.mxu1 %v11356_v37  ;;  %v11475_v36 = vld [vmem:[%s16379_s20 + $0x2b8] ss:$28 sps:$4 sm:$0xff]  }
  0xa0   :  { %2532 = vmatprep.subr.bf16.mxu1 %v11364_v38  ;;  %v11476_v37 = vld [vmem:[%s16379_s20 + $0xf8] ss:$28 sps:$4 sm:$0xff]   ;;  %v11480_v38 = vld [vmem:[%s16379_s20 + $0x2f0] ss:$28 sps:$4 sm:$0xff]  }
  0xa2   :  { %2369 = vmatpush1.bf16.msra.mxu0 %v11359_v39  ;;  %v11425_v39 = vld [vmem:[%s16379_s20 + $0x10] ss:$28 sps:$4 sm:$0xff]  }
  0xa3   :  { %2370 = vmatprep.subr.bf16.mxu0 %v11367_v40  ;;  %2533 = vmatpush1.bf16.msra.mxu1 %v11362_v41  ;;  %v11430_v40 = vld [vmem:[%s16379_s20 + $0x4c] ss:$28 sps:$4 sm:$0xff]  }
  0xa4   :  { %2534 = vmatprep.subr.bf16.mxu1 %v11370_v42  ;;  %v11481_v41 = vld [vmem:[%s16379_s20 + $0x130] ss:$28 sps:$4 sm:$0xff]   ;;  %v11485_v42 = vld [vmem:[%s16379_s20 + $0x328] ss:$28 sps:$4 sm:$0xff]  }
  0xa6   :  { %2371 = vmatpush1.bf16.msra.mxu0 %v11365_v43  ;;  %v11428_v43 = vld [vmem:[%s16379_s20 + $0x48] ss:$28 sps:$4 sm:$0xff]  }
  0xa7   :  { %2372 = vmatprep.subr.bf16.mxu0 %v11373_v44  ;;  %2535 = vmatpush1.bf16.msra.mxu1 %v11368_v45  ;;  %v11433_v44 = vld [vmem:[%s16379_s20 + $0x84] ss:$28 sps:$4 sm:$0xff]  }
  0xa8   :  { %2536 = vmatprep.subr.bf16.mxu1 %v11376_v46  ;;  %v11486_v45 = vld [vmem:[%s16379_s20 + $0x168] ss:$28 sps:$4 sm:$0xff]   ;;  %v11490_v46 = vld [vmem:[%s16379_s20 + $0x360] ss:$28 sps:$4 sm:$0xff]  }
  0xaa   :  { %2373 = vmatpush1.bf16.msra.mxu0 %v11371_v47  ;;  %v11431_v47 = vld [vmem:[%s16379_s20 + $0x80] ss:$28 sps:$4 sm:$0xff]  }
  0xab   :  { %2374 = vmatprep.subr.bf16.mxu0 %v11379_v49  ;;  %2537 = vmatpush1.bf16.msra.mxu1 %v11374_v50  ;;  %v11436_v49 = vld [vmem:[%s16379_s20 + $0xbc] ss:$28 sps:$4 sm:$0xff]  }
  0xac   :  { %2538 = vmatprep.subr.bf16.mxu1 %v11382_v51  ;;  %v11491_v50 = vld [vmem:[%s16379_s20 + $0x1a0] ss:$28 sps:$4 sm:$0xff]   ;;  %v11495_v51 = vld [vmem:[%s16379_s20 + $0x558] ss:$28 sps:$4 sm:$0xff]  }
  0xae   :  { %2375 = vmatpush1.bf16.msra.mxu0 %v11377_v52  ;;  %v11434_v52 = vld [vmem:[%s16379_s20 + $0xb8] ss:$28 sps:$4 sm:$0xff]  }
  0xaf   :  { %2376 = vmatprep.subr.bf16.mxu0 %v11385_v53  ;;  %2539 = vmatpush1.bf16.msra.mxu1 %v11380_v54  ;;  %v11439_v53 = vld [vmem:[%s16379_s20 + $0xf4] ss:$28 sps:$4 sm:$0xff]  }
  0xb0   :  { %2540 = vmatprep.subr.bf16.mxu1 %v11388_v55  ;;  %v11496_v54 = vld [vmem:[%s16379_s20 + $0x398] ss:$28 sps:$4 sm:$0xff]   ;;  %v11500_v55 = vld [vmem:[%s16379_s20 + $0x590] ss:$28 sps:$4 sm:$0xff]  }
  0xb2   :  { %2377 = vmatpush1.bf16.msra.mxu0 %v11383_v56  ;;  %v11437_v56 = vld [vmem:[%s16379_s20 + $0xf0] ss:$28 sps:$4 sm:$0xff]  }
  0xb3   :  { %2378 = vmatprep.subr.bf16.mxu0 %v11391_v57  ;;  %2541 = vmatpush1.bf16.msra.mxu1 %v11386_v58  ;;  %v11442_v57 = vld [vmem:[%s16379_s20 + $0x12c] ss:$28 sps:$4 sm:$0xff]  }
  0xb4   :  { %2542 = vmatprep.subr.bf16.mxu1 %v11394_v59  ;;  %v11440_v58 = vld [vmem:[%s16379_s20 + $0x128] ss:$28 sps:$4 sm:$0xff]   ;;  %v11501_v59 = vld [vmem:[%s16379_s20 + $0x3d0] ss:$28 sps:$4 sm:$0xff]  }
  0xb6   :  { %2379 = vmatpush1.bf16.msra.mxu0 %v11389_v60  ;;  %v11505_v60 = vld [vmem:[%s16379_s20 + $0x5c8] ss:$28 sps:$4 sm:$0xff]  }
  0xb7   :  { %2380 = vmatprep.subr.bf16.mxu0 %v11397_v61  ;;  %2543 = vmatpush1.bf16.msra.mxu1 %v11392_v62  ;;  %v11445_v61 = vld [vmem:[%s16379_s20 + $0x164] ss:$28 sps:$4 sm:$0xff]  }
  0xb8   :  { %2544 = vmatprep.subr.bf16.mxu1 %v11400_v63  ;;  %v11506_v62 = vld [vmem:[%s16379_s20 + $0x408] ss:$28 sps:$4 sm:$0xff]   ;;  %v11510_v63 = vld [vmem:[%s16379_s20 + $0x600] ss:$28 sps:$4 sm:$0xff]  }
  0xba   :  { %2381 = vmatpush1.bf16.msra.mxu0 %v11395_v0  ;;  %v11443_v0 = vld [vmem:[%s16379_s20 + $0x160] ss:$28 sps:$4 sm:$0xff]  }
  0xbb   :  { %2382 = vmatprep.subr.bf16.mxu0 %v11403_v1  ;;  %2545 = vmatpush1.bf16.msra.mxu1 %v11398_v2  ;;  %v11448_v1 = vld [vmem:[%s16379_s20 + $0x19c] ss:$28 sps:$4 sm:$0xff]  }
  0xbc   :  { %2546 = vmatprep.subr.bf16.mxu1 %v11406_v3  ;;  %v11511_v2 = vld [vmem:[%s16379_s20 + $0x440] ss:$28 sps:$4 sm:$0xff]   ;;  %v11515_v3 = vld [vmem:[%s16379_s20 + $0x638] ss:$28 sps:$4 sm:$0xff]  }
  0xbe   :  { %2383 = vmatpush1.bf16.msra.mxu0 %v11401_v5  ;;  %v11446_v5 = vld [vmem:[%s16379_s20 + $0x198] ss:$28 sps:$4 sm:$0xff]  }
  0xbf   :  { %2384 = vmatprep.subr.bf16.mxu0 %v11409_v6  ;;  %2547 = vmatpush1.bf16.msra.mxu1 %v11404_v7  ;;  %v11451_v6 = vld [vmem:[%s16379_s20 + $0x1d4] ss:$28 sps:$4 sm:$0xff]  }
  0xc0   :  { %2548 = vmatprep.subr.bf16.mxu1 %v11412_v9  ;;  %v11516_v7 = vld [vmem:[%s16379_s20 + $0x478] ss:$28 sps:$4 sm:$0xff]   ;;  %v11449_v9 = vld [vmem:[%s16379_s20 + $0x1d0] ss:$28 sps:$4 sm:$0xff]  }
  0xc2   :  { %2385 = vmatpush1.bf16.msra.mxu0 %v11407_v8  ;;  %v11520_v8 = vld [vmem:[%s16379_s20 + $0x670] ss:$28 sps:$4 sm:$0xff]  }
  0xc3   :  { %2386 = vmatprep.subr.bf16.mxu0 %v11415_v12  ;;  %2549 = vmatpush1.bf16.msra.mxu1 %v11410_v11  ;;  %v11454_v11 = vld [vmem:[%s16379_s20 + $0x20c] ss:$28 sps:$4 sm:$0xff]  }
  0xc4   :  { %2550 = vmatprep.subr.bf16.mxu1 %v11418_v14  ;;  %v11521_v12 = vld [vmem:[%s16379_s20 + $0x4b0] ss:$28 sps:$4 sm:$0xff]   ;;  %v11452_v14 = vld [vmem:[%s16379_s20 + $0x208] ss:$28 sps:$4 sm:$0xff]  }
  0xc6   :  { %2387 = vmatpush1.bf16.msra.mxu0 %v11413_v13  ;;  %v11525_v13 = vld [vmem:[%s16379_s20 + $0x6a8] ss:$28 sps:$4 sm:$0xff]  }
  0xc7   :  { %2397 = vmatprep.subr.bf16.mxu0 %v11421_v17  ;;  %2551 = vmatpush1.bf16.msra.mxu1 %v11416_v18  ;;  %v11526_v17 = vld [vmem:[%s16379_s20 + $0x4e8] ss:$28 sps:$4 sm:$0xff]   ;;  %v11530_v18 = vld [vmem:[%s16379_s20 + $0x6e0] ss:$28 sps:$4 sm:$0xff]  }
  0xc8   :  { %10667 = vmatprep.subr.bf16.mxu1 %v11455_v20  ;;  %v11457_v20 = vld [vmem:[%s16379_s20 + $0x240] ss:$28 sps:$4 sm:$0xff]  }
  0xc9   :  { %2389 = vmatmul.mubr.bf16.vlgmr.msra.gmra.mrb[0].mxu0 %v13429_v19 }
  0xca   :  { %2398 = vmatpush1.bf16.msra.mxu0 %v11419_v21  ;;  %2429 = vmatprep.mubr.bf16.mxu0 %v12709_v25  ;;  %v11464_v21 = vld [vmem:[%s16379_s20 + $0x27c] ss:$28 sps:$4 sm:$0xff]  }
  0xcb   :  { %2553 = vmatmul.mubr.bf16.vlgmr.msra.gmra.mrb[0].mxu1 %v13429_v19  ;;  %2561 = vmatprep.subr.bf16.mxu0 %v11424_v22  ;;  %v11531_v22 = vld [vmem:[%s16379_s20 + $0x520] ss:$28 sps:$4 sm:$0xff]  }
  0xcc   :  { %10668 = vmatpush3.bf16.msra.mxu1 %v11456_v23  ;;  %2798 = vmatprep.mubr.bf16.mxu1 %v12956_v48  ;;  %v11535_v23 = vld [vmem:[%s16379_s20 + $0x8d8] ss:$28 sps:$4 sm:$0xff]  }
  0xcd   :  { %10669 = vmatprep.subr.bf16.mxu1 %v11460_v24  ;;  %v11462_v24 = vld [vmem:[%s16379_s20 + $0x278] ss:$28 sps:$4 sm:$0xff]  }
  0xd0   :  { %10670 = vmatpush3.bf16.msra.mxu1 %v11461_v26  ;;  %v11469_v26 = vld [vmem:[%s16379_s20 + $0x2b4] ss:$28 sps:$4 sm:$0xff]  }
  0xd1   :  { %10671 = vmatprep.subr.bf16.mxu1 %v11465_v27  ;;  %v11536_v27 = vld [vmem:[%s16379_s20 + $0x718] ss:$28 sps:$4 sm:$0xff]  }
  0xd4   :  { %10672 = vmatpush3.bf16.msra.mxu1 %v11466_v29  ;;  %v11467_v29 = vld [vmem:[%s16379_s20 + $0x2b0] ss:$28 sps:$4 sm:$0xff]  }
  0xd5   :  { %9903 = vmatmul.mubr.msk.bf16.vlgmr.msra.gmra.mrb[0].mxu0 %vm2270_vm0, %v13462_v30  ;;  %10673 = vmatprep.subr.bf16.mxu1 %v11470_v31  ;;  %v11474_v31 = vld [vmem:[%s16379_s20 + $0x2ec] ss:$28 sps:$4 sm:$0xff]  }
  0xd6   :  { %2562 = vmatpush1.bf16.msra.mxu0 %v11422_v33  ;;  %2593 = vmatprep.mubr.bf16.mxu0 %v12709_v25  ;;  %v11541_v33 = vld [vmem:[%s16379_s20 + $0x750] ss:$28 sps:$4 sm:$0xff]  }
  0xd7   :  { %2602 = vmatprep.subr.bf16.mxu0 %v11427_v34  ;;  %v11545_v34 = vld [vmem:[%s16379_s20 + $0x948] ss:$28 sps:$4 sm:$0xff]  }
  0xd8   :  { %10674 = vmatpush3.bf16.msra.mxu1 %v11471_v35  ;;  %v11472_v35 = vld [vmem:[%s16379_s20 + $0x2e8] ss:$28 sps:$4 sm:$0xff]  }
  0xd9   :  { %10675 = vmatprep.subr.bf16.mxu1 %v11475_v36  ;;  %v11479_v36 = vld [vmem:[%s16379_s20 + $0x324] ss:$28 sps:$4 sm:$0xff]  }
  0xdc   :  { %10676 = vmatpush3.bf16.msra.mxu1 %v11476_v37  ;;  %v11546_v37 = vld [vmem:[%s16379_s20 + $0x788] ss:$28 sps:$4 sm:$0xff]  }
  0xdd   :  { %9904 = vmatmul.mubr.msk.bf16.vlgmr.msra.gmra.mrb[4].mxu0 %vm2270_vm0, %v13462_v30  ;;  %10677 = vmatprep.subr.bf16.mxu1 %v11480_v38  ;;  %v11550_v38 = vld [vmem:[%s16379_s20 + $0x980] ss:$28 sps:$4 sm:$0xff]  }
  0xde   :  { %2603 = vmatpush1.bf16.msra.mxu0 %v11425_v39  ;;  %2634 = vmatprep.mubr.bf16.mxu0 %v12956_v48  ;;  %v11477_v39 = vld [vmem:[%s16379_s20 + $0x320] ss:$28 sps:$4 sm:$0xff]  }
  0xdf   :  { %2604 = vmatprep.subr.bf16.mxu0 %v11430_v40  ;;  %v11484_v40 = vld [vmem:[%s16379_s20 + $0x35c] ss:$28 sps:$4 sm:$0xff]  }
  0xe0   :  { %10678 = vmatpush3.bf16.msra.mxu1 %v11481_v41  ;;  %v11551_v41 = vld [vmem:[%s16379_s20 + $0x7c0] ss:$28 sps:$4 sm:$0xff]  }
  0xe1   :  { %10679 = vmatprep.subr.bf16.mxu1 %v11485_v42  ;;  %v11555_v42 = vld [vmem:[%s16379_s20 + $0x9b8] ss:$28 sps:$4 sm:$0xff]  }
  0xe2   :  { %2605 = vmatpush1.bf16.msra.mxu0 %v11428_v43  ;;  %v11482_v43 = vld [vmem:[%s16379_s20 + $0x358] ss:$28 sps:$4 sm:$0xff]  }
  0xe3   :  { %2606 = vmatprep.subr.bf16.mxu0 %v11433_v44  ;;  %v11489_v44 = vld [vmem:[%s16379_s20 + $0x394] ss:$28 sps:$4 sm:$0xff]  }
  0xe4   :  { %10680 = vmatpush3.bf16.msra.mxu1 %v11486_v45  ;;  %v11556_v45 = vld [vmem:[%s16379_s20 + $0x7f8] ss:$28 sps:$4 sm:$0xff]  }
  0xe5   :  { %10681 = vmatprep.subr.bf16.mxu1 %v11490_v46  ;;  %v11560_v46 = vld [vmem:[%s16379_s20 + $0x9f0] ss:$28 sps:$4 sm:$0xff]  }
  0xe6   :  { %2607 = vmatpush1.bf16.msra.mxu0 %v11431_v47  ;;  %v11487_v47 = vld [vmem:[%s16379_s20 + $0x390] ss:$28 sps:$4 sm:$0xff]  }
  0xe7   :  { %2608 = vmatprep.subr.bf16.mxu0 %v11436_v49  ;;  %v11494_v49 = vld [vmem:[%s16379_s20 + $0x3cc] ss:$28 sps:$4 sm:$0xff]  }
  0xe8   :  { %10682 = vmatpush3.bf16.msra.mxu1 %v11491_v50  ;;  %v11561_v50 = vld [vmem:[%s16379_s20 + $0x830] ss:$28 sps:$4 sm:$0xff]  }
  0xe9   :  { %10689 = vmatprep.subr.bf16.mxu1 %v11495_v51  ;;  %v11565_v51 = vld [vmem:[%s16379_s20 + $0xa28] ss:$28 sps:$4 sm:$0xff]  }
  0xea   :  { %2609 = vmatpush1.bf16.msra.mxu0 %v11434_v52  ;;  %v11492_v52 = vld [vmem:[%s16379_s20 + $0x3c8] ss:$28 sps:$4 sm:$0xff]  }
  0xeb   :  { %2610 = vmatprep.subr.bf16.mxu0 %v11439_v53  ;;  %2799 = vmatmul.mubr.bf16.vlgmr.msra.gmra.mrb[4].mxu1 %v13017_v4  ;;  %v11499_v53 = vld [vmem:[%s16379_s20 + $0x404] ss:$28 sps:$4 sm:$0xff]  }
  0xec   :  { %10690 = vmatpush3.bf16.msra.mxu1 %v11496_v54  ;;  %2838 = vmatprep.mubr.bf16.mxu1 %v13102_v32  ;;  %v11566_v54 = vld [vmem:[%s16379_s20 + $0x868] ss:$28 sps:$4 sm:$0xff]  }
  0xed   :  { %10691 = vmatprep.subr.bf16.mxu1 %v11500_v55  ;;  %v11497_v55 = vld [vmem:[%s16379_s20 + $0x400] ss:$28 sps:$4 sm:$0xff]  }
  0xee   :  { %2611 = vmatpush1.bf16.msra.mxu0 %v11437_v56  ;;  %v11570_v56 = vld [vmem:[%s16379_s20 + $0xa60] ss:$28 sps:$4 sm:$0xff]  }
  0xef   :  { %2612 = vmatprep.subr.bf16.mxu0 %v11442_v57  ;;  %v11504_v57 = vld [vmem:[%s16379_s20 + $0x43c] ss:$28 sps:$4 sm:$0xff]  }
  0xf0   :  { %10692 = vmatpush3.bf16.msra.mxu1 %v11501_v59  ;;  %v11502_v59 = vld [vmem:[%s16379_s20 + $0x438] ss:$28 sps:$4 sm:$0xff]  }
  0xf1   :  { %10693 = vmatprep.subr.bf16.mxu1 %v11505_v60  ;;  %v11509_v60 = vld [vmem:[%s16379_s20 + $0x474] ss:$28 sps:$4 sm:$0xff]  }
  0xf2   :  { %2613 = vmatpush1.bf16.msra.mxu0 %v11440_v58  ;;  %v11571_v58 = vld [vmem:[%s16379_s20 + $0x8a0] ss:$28 sps:$4 sm:$0xff]  }
  0xf3   :  { %2614 = vmatprep.subr.bf16.mxu0 %v11445_v61  ;;  %v11578_v61 = vld [vmem:[%s16379_s20 + $0xa98] ss:$28 sps:$4 sm:$0xff]  }
  0xf4   :  { %10694 = vmatpush3.bf16.msra.mxu1 %v11506_v62  ;;  %v11599_v62 = vld [vmem:[%s16381_s28 + $0x4] ss:$12 sps:$4 sm:$0xff]  }
  0xf5   :  { %10695 = vmatprep.subr.bf16.mxu1 %v11510_v63  ;;  %v11507_v63 = vld [vmem:[%s16379_s20 + $0x470] ss:$28 sps:$4 sm:$0xff]  }
  0xf6   :  { %2615 = vmatpush1.bf16.msra.mxu0 %v11443_v0  ;;  %v12710_v0 = vmov 0.0  }
  0xf7   :  { %2616 = vmatprep.subr.bf16.mxu0 %v11448_v1  ;;  %v11514_v1 = vld [vmem:[%s16379_s20 + $0x4ac] ss:$28 sps:$4 sm:$0xff]  }
  0xf8   :  { %10696 = vmatpush3.bf16.msra.mxu1 %v11511_v2  ;;  %v11512_v2 = vld [vmem:[%s16379_s20 + $0x4a8] ss:$28 sps:$4 sm:$0xff]  }
  0xf9   :  { %10697 = vmatprep.subr.bf16.mxu1 %v11515_v3  ;;  %v11519_v3 = vld [vmem:[%s16379_s20 + $0x4e4] ss:$28 sps:$4 sm:$0xff]  }
  0xfa   :  { %2617 = vmatpush1.bf16.msra.mxu0 %v11446_v5  ;;  %v11517_v5 = vld [vmem:[%s16379_s20 + $0x4e0] ss:$28 sps:$4 sm:$0xff]  }
  0xfb   :  { %2618 = vmatprep.subr.bf16.mxu0 %v11451_v6  ;;  %v11597_v6 = vld [vmem:[%s16381_s28] ss:$12 sps:$4 sm:$0xff]  }
  0xfc   :  { %10698 = vmatpush3.bf16.msra.mxu1 %v11516_v7  ;;  %v11605_v7 = vld [vmem:[%s16381_s28 + $0x1c] ss:$12 sps:$4 sm:$0xff]  }
  0xfd   :  { %10699 = vmatprep.subr.bf16.mxu1 %v11520_v8  ;;  %v11524_v8 = vld [vmem:[%s16379_s20 + $0x51c] ss:$28 sps:$4 sm:$0xff]  }
  0xfe   :  { %2619 = vmatpush1.bf16.msra.mxu0 %v11449_v9  ;;  %v11522_v9 = vld [vmem:[%s16379_s20 + $0x518] ss:$28 sps:$4 sm:$0xff]  }
  0xff   :  { %2620 = vmatprep.subr.bf16.mxu0 %v11454_v11  ;;  %v11603_v11 = vld [vmem:[%s16381_s28 + $0x18] ss:$12 sps:$4 sm:$0xff]  }
 0x100   :  { %10700 = vmatpush3.bf16.msra.mxu1 %v11521_v12  ;;  %v11611_v12 = vld [vmem:[%s16381_s28 + $0x34] ss:$12 sps:$4 sm:$0xff]  }
 0x101   :  { %10701 = vmatprep.subr.bf16.mxu1 %v11525_v13  ;;  %v11529_v13 = vld [vmem:[%s16379_s20 + $0x554] ss:$28 sps:$4 sm:$0xff]  }
 0x102   :  { %2621 = vmatpush1.bf16.msra.mxu0 %v11452_v14  ;;  %v11527_v14 = vld [vmem:[%s16379_s20 + $0x550] ss:$28 sps:$4 sm:$0xff]  }
 0x103   :  { %2622 = vmatprep.subr.bf16.mxu0 %v11459_v15  ;;  %v11609_v15 = vld [vmem:[%s16381_s28 + $0x30] ss:$12 sps:$4 sm:$0xff]  }
 0x104   :  { %10702 = vmatpush3.bf16.msra.mxu1 %v11526_v17  ;;  %v11617_v17 = vld [vmem:[%s16381_s28 + $0x4c] ss:$12 sps:$4 sm:$0xff]  }
 0x105   :  { %10703 = vmatprep.subr.bf16.mxu1 %v11530_v18  ;;  %v11534_v18 = vld [vmem:[%s16379_s20 + $0x58c] ss:$28 sps:$4 sm:$0xff]  }
 0x106   :  { %2623 = vmatpush1.bf16.msra.mxu0 %v11457_v20  ;;  %v11532_v20 = vld [vmem:[%s16379_s20 + $0x588] ss:$28 sps:$4 sm:$0xff]  }
 0x107   :  { %2624 = vmatprep.subr.bf16.mxu0 %v11464_v21  ;;  %v11615_v21 = vld [vmem:[%s16381_s28 + $0x48] ss:$12 sps:$4 sm:$0xff]  }
 0x108   :  { %10704 = vmatpush3.bf16.msra.mxu1 %v11531_v22  ;;  %v11623_v22 = vld [vmem:[%s16381_s28 + $0x64] ss:$12 sps:$4 sm:$0xff]  }
 0x109   :  { %10711 = vmatprep.subr.bf16.mxu1 %v11535_v23  ;;  %v11539_v23 = vld [vmem:[%s16379_s20 + $0x5c4] ss:$28 sps:$4 sm:$0xff]  }
 0x10a   :  { %2625 = vmatpush1.bf16.msra.mxu0 %v11462_v24  ;;  %v11537_v24 = vld [vmem:[%s16379_s20 + $0x5c0] ss:$28 sps:$4 sm:$0xff]  }
 0x10b   :  { %2626 = vmatprep.subr.bf16.mxu0 %v11469_v26  ;;  %2839 = vmatmul.mubr.bf16.vlgmr.msra.gmra.mrb[8].mxu1 %v13223_v10  ;;  %v11621_v26 = vld [vmem:[%s16381_s28 + $0x60] ss:$12 sps:$4 sm:$0xff]  }
 0x10c   :  { %10712 = vmatpush3.bf16.msra.mxu1 %v11536_v27  ;;  %2878 = vmatprep.mubr.bf16.mxu1 %v13240_v16  ;;  %v11629_v27 = vld [vmem:[%s16381_s28 + $0x7c] ss:$12 sps:$4 sm:$0xff]  }
 0x10d   :  { %10713 = vmatprep.subr.bf16.mxu1 %v11540_v28  ;;  %v11544_v28 = vld [vmem:[%s16379_s20 + $0x5fc] ss:$28 sps:$4 sm:$0xff]  }
 0x10e   :  { %2627 = vmatpush1.bf16.msra.mxu0 %v11467_v29  ;;  %v11627_v29 = vld [vmem:[%s16381_s28 + $0x78] ss:$12 sps:$4 sm:$0xff]  }
 0x10f   :  { %2628 = vmatprep.subr.bf16.mxu0 %v11474_v31  ;;  %v11635_v31 = vld [vmem:[%s16381_s28 + $0x94] ss:$12 sps:$4 sm:$0xff]  }
 0x110   :  { %10714 = vmatpush3.bf16.msra.mxu1 %v11541_v33  ;;  %v11542_v33 = vld [vmem:[%s16379_s20 + $0x5f8] ss:$28 sps:$4 sm:$0xff]  }
 0x111   :  { %10715 = vmatprep.subr.bf16.mxu1 %v11545_v34  ;;  %v11549_v34 = vld [vmem:[%s16379_s20 + $0x634] ss:$28 sps:$4 sm:$0xff]  }
 0x112   :  { %2629 = vmatpush1.bf16.msra.mxu0 %v11472_v35  ;;  %v11633_v35 = vld [vmem:[%s16381_s28 + $0x90] ss:$12 sps:$4 sm:$0xff]  }
 0x113   :  { %2630 = vmatprep.subr.bf16.mxu0 %v11479_v36  ;;  %v11641_v36 = vld [vmem:[%s16381_s28 + $0xac] ss:$12 sps:$4 sm:$0xff]  }
 0x114   :  { %10716 = vmatpush3.bf16.msra.mxu1 %v11546_v37  ;;  %v11547_v37 = vld [vmem:[%s16379_s20 + $0x630] ss:$28 sps:$4 sm:$0xff]  }
 0x115   :  { %10717 = vmatprep.subr.bf16.mxu1 %v11550_v38  ;;  %v11554_v38 = vld [vmem:[%s16379_s20 + $0x66c] ss:$28 sps:$4 sm:$0xff]  }
 0x116   :  { %2631 = vmatpush1.bf16.msra.mxu0 %v11477_v39  ;;  %v11639_v39 = vld [vmem:[%s16381_s28 + $0xa8] ss:$12 sps:$4 sm:$0xff]  }
 0x117   :  { %2632 = vmatprep.subr.bf16.mxu0 %v11484_v40  ;;  %v11647_v40 = vld [vmem:[%s16381_s28 + $0xc4] ss:$12 sps:$4 sm:$0xff]  }
 0x118   :  { %10718 = vmatpush3.bf16.msra.mxu1 %v11551_v41  ;;  %v11552_v41 = vld [vmem:[%s16379_s20 + $0x668] ss:$28 sps:$4 sm:$0xff]  }
 0x119   :  { %10719 = vmatprep.subr.bf16.mxu1 %v11555_v42  ;;  %v11559_v42 = vld [vmem:[%s16379_s20 + $0x6a4] ss:$28 sps:$4 sm:$0xff]  }
 0x11a   :  { %2633 = vmatpush1.bf16.msra.mxu0 %v11482_v43  ;;  %v11645_v43 = vld [vmem:[%s16381_s28 + $0xc0] ss:$12 sps:$4 sm:$0xff]  }
 0x11b   :  { %2643 = vmatprep.subr.bf16.mxu0 %v11489_v44  ;;  %v11650_v44 = vld [vmem:[%s16381_s28 + $0xdc] ss:$12 sps:$4 sm:$0xff]  }
 0x11c   :  { %10720 = vmatpush3.bf16.msra.mxu1 %v11556_v45  ;;  %v11557_v45 = vld [vmem:[%s16379_s20 + $0x6a0] ss:$28 sps:$4 sm:$0xff]  }
 0x11d   :  { %2635 = vmatmul.mubr.bf16.vlgmr.msra.gmra.mrb[8].mxu0 %v13017_v4  ;;  %10721 = vmatprep.subr.bf16.mxu1 %v11560_v46  ;;  %v11564_v46 = vld [vmem:[%s16379_s20 + $0x6dc] ss:$28 sps:$4 sm:$0xff]  }
 0x11e   :  { %2644 = vmatpush1.bf16.msra.mxu0 %v11487_v47  ;;  %2675 = vmatprep.mubr.bf16.mxu0 %v13102_v32  ;;  %v11648_v47 = vld [vmem:[%s16381_s28 + $0xd8] ss:$12 sps:$4 sm:$0xff]  }
 0x11f   :  { %2645 = vmatprep.subr.bf16.mxu0 %v11494_v49  ;;  %v11653_v49 = vld [vmem:[%s16381_s28 + $0xf4] ss:$12 sps:$4 sm:$0xff]  }
 0x120   :  { %10722 = vmatpush3.bf16.msra.mxu1 %v11561_v50  ;;  %v11562_v50 = vld [vmem:[%s16379_s20 + $0x6d8] ss:$28 sps:$4 sm:$0xff]  }
 0x121   :  { %10723 = vmatprep.subr.bf16.mxu1 %v11565_v51  ;;  %v11569_v51 = vld [vmem:[%s16379_s20 + $0x714] ss:$28 sps:$4 sm:$0xff]  }
 0x122   :  { %2646 = vmatpush1.bf16.msra.mxu0 %v11492_v52  ;;  %v11651_v52 = vld [vmem:[%s16381_s28 + $0xf0] ss:$12 sps:$4 sm:$0xff]  }
 0x123   :  { %2647 = vmatprep.subr.bf16.mxu0 %v11499_v53  ;;  %v11658_v53 = vld [vmem:[%s16381_s28 + $0x10c] ss:$12 sps:$4 sm:$0xff]  }
 0x124   :  { %10724 = vmatpush3.bf16.msra.mxu1 %v11566_v54  ;;  %v11567_v54 = vld [vmem:[%s16379_s20 + $0x710] ss:$28 sps:$4 sm:$0xff]  }
 0x125   :  { %10725 = vmatprep.subr.bf16.mxu1 %v11570_v56  ;;  %v11656_v56 = vld [vmem:[%s16381_s28 + $0x108] ss:$12 sps:$4 sm:$0xff]  }
 0x126   :  { %2648 = vmatpush1.bf16.msra.mxu0 %v11497_v55  ;;  %v11574_v55 = vld [vmem:[%s16379_s20 + $0x74c] ss:$28 sps:$4 sm:$0xff]  }
 0x127   :  { %2649 = vmatprep.subr.bf16.mxu0 %v11504_v57  ;;  %v11663_v57 = vld [vmem:[%s16381_s28 + $0x124] ss:$12 sps:$4 sm:$0xff]  }
 0x128   :  { %10726 = vmatpush3.bf16.msra.mxu1 %v11571_v58  ;;  %v11572_v58 = vld [vmem:[%s16379_s20 + $0x748] ss:$28 sps:$4 sm:$0xff]  }
 0x129   :  { %10935 = vmatprep.subr.bf16.mxu1 %v12710_v0 }
 0x12a   :  { %2650 = vmatpush1.bf16.msra.mxu0 %v11502_v59  ;;  %v11577_v59 = vld [vmem:[%s16379_s20 + $0x784] ss:$28 sps:$4 sm:$0xff]  }
 0x12b   :  { %2651 = vmatprep.subr.bf16.mxu0 %v11509_v60  ;;  %2879 = vmatmul.mubr.bf16.vlgmr.msra.gmra.mrb[12].mxu1 %v13429_v19  ;;  %v11661_v60 = vld [vmem:[%s16381_s28 + $0x120] ss:$12 sps:$4 sm:$0xff]  }
 0x12c   :  { %10936 = vmatpush3.bf16.msra.mxu1 %v11578_v61  ;;  %10937 = vmatprep.mubr.msk.bf16.mxu1 %vm12711_vm1, %v12710_v0  ;;  %v11668_v61 = vld [vmem:[%s16381_s28 + $0x13c] ss:$12 sps:$4 sm:$0xff]  }
 0x12d   :  { %3968 = vmatprep.subr.bf16.mxu1 %v11599_v62  ;;  %v11575_v62 = vld [vmem:[%s16379_s20 + $0x780] ss:$28 sps:$4 sm:$0xff]  }
 0x12e   :  { %2652 = vmatpush1.bf16.msra.mxu0 %v11507_v63  ;;  %v11581_v63 = vld [vmem:[%s16379_s20 + $0x7bc] ss:$28 sps:$4 sm:$0xff]  }
 0x12f   :  { %2653 = vmatprep.subr.bf16.mxu0 %v11514_v1  ;;  %v11666_v1 = vld [vmem:[%s16381_s28 + $0x138] ss:$12 sps:$4 sm:$0xff]  }
 0x132   :  { %2654 = vmatpush1.bf16.msra.mxu0 %v11512_v2  ;;  %v11673_v2 = vld [vmem:[%s16381_s28 + $0x154] ss:$12 sps:$4 sm:$0xff]  }
 0x133   :  { %2655 = vmatprep.subr.bf16.mxu0 %v11519_v3  ;;  %10938 = vmatmul.mubr.msk.bf16.vlgmr.msra.gmra.mrb[16].mxu1 %vm2270_vm0, %v13462_v30  ;;  %v11579_v3 = vld [vmem:[%s16379_s20 + $0x7b8] ss:$28 sps:$4 sm:$0xff]  }
 0x134   :  { %3969 = vmatpush1.bf16.msra.mxu1 %v11597_v6  ;;  %v11671_v6 = vld [vmem:[%s16381_s28 + $0x150] ss:$12 sps:$4 sm:$0xff]  }
 0x135   :  { %3970 = vmatprep.subr.bf16.mxu1 %v11605_v7  ;;  %v11678_v7 = vld [vmem:[%s16381_s28 + $0x16c] ss:$12 sps:$4 sm:$0xff]  }
 0x136   :  { %2656 = vmatpush1.bf16.msra.mxu0 %v11517_v5  ;;  %v11584_v5 = vld [vmem:[%s16379_s20 + $0x7f4] ss:$28 sps:$4 sm:$0xff]  }
 0x137   :  { %2657 = vmatprep.subr.bf16.mxu0 %v11524_v8  ;;  %v11582_v8 = vld [vmem:[%s16379_s20 + $0x7f0] ss:$28 sps:$4 sm:$0xff]  }
 0x138   :  { %3971 = vmatpush1.bf16.msra.mxu1 %v11603_v11  ;;  %v11676_v11 = vld [vmem:[%s16381_s28 + $0x168] ss:$12 sps:$4 sm:$0xff]  }
 0x139   :  { %3972 = vmatprep.subr.bf16.mxu1 %v11611_v12  ;;  %v11683_v12 = vld [vmem:[%s16381_s28 + $0x184] ss:$12 sps:$4 sm:$0xff]  }
 0x13a   :  { %2658 = vmatpush1.bf16.msra.mxu0 %v11522_v9  ;;  %v11587_v9 = vld [vmem:[%s16379_s20 + $0x82c] ss:$28 sps:$4 sm:$0xff]  }
 0x13b   :  { %2659 = vmatprep.subr.bf16.mxu0 %v11529_v13  ;;  %v11585_v13 = vld [vmem:[%s16379_s20 + $0x828] ss:$28 sps:$4 sm:$0xff]  }
 0x13c   :  { %3973 = vmatpush1.bf16.msra.mxu1 %v11609_v15  ;;  %v11588_v15 = vld [vmem:[%s16379_s20 + $0x860] ss:$28 sps:$4 sm:$0xff]  }
 0x13d   :  { %3974 = vmatprep.subr.bf16.mxu1 %v11617_v17  ;;  %v11593_v17 = vld [vmem:[%s16379_s20 + $0x89c] ss:$28 sps:$4 sm:$0xff]  }
 0x13e   :  { %2660 = vmatpush1.bf16.msra.mxu0 %v11527_v14  ;;  %v11590_v14 = vld [vmem:[%s16379_s20 + $0x864] ss:$28 sps:$4 sm:$0xff]  }
 0x13f   :  { %2661 = vmatprep.subr.bf16.mxu0 %v11534_v18  ;;  %v11591_v18 = vld [vmem:[%s16379_s20 + $0x898] ss:$28 sps:$4 sm:$0xff]  }
 0x140   :  { %3975 = vmatpush1.bf16.msra.mxu1 %v11615_v21  ;;  %v11594_v21 = vld [vmem:[%s16379_s20 + $0x8d0] ss:$28 sps:$4 sm:$0xff]  }
 0x141   :  { %3976 = vmatprep.subr.bf16.mxu1 %v11623_v22  ;;  %v11602_v22 = vld [vmem:[%s16379_s20 + $0x90c] ss:$28 sps:$4 sm:$0xff]  }
 0x142   :  { %2662 = vmatpush1.bf16.msra.mxu0 %v11532_v20  ;;  %v11596_v20 = vld [vmem:[%s16379_s20 + $0x8d4] ss:$28 sps:$4 sm:$0xff]  }
 0x143   :  { %2663 = vmatprep.subr.bf16.mxu0 %v11539_v23  ;;  %v11600_v23 = vld [vmem:[%s16379_s20 + $0x908] ss:$28 sps:$4 sm:$0xff]  }
 0x144   :  { %3977 = vmatpush1.bf16.msra.mxu1 %v11621_v26  ;;  %v11606_v26 = vld [vmem:[%s16379_s20 + $0x940] ss:$28 sps:$4 sm:$0xff]  }
 0x145   :  { %3978 = vmatprep.subr.bf16.mxu1 %v11629_v27  ;;  %v11614_v27 = vld [vmem:[%s16379_s20 + $0x97c] ss:$28 sps:$4 sm:$0xff]  }
 0x146   :  { %2664 = vmatpush1.bf16.msra.mxu0 %v11537_v24  ;;  %v11608_v24 = vld [vmem:[%s16379_s20 + $0x944] ss:$28 sps:$4 sm:$0xff]  }
 0x147   :  { %2665 = vmatprep.subr.bf16.mxu0 %v11544_v28  ;;  %v11612_v28 = vld [vmem:[%s16379_s20 + $0x978] ss:$28 sps:$4 sm:$0xff]  }
 0x148   :  { %3979 = vmatpush1.bf16.msra.mxu1 %v11627_v29  ;;  %v11620_v29 = vld [vmem:[%s16379_s20 + $0x9b4] ss:$28 sps:$4 sm:$0xff]  }
 0x149   :  { %3980 = vmatprep.subr.bf16.mxu1 %v11635_v31  ;;  %v11618_v31 = vld [vmem:[%s16379_s20 + $0x9b0] ss:$28 sps:$4 sm:$0xff]  }
 0x14a   :  { %2666 = vmatpush1.bf16.msra.mxu0 %v11542_v33  ;;  %v11626_v33 = vld [vmem:[%s16379_s20 + $0x9ec] ss:$28 sps:$4 sm:$0xff]  }
 0x14b   :  { %2667 = vmatprep.subr.bf16.mxu0 %v11549_v34  ;;  %v11624_v34 = vld [vmem:[%s16379_s20 + $0x9e8] ss:$28 sps:$4 sm:$0xff]  }
 0x14c   :  { %3981 = vmatpush1.bf16.msra.mxu1 %v11633_v35  ;;  %v11632_v35 = vld [vmem:[%s16379_s20 + $0xa24] ss:$28 sps:$4 sm:$0xff]  }
 0x14d   :  { %3982 = vmatprep.subr.bf16.mxu1 %v11641_v36  ;;  %v11630_v36 = vld [vmem:[%s16379_s20 + $0xa20] ss:$28 sps:$4 sm:$0xff]  }
 0x14e   :  { %2668 = vmatpush1.bf16.msra.mxu0 %v11547_v37  ;;  %v11638_v37 = vld [vmem:[%s16379_s20 + $0xa5c] ss:$28 sps:$4 sm:$0xff]  }
 0x14f   :  { %2669 = vmatprep.subr.bf16.mxu0 %v11554_v38  ;;  %v11636_v38 = vld [vmem:[%s16379_s20 + $0xa58] ss:$28 sps:$4 sm:$0xff]  }
 0x150   :  { %3983 = vmatpush1.bf16.msra.mxu1 %v11639_v39  ;;  %v11644_v39 = vld [vmem:[%s16379_s20 + $0xa94] ss:$28 sps:$4 sm:$0xff]  }
 0x151   :  { %3984 = vmatprep.subr.bf16.mxu1 %v11647_v40  ;;  %v11642_v40 = vld [vmem:[%s16379_s20 + $0xa90] ss:$28 sps:$4 sm:$0xff]  }
 0x152   :  { %2670 = vmatpush1.bf16.msra.mxu0 %v11552_v41  ;;  %v471_v41 = vlaneseq }
 0x153   :  { %2671 = vmatprep.subr.bf16.mxu0 %v11559_v42  ;;  %v11654_v42 = vld [vmem:[%s16381_s28 + $0xc8] ss:$12 sps:$4 sm:$0xff]  }
 0x154   :  { %3985 = vmatpush1.bf16.msra.mxu1 %v11645_v43 }
 0x155   :  { %3986 = vmatprep.subr.bf16.mxu1 %v11650_v44  ;;  %v14014_v44 = vshrl.u32 %v471_v41, 7 }
 0x156   :  { %2672 = vmatpush1.bf16.msra.mxu0 %v11557_v45 }
 0x157   :  { %2673 = vmatprep.subr.bf16.mxu0 %v11564_v46 }
 0x158   :  { %3987 = vmatpush1.bf16.msra.mxu1 %v11648_v47 }
 0x159   :  { %3988 = vmatprep.subr.bf16.mxu1 %v11653_v49  ;;  %v14017_v49 = vsub.s32 0, %v14014_v44 }
 0x15a   :  { %2674 = vmatpush1.bf16.msra.mxu0 %v11562_v50  ;;  %v14020_v50 = vsub.s32 1, %v14014_v44 }
 0x15b   :  { %2684 = vmatprep.subr.bf16.mxu0 %v11569_v51  ;;  %v14025_v51 = vld [vmem:[%s16382_s27] sm:$0x7f] }
 0x15c   :  { %3989 = vmatpush1.bf16.msra.mxu1 %v11651_v52  ;;  %v474_v52 = vrot.slane %v14025_v51, %v14017_v49 }
 0x15d   :  { %2676 = vmatmul.mubr.bf16.vlgmr.msra.gmra.mrb[8].mxu0 %v13223_v10  ;;  %3990 = vmatprep.subr.bf16.mxu1 %v11658_v53  ;;  %v11655_v53 = vld [vmem:[%s16381_s28 + $0x8] ss:$12 sps:$4 sm:$0xff]  }
 0x15e   :  { %2685 = vmatpush1.bf16.msra.mxu0 %v11567_v54  ;;  %2716 = vmatprep.mubr.bf16.mxu0 %v13240_v16  ;;  %v478_v54 = vrot.slane %v14025_v51, %v14020_v50 }
 0x15f   :  { %2686 = vmatprep.subr.bf16.mxu0 %v11574_v55  ;;  %v14035_v55 = vsub.s32 2, %v14014_v44 }
 0x160   :  { %3991 = vmatpush1.bf16.msra.mxu1 %v11656_v56  ;;  %v11659_v56 = vld [vmem:[%s16381_s28 + $0xe0] ss:$12 sps:$4 sm:$0xff]  }
 0x161   :  { %3992 = vmatprep.subr.bf16.mxu1 %v11663_v57  ;;  %v14041_v57 = vsub.s32 3, %v14014_v44 }
 0x162   :  { %2687 = vmatpush1.bf16.msra.mxu0 %v11572_v58 }
 0x163   :  { %2688 = vmatprep.subr.bf16.mxu0 %v11577_v59 }
 0x164   :  { %3993 = vmatpush1.bf16.msra.mxu1 %v11661_v60 }
 0x165   :  { %3994 = vmatprep.subr.bf16.mxu1 %v11668_v61 }
 0x166   :  { %2689 = vmatpush1.bf16.msra.mxu0 %v11575_v62 }
 0x167   :  { %2690 = vmatprep.subr.bf16.mxu0 %v11581_v63  ;;  %v11660_v63 = vld [vmem:[%s16381_s28 + $0x20] ss:$12 sps:$4 sm:$0xff]  }
 0x168   :  { %3995 = vmatpush1.bf16.msra.mxu1 %v11666_v1  ;;  %v482_v1 = vrot.slane %v14025_v51, %v14035_v55 }
 0x169   :  { %3996 = vmatprep.subr.bf16.mxu1 %v11673_v2 }
 0x16a   :  { %2691 = vmatpush1.bf16.msra.mxu0 %v11579_v3 }
 0x16b   :  { %2692 = vmatprep.subr.bf16.mxu0 %v11584_v5  ;;  %v11664_v5 = vld [vmem:[%s16381_s28 + $0xf8] ss:$12 sps:$4 sm:$0xff]  }
 0x16c   :  { %3997 = vmatpush1.bf16.msra.mxu1 %v11671_v6  ;;  %v486_v6 = vrot.slane %v14025_v51, %v14041_v57 }
 0x16d   :  { %3998 = vmatprep.subr.bf16.mxu1 %v11678_v7 }
 0x16e   :  { %2693 = vmatpush1.bf16.msra.mxu0 %v11582_v8  ;;  %v11665_v8 = vld [vmem:[%s16381_s28 + $0x38] ss:$12 sps:$4 sm:$0xff]  }
 0x16f   :  { %2694 = vmatprep.subr.bf16.mxu0 %v11587_v9 }
 0x170   :  { %3999 = vmatpush1.bf16.msra.mxu1 %v11676_v11  ;;  %v11669_v11 = vld [vmem:[%s16381_s28 + $0x110] ss:$12 sps:$4 sm:$0xff]  }
 0x171   :  { %4009 = vmatprep.subr.bf16.mxu1 %v11683_v12 }
 0x172   :  { %2695 = vmatpush1.bf16.msra.mxu0 %v11585_v13 }
 0x173   :  { %2696 = vmatprep.subr.bf16.mxu0 %v11590_v14 }
 0x176   :  { %2697 = vmatpush1.bf16.msra.mxu0 %v11588_v15 }
 0x177   :  { %2698 = vmatprep.subr.bf16.mxu0 %v11593_v17 }
 0x17a   :  { %2699 = vmatpush1.bf16.msra.mxu0 %v11591_v18 }
 0x17b   :  { %2700 = vmatprep.subr.bf16.mxu0 %v11596_v20  ;;  %v11670_v20 = vld [vmem:[%s16381_s28 + $0x50] ss:$12 sps:$4 sm:$0xff]  }
 0x17e   :  { %2701 = vmatpush1.bf16.msra.mxu0 %v11594_v21 }
 0x17f   :  { %2702 = vmatprep.subr.bf16.mxu0 %v11602_v22  ;;  %v11674_v22 = vld [vmem:[%s16381_s28 + $0x128] ss:$12 sps:$4 sm:$0xff]  }
 0x182   :  { %2703 = vmatpush1.bf16.msra.mxu0 %v11600_v23 }
 0x183   :  { %2704 = vmatprep.subr.bf16.mxu0 %v11608_v24  ;;  %v11675_v24 = vld [vmem:[%s16381_s28 + $0x68] ss:$12 sps:$4 sm:$0xff]  }
 0x186   :  { %2705 = vmatpush1.bf16.msra.mxu0 %v11606_v26 }
 0x187   :  { %2706 = vmatprep.subr.bf16.mxu0 %v11614_v27  ;;  %v11679_v27 = vld [vmem:[%s16381_s28 + $0x140] ss:$12 sps:$4 sm:$0xff]  }
 0x18a   :  { %2707 = vmatpush1.bf16.msra.mxu0 %v11612_v28 }
 0x18b   :  { %2708 = vmatprep.subr.bf16.mxu0 %v11620_v29 }
 0x18e   :  { %2709 = vmatpush1.bf16.msra.mxu0 %v11618_v31 }
 0x18f   :  { %2710 = vmatprep.subr.bf16.mxu0 %v11626_v33 }
 0x192   :  { %2711 = vmatpush1.bf16.msra.mxu0 %v11624_v34 }
 0x193   :  { %2712 = vmatprep.subr.bf16.mxu0 %v11632_v35 }
 0x196   :  { %2713 = vmatpush1.bf16.msra.mxu0 %v11630_v36  ;;  %v11680_v36 = vld [vmem:[%s16381_s28 + $0x80] ss:$12 sps:$4 sm:$0xff]  }
 0x197   :  { %2714 = vmatprep.subr.bf16.mxu0 %v11638_v37 }
 0x19a   :  { %2715 = vmatpush1.bf16.msra.mxu0 %v11636_v38  ;;  %v11684_v38 = vld [vmem:[%s16381_s28 + $0x158] ss:$12 sps:$4 sm:$0xff]  }
 0x19b   :  { %2725 = vmatprep.subr.bf16.mxu0 %v11644_v39 }
 0x19d   :  { %2717 = vmatmul.mubr.bf16.vlgmr.msra.gmra.mrb[8].mxu0 %v13429_v19 }
 0x19e   :  { %2726 = vmatpush1.bf16.msra.mxu0 %v11642_v40  ;;  %v2554_v43 = vpop.f32.mrb[0].mxu1  ;;  %2757 = vmatprep.mubr.bf16.mxu0 %v12709_v25  ;;  %v11681_v40 = vld [vmem:[%s16381_s28 + $0x180] ss:$12 sps:$4 sm:$0xff]  }
 0x19f   :  { %v2556_v45 = vpop.f32.mrb[1].mxu1  ;;  %10735 = vmatprep.subr.bf16.mxu0 %v11654_v42  ;;  %v11003_v9 = vadd.f32 %v2554_v43, %v482_v1  ;;  %v11685_v42 = vld [vmem:[%s16381_s28 + $0x98] ss:$12 sps:$4 sm:$0xff]   ;;  %v11688_v43 = vld [vmem:[%s16381_s28 + $0x19c] ss:$12 sps:$4 sm:$0xff]  }
 0x1a0   :  { %v2558_v46 = vpop.f32.mrb[2].mxu1  ;;  %v11005_v12 = vadd.f32 %v2556_v45, %v486_v6  ;;  %v11694_v1 = vld [vmem:[%s16381_s28 + $0x248] ss:$12 sps:$4 sm:$0xff]   ;;  %v11698_v6 = vld [vmem:[%s16381_s28 + $0x1cc] ss:$12 sps:$4 sm:$0xff]  }
 0x1a1   :  { %v2559_v47 = vpop.f32.mrb[3].mxu1  ;;  %v11689_v46 = vld [vmem:[%s16381_s28 + $0x170] ss:$12 sps:$4 sm:$0xff]  }
 0x1a8   :  { %v2431_v58 = vpop.f32.mrb[0].mxu0 }
 0x1a9   :  { %v11001_v59 = vadd.f32 %v2431_v58, %v474_v52  ;;  %9905 = vmatmul.mubr.msk.bf16.vlgmr.msra.gmra.mrb[8].mxu0 %vm2270_vm0, %v13462_v30  ;;  %v2433_v60 = vpop.f32.mrb[1].mxu0 }
 0x1aa   :  { %10736 = vmatpush3.bf16.msra.mxu0 %v11655_v53  ;;  %v11002_v61 = vadd.f32 %v2433_v60, %v478_v54  ;;  %v2435_v62 = vpop.f32.mrb[2].mxu0 }
 0x1ab   :  { %v2933_v2 = vmul.f32 0.70710677, %v11001_v59  ;;  %v2436_v3 = vpop.f32.mrb[3].mxu0  ;;  %10737 = vmatprep.subr.bf16.mxu0 %v11659_v56  ;;  %v2926_v29 = vmul.f32 0.5, %v11001_v59  ;;  %v11686_v59 = vld [vmem:[%s16381_s28 + $0x198] ss:$12 sps:$4 sm:$0xff]  }
 0x1ac   :  { %v2934_v7 = vmul.f32 0.70710677, %v11002_v61  ;;  %v2927_v33 = vmul.f32 0.5, %v11002_v61  ;;  %v11690_v61 = vld [vmem:[%s16381_s28 + $0xb0] ss:$12 sps:$4 sm:$0xff]  }
 0x1ad   :  { %12658 = verf.f32 %v2933_v2  ;;  %v11693_v62 = vld [vmem:[%s16381_s28 + $0x1b4] ss:$12 sps:$4 sm:$0xff]   ;;  %v11691_v2 = vld [vmem:[%s16381_s28 + $0x1b0] ss:$12 sps:$4 sm:$0xff]  }
 0x1ae   :  { %12660 = verf.f32 %v2934_v7  ;;  %10738 = vmatpush3.bf16.msra.mxu0 %v11660_v63  ;;  %v11699_v7 = vld [vmem:[%s16381_s28 + $0x260] ss:$12 sps:$4 sm:$0xff]  }
 0x1af   :  { %10739 = vmatprep.subr.bf16.mxu0 %v11664_v5  ;;  %v11695_v5 = vld [vmem:[%s16381_s28 + $0x188] ss:$12 sps:$4 sm:$0xff]  }
 0x1b0   :  { %v2595_v13 = vpop.f32.mrb[4].mxu0 }
 0x1b1   :  { %v14061_v14 = vadd.f32 %v11003_v9, %v2595_v13  ;;  %v2597_v15 = vpop.f32.mrb[5].mxu0  ;;  %v11700_v9 = vld [vmem:[%s16381_s28 + $0x1a0] ss:$12 sps:$4 sm:$0xff]  }
 0x1b2   :  { %10740 = vmatpush3.bf16.msra.mxu0 %v11665_v8  ;;  %v11006_v17 = vadd.f32 %v11005_v12, %v2597_v15  ;;  %v2599_v18 = vpop.f32.mrb[6].mxu0  ;;  %v11696_v8 = vld [vmem:[%s16381_s28 + $0x1c8] ss:$12 sps:$4 sm:$0xff]   ;;  %v11704_v12 = vld [vmem:[%s16381_s28 + $0x278] ss:$12 sps:$4 sm:$0xff]  }
 0x1b3   :  { %v2600_v21 = vpop.f32.mrb[7].mxu0  ;;  %10741 = vmatprep.subr.bf16.mxu0 %v11669_v11  ;;  %v11703_v11 = vld [vmem:[%s16381_s28 + $0x1e4] ss:$12 sps:$4 sm:$0xff]   ;;  %v11701_v13 = vld [vmem:[%s16381_s28 + $0x1e0] ss:$12 sps:$4 sm:$0xff]  }
 0x1b4   :  { %v2936_v23 = vmul.f32 0.70710677, %v11006_v17  ;;  %v2929_v56 = vmul.f32 0.5, %v11006_v17  ;;  %v2935_v15 = vmul.f32 0.70710677, %v14061_v14 }
 0x1b5   :  { %v11705_v17 = vld [vmem:[%s16381_s28 + $0x1b8] ss:$12 sps:$4 sm:$0xff]   ;;  %v11708_v18 = vld [vmem:[%s16381_s28 + $0x1fc] ss:$12 sps:$4 sm:$0xff]  }
 0x1b6   :  { %12662 = verf.f32 %v2936_v23  ;;  %10742 = vmatpush3.bf16.msra.mxu0 %v11670_v20  ;;  %v11709_v20 = vld [vmem:[%s16381_s28 + $0x290] ss:$12 sps:$4 sm:$0xff]   ;;  %v11706_v21 = vld [vmem:[%s16381_s28 + $0x1f8] ss:$12 sps:$4 sm:$0xff]   ;;  %v11713_v23 = vld [vmem:[%s16381_s28 + $0x214] ss:$12 sps:$4 sm:$0xff]  }
 0x1b7   :  { %v12659_v26 = vpop.eup %12658  ;;  %10743 = vmatprep.subr.bf16.mxu0 %v11674_v22  ;;  %12664 = verf.f32 %v2935_v15  ;;  %v11710_v22 = vld [vmem:[%s16381_s28 + $0x1d0] ss:$12 sps:$4 sm:$0xff]  }
 0x1b8   :  { %v12661_v28 = vpop.eup %12660  ;;  %v2947_v31 = vadd.f32 1.0, %v12659_v26  ;;  %v11711_v26 = vld [vmem:[%s16381_s28 + $0x210] ss:$12 sps:$4 sm:$0xff]  }
 0x1b9   :  { %v2948_v34 = vadd.f32 1.0, %v12661_v28  ;;  %v11718_v28 = vld [vmem:[%s16381_s28 + $0x22c] ss:$12 sps:$4 sm:$0xff]   ;;  %v11743_v15 = vld [vmem:[%s16381_s28 + $0x2d0] ss:$12 sps:$4 sm:$0xff]  }
 0x1ba   :  { %v2954_v35 = vmul.f32 %v2947_v31, %v2926_v29  ;;  %10744 = vmatpush3.bf16.msra.mxu0 %v11675_v24  ;;  %v11714_v24 = vld [vmem:[%s16381_s28 + $0x2a8] ss:$12 sps:$4 sm:$0xff]   ;;  %v497_v29 = vsub.s32 6, %v14014_v44  ;;  %v11719_v31 = vld [vmem:[%s16381_s28 + $0x2c0] ss:$12 sps:$4 sm:$0xff]  }
 0x1bb   :  { %10745 = vmatprep.subr.bf16.mxu0 %v11679_v27  ;;  %v2955_v37 = vmul.f32 %v2948_v34, %v2927_v33  ;;  %v11715_v27 = vld [vmem:[%s16381_s28 + $0x1e8] ss:$12 sps:$4 sm:$0xff]   ;;  %v11720_v34 = vld [vmem:[%s16381_s28 + $0x200] ss:$12 sps:$4 sm:$0xff]  }
 0x1bc   :  { %v2961_v41 = vpack.c.bf16 %v2954_v35, %v2954_v35  ;;  %v11716_v33 = vld [vmem:[%s16381_s28 + $0x228] ss:$12 sps:$4 sm:$0xff]   ;;  %v11723_v35 = vld [vmem:[%s16381_s28 + $0x244] ss:$12 sps:$4 sm:$0xff]  }
 0x1bd   :  { %v2962_v39 = vpack.c.bf16 %v2955_v37, %v2955_v37  ;;  %v11724_v37 = vld [vmem:[%s16381_s28 + $0x2d8] ss:$12 sps:$4 sm:$0xff]  }
 0x1be   :  { %10746 = vmatpush3.bf16.msra.mxu0 %v11680_v36  ;;  %v10683_v45 = vpop.f32.mrb[4].mxu1  ;;  %v498_v36 = vrot.slane %v14025_v51, %v497_v29 }
 0x1bf   :  { %4000 = vmatprep.mubr.bf16.mxu1 %v2962_v39  ;;  %10747 = vmatprep.subr.bf16.mxu0 %v11684_v38  ;;  %v10684_v47 = vpop.f32.mrb[5].mxu1 }
 0x1c0   :  { %v12663_v52 = vpop.eup %12662  ;;  %4164 = vmatprep.mubr.bf16.mxu0 %v2962_v39  ;;  %4001 = vmatmul.mubr.bf16.vlgmr.msra.gmra.mrb[20].mxu1 %v2961_v41  ;;  %v14093_v53 = vadd.f32 %v10684_v47, %v10683_v45  ;;  %v10686_v54 = vpop.f32.mrb[6].mxu1  ;;  %v11721_v39 = vld [vmem:[%s16381_s28 + $0x240] ss:$12 sps:$4 sm:$0xff]  }
 0x1c1   :  { %v2950_v58 = vadd.f32 1.0, %v12663_v52  ;;  %4010 = vmatpush1.bf16.msra.mxu1 %v11681_v40  ;;  %v10687_v60 = vpop.f32.mrb[7].mxu1  ;;  %v12665_v38 = vpop.eup %12664  ;;  %v11725_v40 = vld [vmem:[%s16381_s28 + $0x218] ss:$12 sps:$4 sm:$0xff]  }
 0x1c2   :  { %10748 = vmatpush3.bf16.msra.mxu0 %v11685_v42  ;;  %4011 = vmatprep.subr.bf16.mxu1 %v11688_v43  ;;  %v2801_v42 = vadd.f32 %v14093_v53, %v498_v36  ;;  %v2949_v45 = vadd.f32 1.0, %v12665_v38  ;;  %v11730_v53 = vld [vmem:[%s16381_s28 + $0x230] ss:$12 sps:$4 sm:$0xff]   ;;  %v11733_v60 = vld [vmem:[%s16381_s28 + $0x274] ss:$12 sps:$4 sm:$0xff]  }
 0x1c3   :  { %10749 = vmatprep.subr.bf16.mxu0 %v11689_v46  ;;  %v2957_v63 = vmul.f32 %v2950_v58, %v2929_v56  ;;  %v11729_v46 = vld [vmem:[%s16381_s28 + $0x2f0] ss:$12 sps:$4 sm:$0xff]   ;;  %v2928_v56 = vmul.f32 0.5, %v14061_v14  ;;  %v11726_v58 = vld [vmem:[%s16381_s28 + $0x258] ss:$12 sps:$4 sm:$0xff]  }
 0x1c4   :  { %v11776_v14 = vld [vmem:[%s16381_s28 + $0x3c8] ss:$12 sps:$4 sm:$0xff]   ;;  %v11752_v36 = vld [vmem:[%s16381_s28 + $0x318] ss:$12 sps:$4 sm:$0xff]  }
 0x1c5   :  { %4012 = vmatpush1.bf16.msra.mxu1 %v11686_v59  ;;  %v2964_v3 = vpack.c.bf16 %v2957_v63, %v2957_v63  ;;  %v11731_v63 = vld [vmem:[%s16381_s28 + $0x270] ss:$12 sps:$4 sm:$0xff]   ;;  %v11757_v38 = vld [vmem:[%s16381_s28 + $0x334] ss:$12 sps:$4 sm:$0xff]  }
 0x1c6   :  { %10750 = vmatpush3.bf16.msra.mxu0 %v11690_v61  ;;  %4013 = vmatprep.subr.bf16.mxu1 %v11693_v62  ;;  %v2956_v62 = vmul.f32 %v2949_v45, %v2928_v56  ;;  %v11758_v56 = vld [vmem:[%s16381_s28 + $0x348] ss:$12 sps:$4 sm:$0xff]  }
 0x1c7   :  { %4041 = vmatprep.mubr.bf16.mxu1 %v2964_v3  ;;  %10757 = vmatprep.subr.bf16.mxu0 %v11694_v1  ;;  %v11736_v1 = vld [vmem:[%s16381_s28 + $0x28c] ss:$12 sps:$4 sm:$0xff]  }
 0x1c9   :  { %4165 = vmatmul.mubr.bf16.vlgmr.msra.gmra.mrb[12].mxu0 %v2961_v41  ;;  %4014 = vmatpush1.bf16.msra.mxu1 %v11691_v2  ;;  %v11728_v41 = vld [vmem:[%s16381_s28 + $0x25c] ss:$12 sps:$4 sm:$0xff]  }
 0x1ca   :  { %10758 = vmatpush3.bf16.msra.mxu0 %v11695_v5  ;;  %4204 = vmatprep.mubr.bf16.mxu0 %v2964_v3  ;;  %v11777_v2 = vld [vmem:[%s16381_s28 + $0x308] ss:$12 sps:$4 sm:$0xff]   ;;  %v2963_v3 = vpack.c.bf16 %v2956_v62, %v2956_v62  ;;  %v11781_v5 = vld [vmem:[%s16381_s28 + $0x3e0] ss:$12 sps:$4 sm:$0xff]  }
 0x1cb   :  { %4015 = vmatprep.subr.bf16.mxu1 %v11698_v6  ;;  %10759 = vmatprep.subr.bf16.mxu0 %v11699_v7  ;;  %v11734_v6 = vld [vmem:[%s16381_s28 + $0x288] ss:$12 sps:$4 sm:$0xff]   ;;  %v11739_v7 = vld [vmem:[%s16381_s28 + $0x2a4] ss:$12 sps:$4 sm:$0xff]  }
 0x1cc   :  { %v11766_v62 = vld [vmem:[%s16381_s28 + $0x37c] ss:$12 sps:$4 sm:$0xff]  }
 0x1cd   :  { %4016 = vmatpush1.bf16.msra.mxu1 %v11696_v8  ;;  %v11782_v8 = vld [vmem:[%s16381_s28 + $0x320] ss:$12 sps:$4 sm:$0xff]  }
 0x1ce   :  { %10760 = vmatpush3.bf16.msra.mxu0 %v11700_v9  ;;  %4017 = vmatprep.subr.bf16.mxu1 %v11703_v11  ;;  %v11737_v9 = vld [vmem:[%s16381_s28 + $0x2a0] ss:$12 sps:$4 sm:$0xff]   ;;  %v11742_v11 = vld [vmem:[%s16381_s28 + $0x2bc] ss:$12 sps:$4 sm:$0xff]  }
 0x1cf   :  { %10761 = vmatprep.subr.bf16.mxu0 %v11704_v12  ;;  %v11740_v12 = vld [vmem:[%s16381_s28 + $0x2b8] ss:$12 sps:$4 sm:$0xff]  }
 0x1d1   :  { %4018 = vmatpush1.bf16.msra.mxu1 %v11701_v13  ;;  %v11745_v13 = vld [vmem:[%s16381_s28 + $0x2d4] ss:$12 sps:$4 sm:$0xff]  }
 0x1d2   :  { %10762 = vmatpush3.bf16.msra.mxu0 %v11705_v17  ;;  %4019 = vmatprep.subr.bf16.mxu1 %v11708_v18  ;;  %v11748_v17 = vld [vmem:[%s16381_s28 + $0x2ec] ss:$12 sps:$4 sm:$0xff]   ;;  %v11746_v18 = vld [vmem:[%s16381_s28 + $0x2e8] ss:$12 sps:$4 sm:$0xff]  }
 0x1d3   :  { %10763 = vmatprep.subr.bf16.mxu0 %v11709_v20  ;;  %v11751_v20 = vld [vmem:[%s16381_s28 + $0x304] ss:$12 sps:$4 sm:$0xff]  }
 0x1d5   :  { %4020 = vmatpush1.bf16.msra.mxu1 %v11706_v21  ;;  %v11786_v21 = vld [vmem:[%s16381_s28 + $0x3f8] ss:$12 sps:$4 sm:$0xff]  }
 0x1d6   :  { %10764 = vmatpush3.bf16.msra.mxu0 %v11710_v22  ;;  %4021 = vmatprep.subr.bf16.mxu1 %v11713_v23  ;;  %v11787_v22 = vld [vmem:[%s16381_s28 + $0x338] ss:$12 sps:$4 sm:$0xff]   ;;  %v11749_v23 = vld [vmem:[%s16381_s28 + $0x300] ss:$12 sps:$4 sm:$0xff]  }
 0x1d7   :  { %10765 = vmatprep.subr.bf16.mxu0 %v11714_v24 }
 0x1d9   :  { %4022 = vmatpush1.bf16.msra.mxu1 %v11711_v26  ;;  %v11754_v26 = vld [vmem:[%s16381_s28 + $0x31c] ss:$12 sps:$4 sm:$0xff]  }
 0x1da   :  { %10766 = vmatpush3.bf16.msra.mxu0 %v11715_v27  ;;  %4023 = vmatprep.subr.bf16.mxu1 %v11718_v28  ;;  %v11791_v28 = vld [vmem:[%s16381_s28 + $0x410] ss:$12 sps:$4 sm:$0xff]  }
 0x1db   :  { %10767 = vmatprep.subr.bf16.mxu0 %v11719_v31 }
 0x1dd   :  { %4024 = vmatpush1.bf16.msra.mxu1 %v11716_v33 }
 0x1de   :  { %10768 = vmatpush3.bf16.msra.mxu0 %v11720_v34  ;;  %4025 = vmatprep.subr.bf16.mxu1 %v11723_v35  ;;  %v10705_v43 = vpop.f32.mrb[8].mxu1  ;;  %v11792_v34 = vld [vmem:[%s16381_s28 + $0x350] ss:$12 sps:$4 sm:$0xff]  }
 0x1df   :  { %10769 = vmatprep.subr.bf16.mxu0 %v11724_v37  ;;  %v10706_v47 = vpop.f32.mrb[9].mxu1 }
 0x1e0   :  { %v10707_v52 = vadd.f32 %v10706_v47, %v10705_v43  ;;  %v10708_v54 = vpop.f32.mrb[10].mxu1  ;;  %v11760_v43 = vld [vmem:[%s16381_s28 + $0x34c] ss:$12 sps:$4 sm:$0xff]  }
 0x1e1   :  { %4026 = vmatpush1.bf16.msra.mxu1 %v11721_v39  ;;  %v10709_v59 = vpop.f32.mrb[11].mxu1  ;;  %v11796_v39 = vld [vmem:[%s16381_s28 + $0x428] ss:$12 sps:$4 sm:$0xff]   ;;  %v11801_v47 = vld [vmem:[%s16381_s28 + $0x440] ss:$12 sps:$4 sm:$0xff]  }
 0x1e2   :  { %10770 = vmatpush3.bf16.msra.mxu0 %v11725_v40  ;;  %4027 = vmatprep.subr.bf16.mxu1 %v11728_v41  ;;  %v2841_v61 = vadd.f32 %v10707_v52, %v2801_v42  ;;  %v11797_v40 = vld [vmem:[%s16381_s28 + $0x368] ss:$12 sps:$4 sm:$0xff]   ;;  %v11755_v41 = vld [vmem:[%s16381_s28 + $0x330] ss:$12 sps:$4 sm:$0xff]   ;;  %v11802_v54 = vld [vmem:[%s16381_s28 + $0x380] ss:$12 sps:$4 sm:$0xff]  }
 0x1e3   :  { %10771 = vmatprep.subr.bf16.mxu0 %v11729_v46  ;;  %v11763_v59 = vld [vmem:[%s16381_s28 + $0x364] ss:$12 sps:$4 sm:$0xff]  }
 0x1e5   :  { %4028 = vmatpush1.bf16.msra.mxu1 %v11726_v58 }
 0x1e6   :  { %10772 = vmatpush3.bf16.msra.mxu0 %v11730_v53  ;;  %4029 = vmatprep.subr.bf16.mxu1 %v11733_v60  ;;  %v11806_v53 = vld [vmem:[%s16381_s28 + $0x458] ss:$12 sps:$4 sm:$0xff]  }
 0x1e7   :  { %10779 = vmatprep.subr.bf16.mxu0 %v11776_v14  ;;  %v11807_v60 = vld [vmem:[%s16381_s28 + $0x398] ss:$12 sps:$4 sm:$0xff]   ;;  %v11811_v14 = vld [vmem:[%s16381_s28 + $0x470] ss:$12 sps:$4 sm:$0xff]  }
 0x1e9   :  { %4205 = vmatmul.mubr.bf16.vlgmr.msra.gmra.mrb[16].mxu0 %v2963_v3  ;;  %4030 = vmatpush1.bf16.msra.mxu1 %v11731_v63  ;;  %v11812_v63 = vld [vmem:[%s16381_s28 + $0x3b0] ss:$12 sps:$4 sm:$0xff]  }
 0x1ea   :  { %4031 = vmatprep.subr.bf16.mxu1 %v11736_v1  ;;  %10780 = vmatpush3.bf16.msra.mxu0 %v11777_v2  ;;  %v11764_v1 = vld [vmem:[%s16381_s28 + $0x378] ss:$12 sps:$4 sm:$0xff]   ;;  %v11769_v2 = vld [vmem:[%s16381_s28 + $0x394] ss:$12 sps:$4 sm:$0xff]  }
 0x1eb   :  { %10781 = vmatprep.subr.bf16.mxu0 %v11781_v5  ;;  %v11772_v5 = vld [vmem:[%s16381_s28 + $0x3ac] ss:$12 sps:$4 sm:$0xff]  }
 0x1ed   :  { %4032 = vmatpush1.bf16.msra.mxu1 %v11734_v6  ;;  %v11770_v6 = vld [vmem:[%s16381_s28 + $0x3a8] ss:$12 sps:$4 sm:$0xff]  }
 0x1ee   :  { %4033 = vmatprep.subr.bf16.mxu1 %v11739_v7  ;;  %10782 = vmatpush3.bf16.msra.mxu0 %v11782_v8  ;;  %v11775_v7 = vld [vmem:[%s16381_s28 + $0x3c4] ss:$12 sps:$4 sm:$0xff]   ;;  %v11773_v8 = vld [vmem:[%s16381_s28 + $0x3c0] ss:$12 sps:$4 sm:$0xff]  }
 0x1ef   :  { %10783 = vmatprep.subr.bf16.mxu0 %v11786_v21  ;;  %v11800_v21 = vld [vmem:[%s16381_s28 + $0x43c] ss:$12 sps:$4 sm:$0xff]  }
 0x1f1   :  { %4034 = vmatpush1.bf16.msra.mxu1 %v11737_v9  ;;  %v11780_v9 = vld [vmem:[%s16381_s28 + $0x3dc] ss:$12 sps:$4 sm:$0xff]  }
 0x1f2   :  { %4035 = vmatprep.subr.bf16.mxu1 %v11742_v11  ;;  %10784 = vmatpush3.bf16.msra.mxu0 %v11787_v22  ;;  %v11778_v11 = vld [vmem:[%s16381_s28 + $0x3d8] ss:$12 sps:$4 sm:$0xff]  }
 0x1f3   :  { %10785 = vmatprep.subr.bf16.mxu0 %v11791_v28  ;;  %v11798_v22 = vld [vmem:[%s16381_s28 + $0x438] ss:$12 sps:$4 sm:$0xff]  }
 0x1f4   :  { %v11815_v28 = vld [vmem:[%s16381_s28 + $0x484] ss:$12 sps:$4 sm:$0xff]  }
 0x1f5   :  { %4036 = vmatpush1.bf16.msra.mxu1 %v11740_v12  ;;  %v11785_v12 = vld [vmem:[%s16381_s28 + $0x3f4] ss:$12 sps:$4 sm:$0xff]  }
 0x1f6   :  { %4037 = vmatprep.subr.bf16.mxu1 %v11745_v13  ;;  %10786 = vmatpush3.bf16.msra.mxu0 %v11792_v34  ;;  %v11783_v13 = vld [vmem:[%s16381_s28 + $0x3f0] ss:$12 sps:$4 sm:$0xff]  }
 0x1f7   :  { %10787 = vmatprep.subr.bf16.mxu0 %v11796_v39 }
 0x1f9   :  { %4038 = vmatpush1.bf16.msra.mxu1 %v11743_v15  ;;  %v11790_v15 = vld [vmem:[%s16381_s28 + $0x40c] ss:$12 sps:$4 sm:$0xff]  }
 0x1fa   :  { %4039 = vmatprep.subr.bf16.mxu1 %v11748_v17  ;;  %10788 = vmatpush3.bf16.msra.mxu0 %v11797_v40  ;;  %v11788_v17 = vld [vmem:[%s16381_s28 + $0x408] ss:$12 sps:$4 sm:$0xff]  }
 0x1fb   :  { %10789 = vmatprep.subr.bf16.mxu0 %v11801_v47 }
 0x1fd   :  { %4040 = vmatpush1.bf16.msra.mxu1 %v11746_v18  ;;  %v11795_v18 = vld [vmem:[%s16381_s28 + $0x424] ss:$12 sps:$4 sm:$0xff]  }
 0x1fe   :  { %v10727_v24 = vpop.f32.mrb[12].mxu1  ;;  %4050 = vmatprep.subr.bf16.mxu1 %v11751_v20  ;;  %10790 = vmatpush3.bf16.msra.mxu0 %v11802_v54  ;;  %v11793_v20 = vld [vmem:[%s16381_s28 + $0x420] ss:$12 sps:$4 sm:$0xff]  }
 0x1ff   :  { %v10728_v27 = vpop.f32.mrb[13].mxu1  ;;  %10791 = vmatprep.subr.bf16.mxu0 %v11806_v53 }
 0x200   :  { %4042 = vmatmul.mubr.bf16.vlgmr.msra.gmra.mrb[20].mxu1 %v2963_v3  ;;  %v10729_v31 = vadd.f32 %v10728_v27, %v10727_v24  ;;  %v10730_v33 = vpop.f32.mrb[14].mxu1  ;;  %v11767_v3 = vld [vmem:[%s16381_s28 + $0x390] ss:$12 sps:$4 sm:$0xff]   ;;  %v11808_v27 = vld [vmem:[%s16381_s28 + $0x468] ss:$12 sps:$4 sm:$0xff]  }
 0x201   :  { %v10731_v35 = vpop.f32.mrb[15].mxu1  ;;  %4051 = vmatpush1.bf16.msra.mxu1 %v11749_v23  ;;  %v11805_v23 = vld [vmem:[%s16381_s28 + $0x454] ss:$12 sps:$4 sm:$0xff]   ;;  %v11803_v24 = vld [vmem:[%s16381_s28 + $0x450] ss:$12 sps:$4 sm:$0xff]   ;;  %v493_v33 = vsub.s32 5, %v14014_v44 }
 0x202   :  { %v2881_v37 = vadd.f32 %v10729_v31, %v2841_v61  ;;  %4052 = vmatprep.subr.bf16.mxu1 %v11754_v26  ;;  %v11761_v61 = vld [vmem:[%s16381_s28 + $0x360] ss:$12 sps:$4 sm:$0xff]   ;;  %10792 = vmatpush3.bf16.msra.mxu0 %v11807_v60  ;;  %v489_v31 = vsub.s32 4, %v14014_v44 }
 0x203   :  { %10793 = vmatprep.subr.bf16.mxu0 %v11811_v14  ;;  %v11810_v26 = vld [vmem:[%s16381_s28 + $0x46c] ss:$12 sps:$4 sm:$0xff]   ;;  %v494_v35 = vrot.slane %v14025_v51, %v493_v33  ;;  %v11816_v14 = vld [vmem:[%s16381_s28 + $0x488] ss:$12 sps:$4 sm:$0xff]   ;;  %v12587_v44 = vld [vmem:[%s16361_s9 + $0x560] ss:$16 sps:$4 sm:$0xff]  }
 0x204   :  { %v490_v34 = vrot.slane %v14025_v51, %v489_v31 }
 0x205   :  { %4053 = vmatpush1.bf16.msra.mxu1 %v11752_v36 }
 0x206   :  { %v2920_v42 = vpop.f32.mrb[16].mxu1  ;;  %4054 = vmatprep.subr.bf16.mxu1 %v11757_v38  ;;  %10794 = vmatpush3.bf16.msra.mxu0 %v11812_v63 }
 0x207   :  { %v14291_v45 = vadd.f32 %v2920_v42, %v2881_v37  ;;  %v10939_v46 = vpop.f32.mrb[17].mxu1  ;;  %10941 = vmatprep.subr.bf16.mxu0 %v12710_v0 }
 0x208   :  { %v2923_v52 = vpop.f32.mrb[18].mxu1 }
 0x209   :  { %4055 = vmatpush1.bf16.msra.mxu1 %v11755_v41  ;;  %v10940_v58 = vpop.f32.mrb[19].mxu1  ;;  %v2939_v46 = vmul.f32 0.70710677, %v14291_v45  ;;  %v2932_v63 = vmul.f32 0.5, %v14291_v45 }
 0x20a   :  { %4056 = vmatprep.subr.bf16.mxu1 %v11760_v43 }
 0x20d   :  { %4057 = vmatpush1.bf16.msra.mxu1 %v11758_v56 }
 0x20e   :  { %4058 = vmatprep.subr.bf16.mxu1 %v11763_v59 }
 0x211   :  { %4059 = vmatpush1.bf16.msra.mxu1 %v11761_v61 }
 0x212   :  { %4060 = vmatprep.subr.bf16.mxu1 %v11766_v62  ;;  %v11813_v62 = vld [vmem:[%s16381_s28 + $0x480] ss:$12 sps:$4 sm:$0xff]  }
 0x215   :  { %4061 = vmatpush1.bf16.msra.mxu1 %v11764_v1 }
 0x216   :  { %4062 = vmatprep.subr.bf16.mxu1 %v11769_v2 }
 0x219   :  { %4063 = vmatpush1.bf16.msra.mxu1 %v11767_v3 }
 0x21a   :  { %4064 = vmatprep.subr.bf16.mxu1 %v11772_v5 }
 0x21d   :  { %4065 = vmatpush1.bf16.msra.mxu1 %v11770_v6 }
 0x21e   :  { %4066 = vmatprep.subr.bf16.mxu1 %v11775_v7 }
 0x221   :  { %4067 = vmatpush1.bf16.msra.mxu1 %v11773_v8 }
 0x222   :  { %4068 = vmatprep.subr.bf16.mxu1 %v11780_v9 }
 0x225   :  { %4069 = vmatpush1.bf16.msra.mxu1 %v11778_v11  ;;  %v14417_v11 = vld [vmem:[%s16356_s4] sm:$0x7] }
 0x226   :  { %4070 = vmatprep.subr.bf16.mxu1 %v11785_v12  ;;  %v3177_v12 = vrot.slane %v14417_v11, %v14035_v55 }
 0x229   :  { %4071 = vmatpush1.bf16.msra.mxu1 %v11783_v13 }
 0x22a   :  { %4072 = vmatprep.subr.bf16.mxu1 %v11790_v15 }
 0x22d   :  { %4073 = vmatpush1.bf16.msra.mxu1 %v11788_v17 }
 0x22e   :  { %4074 = vmatprep.subr.bf16.mxu1 %v11795_v18 }
 0x231   :  { %4075 = vmatpush1.bf16.msra.mxu1 %v11793_v20 }
 0x232   :  { %4076 = vmatprep.subr.bf16.mxu1 %v11800_v21 }
 0x235   :  { %4077 = vmatpush1.bf16.msra.mxu1 %v11798_v22 }
 0x236   :  { %4078 = vmatprep.subr.bf16.mxu1 %v11805_v23  ;;  %v11817_v23 = vld [vmem:[%s16357_s5 + $0x40] sm:$0xff]  }
 0x239   :  { %4079 = vmatpush1.bf16.msra.mxu1 %v11803_v24  ;;  %v11818_v24 = vld [vmem:[%s16357_s5] sm:$0xff]  }
 0x23a   :  { %4080 = vmatprep.subr.bf16.mxu1 %v11810_v26  ;;  %v11819_v26 = vld [vmem:[%s16357_s5 + $0x48] sm:$0xff]  }
 0x23d   :  { %4081 = vmatpush1.bf16.msra.mxu1 %v11808_v27  ;;  %v11820_v27 = vld [vmem:[%s16357_s5 + $0x8] sm:$0xff]  }
 0x23e   :  { %4091 = vmatprep.subr.bf16.mxu1 %v11815_v28  ;;  %v11821_v28 = vld [vmem:[%s16357_s5 + $0x50] sm:$0xff]  }
 0x27c   :  { %v2759_v36 = vpop.f32.mrb[8].mxu0 }
 0x27d   :  { %v11007_v37 = vadd.f32 %v2759_v36, %v490_v34  ;;  %v2761_v38 = vpop.f32.mrb[9].mxu0  ;;  %v11822_v34 = vld [vmem:[%s16357_s5 + $0x10] sm:$0xff]   ;;  %v11824_v36 = vld [vmem:[%s16357_s5 + $0x18] sm:$0xff]  }
 0x27e   :  { %v11008_v39 = vadd.f32 %v2761_v38, %v494_v35  ;;  %v2763_v40 = vpop.f32.mrb[10].mxu0  ;;  %v11823_v35 = vld [vmem:[%s16357_s5 + $0x58] sm:$0xff]   ;;  %v11826_v38 = vld [vmem:[%s16357_s5 + $0x20] sm:$0xff]  }
 0x27f   :  { %v2937_v41 = vmul.f32 0.70710677, %v11007_v37  ;;  %v2764_v42 = vpop.f32.mrb[11].mxu0  ;;  %v2930_v54 = vmul.f32 0.5, %v11007_v37  ;;  %v11825_v37 = vld [vmem:[%s16357_s5 + $0x60] sm:$0xff]   ;;  %v11828_v40 = vld [vmem:[%s16357_s5 + $0x68] sm:$0xff]  }
 0x280   :  { %v2938_v43 = vmul.f32 0.70710677, %v11008_v39  ;;  %v2931_v58 = vmul.f32 0.5, %v11008_v39  ;;  %v11827_v39 = vld [vmem:[%s16357_s5 + $0x80] sm:$0xff]   ;;  %v11830_v42 = vld [vmem:[%s16357_s5 + $0x88] sm:$0xff]  }
 0x281   :  { %12666 = verf.f32 %v2937_v41  ;;  %v11829_v41 = vld [vmem:[%s16357_s5 + $0x28] sm:$0xff]  }
 0x282   :  { %12668 = verf.f32 %v2938_v43  ;;  %v11831_v43 = vld [vmem:[%s16357_s5 + $0x70] sm:$0xff]  }
 0x283   :  { %12670 = verf.f32 %v2939_v46  ;;  %v11832_v46 = vld [vmem:[%s16357_s5 + $0x30] sm:$0xff]  }
 0x28b   :  { %v12667_v47 = vpop.eup %12666 }
 0x28c   :  { %v12669_v52 = vpop.eup %12668  ;;  %v2951_v56 = vadd.f32 1.0, %v12667_v47  ;;  %v11835_v47 = vld [vmem:[%s16358_s7 + $0x4] ss:$28 sps:$4 sm:$0xff]  }
 0x28d   :  { %v2952_v59 = vadd.f32 1.0, %v12669_v52  ;;  %v12671_v53 = vpop.eup %12670  ;;  %v11836_v52 = vld [vmem:[%s16357_s5 + $0x78] sm:$0xff]  }
 0x28e   :  { %v2958_v51 = vmul.f32 %v2951_v56, %v2930_v54  ;;  %v2953_v1 = vadd.f32 1.0, %v12671_v53  ;;  %v11837_v54 = vld [vmem:[%s16357_s5 + $0x38] sm:$0xff]  }
 0x28f   :  { %v2959_v60 = vmul.f32 %v2952_v59, %v2931_v58 }
 0x290   :  { %v2965_v2 = vpack.c.bf16 %v2958_v51, %v2958_v51  ;;  %v2960_v3 = vmul.f32 %v2953_v1, %v2932_v63  ;;  %v3169_v63 = vrot.slane %v14417_v11, %v14017_v49 }
 0x291   :  { %v2966_v61 = vpack.c.bf16 %v2959_v60, %v2959_v60 }
 0x292   :  { %v2967_v5 = vpack.c.bf16 %v2960_v3, %v2960_v3 }
 0x293   :  { %4082 = vmatprep.mubr.bf16.mxu1 %v2966_v61  ;;  %4244 = vmatprep.mubr.bf16.mxu0 %v2966_v61 }
 0x294   :  { %4083 = vmatmul.mubr.bf16.vlgmr.msra.gmra.mrb[20].mxu1 %v2965_v2  ;;  %4245 = vmatmul.mubr.bf16.vlgmr.msra.gmra.mrb[20].mxu0 %v2965_v2  ;;  %v3173_v2 = vrot.slane %v14417_v11, %v14020_v50  ;;  %v11833_v11 = vld [vmem:[%s16358_s7] ss:$28 sps:$4 sm:$0xff]  }
 0x295   :  { %4092 = vmatpush1.bf16.msra.mxu1 %v11813_v62  ;;  %10942 = vmatpush3.bf16.msra.mxu0 %v11816_v14 }
 0x296   :  { %10943 = vmatprep.mubr.msk.bf16.mxu0 %vm12711_vm1, %v12710_v0  ;;  %4123 = vmatprep.mubr.bf16.mxu1 %v12709_v25 }
 0x297   :  { %10947 = vmatprep.subr.bf16.mxu1 %v12710_v0  ;;  %10803 = vmatprep.subr.bf16.mxu0 %v11817_v23  ;;  %v11840_v23 = vld [vmem:[%s16358_s7 + $0x3c] ss:$28 sps:$4 sm:$0xff]  }
 0x29c   :  { %v10751_v6 = vpop.f32.mrb[12].mxu0  ;;  %10944 = vmatmul.mubr.msk.bf16.vlgmr.msra.gmra.mrb[24].mxu0 %vm2270_vm0, %v2967_v5 }
 0x29d   :  { %v10752_v45 = vpop.f32.mrb[13].mxu0  ;;  %10804 = vmatpush3.bf16.msra.mxu0 %v11818_v24 }
 0x29e   :  { %v10753_v7 = vadd.f32 %v10752_v45, %v10751_v6  ;;  %v10754_v8 = vpop.f32.mrb[14].mxu0  ;;  %10805 = vmatprep.subr.bf16.mxu0 %v11819_v26 }
 0x29f   :  { %v10755_v9 = vpop.f32.mrb[15].mxu0 }
 0x2a0   :  { %10054 = vmatmul.mubr.msk.bf16.vlgmr.msra.gmra.mrb[20].mxu1 %vm2270_vm0, %v2967_v5  ;;  %v4167_v17 = vadd.f32 %v10753_v7, %v3177_v12 }
 0x2a1   :  { %10951 = vmatprep.mubr.msk.bf16.mxu1 %vm12711_vm1, %v12710_v0  ;;  %10806 = vmatpush3.bf16.msra.mxu0 %v11820_v27 }
 0x2a2   :  { %10807 = vmatprep.subr.bf16.mxu0 %v11821_v28  ;;  %10948 = vmatpush3.bf16.msra.mxu1 %v11827_v39  ;;  %v11843_v39 = vld [vmem:[%s16358_s7 + $0x74] ss:$28 sps:$4 sm:$0xff]  }
 0x2a3   :  { %10949 = vmatprep.subr.bf16.mxu1 %v12710_v0 }
 0x2a5   :  { %10808 = vmatpush3.bf16.msra.mxu0 %v11822_v34 }
 0x2a6   :  { %10809 = vmatprep.subr.bf16.mxu0 %v11823_v35  ;;  %10950 = vmatpush3.bf16.msra.mxu1 %v11830_v42  ;;  %v11841_v42 = vld [vmem:[%s16358_s7 + $0x70] ss:$28 sps:$4 sm:$0xff]  }
 0x2a7   :  { %6827 = vmatprep.subr.bf16.mxu1 %v11835_v47  ;;  %v11849_v47 = vld [vmem:[%s16358_s7 + $0xe4] ss:$28 sps:$4 sm:$0xff]  }
 0x2a9   :  { %10810 = vmatpush3.bf16.msra.mxu0 %v11824_v36 }
 0x2aa   :  { %10811 = vmatprep.subr.bf16.mxu0 %v11825_v37  ;;  %v11838_v37 = vld [vmem:[%s16358_s7 + $0x38] ss:$28 sps:$4 sm:$0xff]  }
 0x2ad   :  { %10812 = vmatpush3.bf16.msra.mxu0 %v11826_v38 }
 0x2ae   :  { %10813 = vmatprep.subr.bf16.mxu0 %v11828_v40 }
 0x2b1   :  { %10814 = vmatpush3.bf16.msra.mxu0 %v11829_v41 }
 0x2b2   :  { %10815 = vmatprep.subr.bf16.mxu0 %v11831_v43  ;;  %v11846_v43 = vld [vmem:[%s16358_s7 + $0xac] ss:$28 sps:$4 sm:$0xff]  }
 0x2b5   :  { %10816 = vmatpush3.bf16.msra.mxu0 %v11832_v46  ;;  %v11844_v46 = vld [vmem:[%s16358_s7 + $0xa8] ss:$28 sps:$4 sm:$0xff]  }
 0x2b6   :  { %10817 = vmatprep.subr.bf16.mxu0 %v11836_v52  ;;  %v11847_v52 = vld [vmem:[%s16358_s7 + $0xe0] ss:$28 sps:$4 sm:$0xff]  }
 0x2b9   :  { %10818 = vmatpush3.bf16.msra.mxu0 %v11837_v54  ;;  %v11852_v54 = vld [vmem:[%s16358_s7 + $0x11c] ss:$28 sps:$4 sm:$0xff]  }
 0x2ba   :  { %10955 = vmatprep.subr.bf16.mxu0 %v12710_v0 }
 0x2bc   :  { %v10773_v13 = vpop.f32.mrb[16].mxu0 }
 0x2bd   :  { %v10774_v15 = vpop.f32.mrb[17].mxu0 }
 0x2be   :  { %v10775_v18 = vadd.f32 %v10774_v15, %v10773_v13  ;;  %v10776_v20 = vpop.f32.mrb[18].mxu0 }
 0x2bf   :  { %v10777_v21 = vpop.f32.mrb[19].mxu0 }
 0x2c0   :  { %v4207_v22 = vadd.f32 %v10775_v18, %v4167_v17 }
 0x367   :  { %v10795_v56 = vpop.f32.mrb[20].mxu0 }
 0x368   :  { %v10796_v58 = vpop.f32.mrb[21].mxu0 }
 0x369   :  { %v10797_v59 = vadd.f32 %v10796_v58, %v10795_v56  ;;  %v10798_v51 = vpop.f32.mrb[22].mxu0  ;;  %v11850_v56 = vld [vmem:[%s16358_s7 + $0x118] ss:$28 sps:$4 sm:$0xff]  }
 0x36a   :  { %v10799_v53 = vpop.f32.mrb[23].mxu0  ;;  %v11855_v58 = vld [vmem:[%s16358_s7 + $0x154] ss:$28 sps:$4 sm:$0xff]   ;;  %v11858_v51 = vld [vmem:[%s16358_s7 + $0x18c] ss:$28 sps:$4 sm:$0xff]  }
 0x36b   :  { %v4247_v60 = vadd.f32 %v10797_v59, %v4207_v22  ;;  %v11853_v59 = vld [vmem:[%s16358_s7 + $0x150] ss:$28 sps:$4 sm:$0xff]   ;;  %v11856_v53 = vld [vmem:[%s16358_s7 + $0x188] ss:$28 sps:$4 sm:$0xff]  }
 0x36f   :  { %v4286_v61 = vpop.f32.mrb[24].mxu0 }
 0x370   :  { %v4287_v62 = vadd.f32 %v4286_v61, %v4247_v60  ;;  %v10945_v14 = vpop.f32.mrb[25].mxu0  ;;  %v11861_v60 = vld [vmem:[%s16358_s7 + $0x1c4] ss:$28 sps:$4 sm:$0xff]  }
 0x371   :  { %v4289_v1 = vpop.f32.mrb[26].mxu0  ;;  %v11859_v61 = vld [vmem:[%s16358_s7 + $0x1c0] ss:$28 sps:$4 sm:$0xff]   ;;  %v11862_v14 = vld [vmem:[%s16358_s7 + $0x1f8] ss:$28 sps:$4 sm:$0xff]  }
 0x372   :  { %v4297_v3 = vmul.f32 0.70710677, %v4287_v62  ;;  %v10946_v5 = vpop.f32.mrb[27].mxu0  ;;  %v4294_v18 = vmul.f32 0.5, %v4287_v62  ;;  %v11864_v62 = vld [vmem:[%s16358_s7 + $0x1fc] ss:$28 sps:$4 sm:$0xff]  }
 0x373   :  { %v4125_v6 = vpop.f32.mrb[20].mxu1  ;;  %v11865_v1 = vld [vmem:[%s16358_s7 + $0x230] ss:$28 sps:$4 sm:$0xff]   ;;  %v11873_v5 = vld [vmem:[%s16358_s7 + $0x2a4] ss:$28 sps:$4 sm:$0xff]  }
 0x374   :  { %12672 = verf.f32 %v4297_v3  ;;  %v11009_v45 = vadd.f32 %v4125_v6, %v3169_v63  ;;  %v4127_v7 = vpop.f32.mrb[21].mxu1  ;;  %v11867_v63 = vld [vmem:[%s16358_s7 + $0x234] ss:$28 sps:$4 sm:$0xff]   ;;  %v11868_v3 = vld [vmem:[%s16358_s7 + $0x268] ss:$28 sps:$4 sm:$0xff]  }
 0x375   :  { %v11010_v8 = vadd.f32 %v4127_v7, %v3173_v2  ;;  %v4129_v9 = vpop.f32.mrb[22].mxu1  ;;  %v11870_v2 = vld [vmem:[%s16358_s7 + $0x26c] ss:$28 sps:$4 sm:$0xff]   ;;  %v11871_v6 = vld [vmem:[%s16358_s7 + $0x2a0] ss:$28 sps:$4 sm:$0xff]  }
 0x376   :  { %v4295_v12 = vmul.f32 0.70710677, %v11009_v45  ;;  %v4130_v13 = vpop.f32.mrb[23].mxu1  ;;  %v4292_v27 = vmul.f32 0.5, %v11009_v45  ;;  %v11876_v45 = vld [vmem:[%s16358_s7 + $0x2dc] ss:$28 sps:$4 sm:$0xff]  }
 0x377   :  { %v4296_v15 = vmul.f32 0.70710677, %v11010_v8  ;;  %v4293_v34 = vmul.f32 0.5, %v11010_v8  ;;  %v11874_v7 = vld [vmem:[%s16358_s7 + $0x2d8] ss:$28 sps:$4 sm:$0xff]  }
 0x378   :  { %12674 = verf.f32 %v4295_v12  ;;  %v11879_v8 = vld [vmem:[%s16358_s7 + $0x314] ss:$28 sps:$4 sm:$0xff]   ;;  %v11882_v12 = vld [vmem:[%s16358_s7 + $0x34c] ss:$28 sps:$4 sm:$0xff]  }
 0x379   :  { %12676 = verf.f32 %v4296_v15  ;;  %v11877_v9 = vld [vmem:[%s16358_s7 + $0x310] ss:$28 sps:$4 sm:$0xff]   ;;  %v11880_v13 = vld [vmem:[%s16358_s7 + $0x348] ss:$28 sps:$4 sm:$0xff]  }
 0x37a   :  { %v11885_v15 = vld [vmem:[%s16358_s7 + $0x384] ss:$28 sps:$4 sm:$0xff]  }
 0x37e   :  { %v12673_v17 = vpop.eup %12672 }
 0x37f   :  { %v4303_v20 = vadd.f32 1.0, %v12673_v17  ;;  %v11883_v17 = vld [vmem:[%s16358_s7 + $0x380] ss:$28 sps:$4 sm:$0xff]  }
 0x381   :  { %v4306_v21 = vmul.f32 %v4303_v20, %v4294_v18  ;;  %v11888_v18 = vld [vmem:[%s16358_s7 + $0x3bc] ss:$28 sps:$4 sm:$0xff]  }
 0x382   :  { %v12675_v22 = vpop.eup %12674  ;;  %v11886_v20 = vld [vmem:[%s16358_s7 + $0x3b8] ss:$28 sps:$4 sm:$0xff]  }
 0x383   :  { %v12677_v24 = vpop.eup %12676  ;;  %v4309_v26 = vpack.c.bf16 %v4306_v21, %v4306_v21  ;;  %v4301_v28 = vadd.f32 1.0, %v12675_v22  ;;  %v11889_v21 = vld [vmem:[%s16358_s7 + $0x3f0] ss:$28 sps:$4 sm:$0xff]  }
 0x384   :  { %v4302_v35 = vadd.f32 1.0, %v12677_v24  ;;  %v11894_v22 = vld [vmem:[%s16358_s7 + $0x42c] ss:$28 sps:$4 sm:$0xff]   ;;  %v11897_v24 = vld [vmem:[%s16358_s7 + $0x464] ss:$28 sps:$4 sm:$0xff]  }
 0x385   :  { %v4304_v36 = vmul.f32 %v4301_v28, %v4292_v27  ;;  %10952 = vmatmul.mubr.msk.bf16.vlgmr.msra.gmra.mrb[24].mxu1 %vm4461_vm2, %v4309_v26  ;;  %v11895_v26 = vld [vmem:[%s16358_s7 + $0x460] ss:$28 sps:$4 sm:$0xff]   ;;  %v11898_v28 = vld [vmem:[%s16358_s7 + $0x498] ss:$28 sps:$4 sm:$0xff]  }
 0x386   :  { %6828 = vmatpush1.bf16.msra.mxu1 %v11833_v11  ;;  %v4305_v38 = vmul.f32 %v4302_v35, %v4293_v34  ;;  %6859 = vmatprep.mubr.bf16.mxu1 %v12956_v48  ;;  %v11891_v11 = vld [vmem:[%s16358_s7 + $0x3f4] ss:$28 sps:$4 sm:$0xff]   ;;  %v11900_v27 = vld [vmem:[%s16358_s7 + $0x49c] ss:$28 sps:$4 sm:$0xff]  }
 0x387   :  { %6829 = vmatprep.subr.bf16.mxu1 %v11840_v23  ;;  %v4307_v41 = vpack.c.bf16 %v4304_v36, %v4304_v36  ;;  %v11892_v23 = vld [vmem:[%s16358_s7 + $0x428] ss:$28 sps:$4 sm:$0xff]   ;;  %v11903_v34 = vld [vmem:[%s16358_s7 + $0x4d4] ss:$28 sps:$4 sm:$0xff]  }
 0x388   :  { %v4308_v40 = vpack.c.bf16 %v4305_v38, %v4305_v38  ;;  %v11901_v35 = vld [vmem:[%s16358_s7 + $0x4d0] ss:$28 sps:$4 sm:$0xff]   ;;  %v11909_v38 = vld [vmem:[%s16358_s7 + $0x544] ss:$28 sps:$4 sm:$0xff]  }
 0x389   :  { %v11906_v36 = vld [vmem:[%s16358_s7 + $0x50c] ss:$28 sps:$4 sm:$0xff]  }
 0x38a   :  { %6830 = vmatpush1.bf16.msra.mxu1 %v11838_v37  ;;  %4497 = vmatprep.mubr.bf16.mxu0 %v4308_v40  ;;  %v11904_v37 = vld [vmem:[%s16358_s7 + $0x508] ss:$28 sps:$4 sm:$0xff]   ;;  %v11912_v40 = vld [vmem:[%s16358_s7 + $0x57c] ss:$28 sps:$4 sm:$0xff]  }
 0x38b   :  { %4498 = vmatmul.mubr.bf16.vlgmr.msra.gmra.mrb[28].mxu0 %v4307_v41  ;;  %6831 = vmatprep.subr.bf16.mxu1 %v11843_v39  ;;  %v11907_v39 = vld [vmem:[%s16358_s7 + $0x540] ss:$28 sps:$4 sm:$0xff]   ;;  %v11910_v41 = vld [vmem:[%s16358_s7 + $0x578] ss:$28 sps:$4 sm:$0xff]  }
 0x38c   :  { %10963 = vmatprep.mubr.msk.bf16.mxu0 %vm12711_vm1, %v12710_v0 }
 0x38e   :  { %6832 = vmatpush1.bf16.msra.mxu1 %v11841_v42  ;;  %v11915_v42 = vld [vmem:[%s16358_s7 + $0x5b4] ss:$28 sps:$4 sm:$0xff]  }
 0x38f   :  { %6833 = vmatprep.subr.bf16.mxu1 %v11846_v43  ;;  %v11913_v43 = vld [vmem:[%s16358_s7 + $0x5b0] ss:$28 sps:$4 sm:$0xff]  }
 0x392   :  { %6834 = vmatpush1.bf16.msra.mxu1 %v11844_v46  ;;  %v12003_v46 = vld [vmem:[%s16359_s11] sm:$0xff]  }
 0x393   :  { %6835 = vmatprep.subr.bf16.mxu1 %v11849_v47  ;;  %v11918_v47 = vld [vmem:[%s16358_s7 + $0x5ec] ss:$28 sps:$4 sm:$0xff]   ;;  %10956 = vmatpush3.bf16.msra.mxu0 %v12003_v46  ;;  %v11981_v46 = vld [vmem:[%s16358_s7 + $0xa84] ss:$28 sps:$4 sm:$0xff]  }
 0x394   :  { %10957 = vmatprep.subr.bf16.mxu0 %v12710_v0 }
 0x396   :  { %6836 = vmatpush1.bf16.msra.mxu1 %v11847_v52  ;;  %v12007_v52 = vld [vmem:[%s16359_s11 + $0x8] sm:$0xff]  }
 0x397   :  { %6837 = vmatprep.subr.bf16.mxu1 %v11852_v54  ;;  %v11916_v54 = vld [vmem:[%s16358_s7 + $0x5e8] ss:$28 sps:$4 sm:$0xff]   ;;  %10958 = vmatpush3.bf16.msra.mxu0 %v12007_v52  ;;  %v11984_v52 = vld [vmem:[%s16358_s7 + $0x14] ss:$28 sps:$4 sm:$0xff]  }
 0x398   :  { %10959 = vmatprep.subr.bf16.mxu0 %v12710_v0 }
 0x39a   :  { %6838 = vmatpush1.bf16.msra.mxu1 %v11850_v56  ;;  %v11921_v56 = vld [vmem:[%s16358_s7 + $0x624] ss:$28 sps:$4 sm:$0xff]  }
 0x39b   :  { %6839 = vmatprep.subr.bf16.mxu1 %v11855_v58  ;;  %v12011_v58 = vld [vmem:[%s16359_s11 + $0x10] sm:$0xff]  }
 0x39c   :  { %10960 = vmatpush3.bf16.msra.mxu0 %v12011_v58  ;;  %v11985_v58 = vld [vmem:[%s16358_s7 + $0x48] ss:$28 sps:$4 sm:$0xff]  }
 0x39d   :  { %10961 = vmatprep.subr.bf16.mxu0 %v12710_v0 }
 0x39e   :  { %6840 = vmatpush1.bf16.msra.mxu1 %v11853_v59  ;;  %v11919_v59 = vld [vmem:[%s16358_s7 + $0x620] ss:$28 sps:$4 sm:$0xff]  }
 0x39f   :  { %6841 = vmatprep.subr.bf16.mxu1 %v11858_v51  ;;  %v11924_v51 = vld [vmem:[%s16358_s7 + $0x65c] ss:$28 sps:$4 sm:$0xff]  }
 0x3a2   :  { %6842 = vmatpush1.bf16.msra.mxu1 %v11856_v53  ;;  %v12015_v53 = vld [vmem:[%s16359_s11 + $0x18] sm:$0xff]  }
 0x3a3   :  { %6843 = vmatprep.subr.bf16.mxu1 %v11861_v60  ;;  %v11922_v60 = vld [vmem:[%s16358_s7 + $0x658] ss:$28 sps:$4 sm:$0xff]   ;;  %10962 = vmatpush3.bf16.msra.mxu0 %v12015_v53 }
 0x3a4   :  { %v11993_v53 = vld [vmem:[%s16358_s7 + $0xbc] ss:$28 sps:$4 sm:$0xff]  }
 0x3a6   :  { %6844 = vmatpush1.bf16.msra.mxu1 %v11859_v61  ;;  %v11927_v61 = vld [vmem:[%s16358_s7 + $0x694] ss:$28 sps:$4 sm:$0xff]  }
 0x3a7   :  { %6845 = vmatprep.subr.bf16.mxu1 %v11864_v62  ;;  %v12021_v62 = vld [vmem:[%s16358_s7 + $0xc] ss:$28 sps:$4 sm:$0xff]  }
 0x3a8   :  { %6991 = vmatprep.subr.bf16.mxu0 %v12021_v62 }
 0x3aa   :  { %6846 = vmatpush1.bf16.msra.mxu1 %v11862_v14  ;;  %v11925_v14 = vld [vmem:[%s16358_s7 + $0x690] ss:$28 sps:$4 sm:$0xff]  }
 0x3ab   :  { %6847 = vmatprep.subr.bf16.mxu1 %v11867_v63  ;;  %v11930_v63 = vld [vmem:[%s16358_s7 + $0x6cc] ss:$28 sps:$4 sm:$0xff]  }
 0x3ae   :  { %6848 = vmatpush1.bf16.msra.mxu1 %v11865_v1  ;;  %v11928_v1 = vld [vmem:[%s16358_s7 + $0x6c8] ss:$28 sps:$4 sm:$0xff]  }
 0x3af   :  { %6849 = vmatprep.subr.bf16.mxu1 %v11870_v2  ;;  %v11933_v2 = vld [vmem:[%s16358_s7 + $0x704] ss:$28 sps:$4 sm:$0xff]  }
 0x3b2   :  { %6850 = vmatpush1.bf16.msra.mxu1 %v11868_v3  ;;  %v11931_v3 = vld [vmem:[%s16358_s7 + $0x700] ss:$28 sps:$4 sm:$0xff]  }
 0x3b3   :  { %6851 = vmatprep.subr.bf16.mxu1 %v11873_v5  ;;  %v11936_v5 = vld [vmem:[%s16358_s7 + $0x73c] ss:$28 sps:$4 sm:$0xff]  }
 0x3b6   :  { %6852 = vmatpush1.bf16.msra.mxu1 %v11871_v6  ;;  %v11934_v6 = vld [vmem:[%s16358_s7 + $0x738] ss:$28 sps:$4 sm:$0xff]  }
 0x3b7   :  { %6853 = vmatprep.subr.bf16.mxu1 %v11876_v45  ;;  %v11939_v45 = vld [vmem:[%s16358_s7 + $0x774] ss:$28 sps:$4 sm:$0xff]  }
 0x3ba   :  { %6854 = vmatpush1.bf16.msra.mxu1 %v11874_v7  ;;  %v11937_v7 = vld [vmem:[%s16358_s7 + $0x770] ss:$28 sps:$4 sm:$0xff]  }
 0x3bb   :  { %6855 = vmatprep.subr.bf16.mxu1 %v11879_v8  ;;  %v11942_v8 = vld [vmem:[%s16358_s7 + $0x7ac] ss:$28 sps:$4 sm:$0xff]  }
 0x3be   :  { %6856 = vmatpush1.bf16.msra.mxu1 %v11877_v9  ;;  %v11940_v9 = vld [vmem:[%s16358_s7 + $0x7a8] ss:$28 sps:$4 sm:$0xff]  }
 0x3bf   :  { %6857 = vmatprep.subr.bf16.mxu1 %v11882_v12  ;;  %v11945_v12 = vld [vmem:[%s16358_s7 + $0x7e4] ss:$28 sps:$4 sm:$0xff]  }
 0x3c2   :  { %6858 = vmatpush1.bf16.msra.mxu1 %v11880_v13  ;;  %v11943_v13 = vld [vmem:[%s16358_s7 + $0x7e0] ss:$28 sps:$4 sm:$0xff]  }
 0x3c3   :  { %6868 = vmatprep.subr.bf16.mxu1 %v11885_v15  ;;  %v11948_v15 = vld [vmem:[%s16358_s7 + $0x81c] ss:$28 sps:$4 sm:$0xff]  }
 0x3c5   :  { %6860 = vmatmul.mubr.bf16.vlgmr.msra.gmra.mrb[28].mxu1 %v13017_v4 }
 0x3c6   :  { %6869 = vmatpush1.bf16.msra.mxu1 %v11883_v17  ;;  %6900 = vmatprep.mubr.bf16.mxu1 %v13102_v32  ;;  %v11946_v17 = vld [vmem:[%s16358_s7 + $0x818] ss:$28 sps:$4 sm:$0xff]  }
 0x3c7   :  { %6870 = vmatprep.subr.bf16.mxu1 %v11888_v18  ;;  %v11951_v18 = vld [vmem:[%s16358_s7 + $0x854] ss:$28 sps:$4 sm:$0xff]  }
 0x3ca   :  { %6871 = vmatpush1.bf16.msra.mxu1 %v11886_v20  ;;  %v11949_v20 = vld [vmem:[%s16358_s7 + $0x850] ss:$28 sps:$4 sm:$0xff]  }
 0x3cb   :  { %6872 = vmatprep.subr.bf16.mxu1 %v11891_v11  ;;  %v11954_v11 = vld [vmem:[%s16358_s7 + $0x88c] ss:$28 sps:$4 sm:$0xff]  }
 0x3ce   :  { %6873 = vmatpush1.bf16.msra.mxu1 %v11889_v21  ;;  %v11952_v21 = vld [vmem:[%s16358_s7 + $0x888] ss:$28 sps:$4 sm:$0xff]  }
 0x3cf   :  { %6874 = vmatprep.subr.bf16.mxu1 %v11894_v22  ;;  %v11957_v22 = vld [vmem:[%s16358_s7 + $0x8c4] ss:$28 sps:$4 sm:$0xff]  }
 0x3d2   :  { %6875 = vmatpush1.bf16.msra.mxu1 %v11892_v23  ;;  %v11955_v23 = vld [vmem:[%s16358_s7 + $0x8c0] ss:$28 sps:$4 sm:$0xff]  }
 0x3d3   :  { %6876 = vmatprep.subr.bf16.mxu1 %v11897_v24  ;;  %v11960_v24 = vld [vmem:[%s16358_s7 + $0x8fc] ss:$28 sps:$4 sm:$0xff]  }
 0x3d6   :  { %6877 = vmatpush1.bf16.msra.mxu1 %v11895_v26  ;;  %v11958_v26 = vld [vmem:[%s16358_s7 + $0x8f8] ss:$28 sps:$4 sm:$0xff]  }
 0x3d7   :  { %6878 = vmatprep.subr.bf16.mxu1 %v11900_v27  ;;  %v11963_v27 = vld [vmem:[%s16358_s7 + $0x934] ss:$28 sps:$4 sm:$0xff]  }
 0x3da   :  { %6879 = vmatpush1.bf16.msra.mxu1 %v11898_v28  ;;  %v11961_v28 = vld [vmem:[%s16358_s7 + $0x930] ss:$28 sps:$4 sm:$0xff]  }
 0x3db   :  { %6880 = vmatprep.subr.bf16.mxu1 %v11903_v34  ;;  %v11966_v34 = vld [vmem:[%s16358_s7 + $0x96c] ss:$28 sps:$4 sm:$0xff]  }
 0x3de   :  { %6881 = vmatpush1.bf16.msra.mxu1 %v11901_v35  ;;  %v11964_v35 = vld [vmem:[%s16358_s7 + $0x968] ss:$28 sps:$4 sm:$0xff]  }
 0x3df   :  { %6882 = vmatprep.subr.bf16.mxu1 %v11906_v36  ;;  %v11969_v36 = vld [vmem:[%s16358_s7 + $0x9a4] ss:$28 sps:$4 sm:$0xff]  }
 0x3e2   :  { %6883 = vmatpush1.bf16.msra.mxu1 %v11904_v37  ;;  %v11967_v37 = vld [vmem:[%s16358_s7 + $0x9a0] ss:$28 sps:$4 sm:$0xff]  }
 0x3e3   :  { %6884 = vmatprep.subr.bf16.mxu1 %v11909_v38  ;;  %v11972_v38 = vld [vmem:[%s16358_s7 + $0x9dc] ss:$28 sps:$4 sm:$0xff]  }
 0x3e6   :  { %6885 = vmatpush1.bf16.msra.mxu1 %v11907_v39  ;;  %v11970_v39 = vld [vmem:[%s16358_s7 + $0x9d8] ss:$28 sps:$4 sm:$0xff]  }
 0x3e7   :  { %6886 = vmatprep.subr.bf16.mxu1 %v11912_v40  ;;  %v11975_v40 = vld [vmem:[%s16358_s7 + $0xa14] ss:$28 sps:$4 sm:$0xff]  }
 0x3ea   :  { %6887 = vmatpush1.bf16.msra.mxu1 %v11910_v41  ;;  %v11973_v41 = vld [vmem:[%s16358_s7 + $0xa10] ss:$28 sps:$4 sm:$0xff]  }
 0x3eb   :  { %6888 = vmatprep.subr.bf16.mxu1 %v11915_v42  ;;  %v11978_v42 = vld [vmem:[%s16358_s7 + $0xa4c] ss:$28 sps:$4 sm:$0xff]  }
 0x3ee   :  { %6889 = vmatpush1.bf16.msra.mxu1 %v11913_v43  ;;  %v11976_v43 = vld [vmem:[%s16358_s7 + $0xa48] ss:$28 sps:$4 sm:$0xff]  }
 0x3ef   :  { %6890 = vmatprep.subr.bf16.mxu1 %v11918_v47  ;;  %v11979_v47 = vld [vmem:[%s16358_s7 + $0xa80] ss:$28 sps:$4 sm:$0xff]  }
 0x3f2   :  { %6891 = vmatpush1.bf16.msra.mxu1 %v11916_v54  ;;  %v11982_v54 = vld [vmem:[%s16358_s7 + $0x10] ss:$28 sps:$4 sm:$0xff]  }
 0x3f3   :  { %6892 = vmatprep.subr.bf16.mxu1 %v11921_v56  ;;  %v11987_v56 = vld [vmem:[%s16358_s7 + $0x4c] ss:$28 sps:$4 sm:$0xff]  }
 0x3f6   :  { %6893 = vmatpush1.bf16.msra.mxu1 %v11919_v59  ;;  %v11990_v59 = vld [vmem:[%s16358_s7 + $0x84] ss:$28 sps:$4 sm:$0xff]  }
 0x3f7   :  { %6894 = vmatprep.subr.bf16.mxu1 %v11924_v51  ;;  %v11988_v51 = vld [vmem:[%s16358_s7 + $0x80] ss:$28 sps:$4 sm:$0xff]  }
 0x3fa   :  { %6895 = vmatpush1.bf16.msra.mxu1 %v11922_v60 }
 0x3fb   :  { %6896 = vmatprep.subr.bf16.mxu1 %v11927_v61 }
 0x3fe   :  { %6897 = vmatpush1.bf16.msra.mxu1 %v11925_v14  ;;  %v11991_v14 = vld [vmem:[%s16358_s7 + $0xb8] ss:$28 sps:$4 sm:$0xff]  }
 0x3ff   :  { %6898 = vmatprep.subr.bf16.mxu1 %v11930_v63 }
 0x402   :  { %6899 = vmatpush1.bf16.msra.mxu1 %v11928_v1  ;;  %v11996_v1 = vld [vmem:[%s16358_s7 + $0xf4] ss:$28 sps:$4 sm:$0xff]  }
 0x403   :  { %6909 = vmatprep.subr.bf16.mxu1 %v11933_v2 }
 0x405   :  { %6901 = vmatmul.mubr.bf16.vlgmr.msra.gmra.mrb[28].mxu1 %v13223_v10 }
 0x406   :  { %6910 = vmatpush1.bf16.msra.mxu1 %v11931_v3  ;;  %6941 = vmatprep.mubr.bf16.mxu1 %v13240_v16  ;;  %v11994_v3 = vld [vmem:[%s16358_s7 + $0xf0] ss:$28 sps:$4 sm:$0xff]  }
 0x407   :  { %6911 = vmatprep.subr.bf16.mxu1 %v11936_v5  ;;  %v10056_v5 = vld [vmem:[%s16360_s6] ss:$0 sm:$0xff] }
 0x40a   :  { %6912 = vmatpush1.bf16.msra.mxu1 %v11934_v6 }
 0x40b   :  { %6913 = vmatprep.subr.bf16.mxu1 %v11939_v45  ;;  %v11999_v45 = vld [vmem:[%s16358_s7 + $0x12c] ss:$28 sps:$4 sm:$0xff]  }
 0x40e   :  { %6914 = vmatpush1.bf16.msra.mxu1 %v11937_v7 }
 0x40f   :  { %6915 = vmatprep.subr.bf16.mxu1 %v11942_v8 }
 0x412   :  { %6916 = vmatpush1.bf16.msra.mxu1 %v11940_v9 }
 0x413   :  { %6917 = vmatprep.subr.bf16.mxu1 %v11945_v12 }
 0x416   :  { %6918 = vmatpush1.bf16.msra.mxu1 %v11943_v13  ;;  %v11997_v13 = vld [vmem:[%s16358_s7 + $0x128] ss:$28 sps:$4 sm:$0xff]  }
 0x417   :  { %6919 = vmatprep.subr.bf16.mxu1 %v11948_v15  ;;  %v12002_v15 = vld [vmem:[%s16358_s7 + $0x164] ss:$28 sps:$4 sm:$0xff]  }
 0x41a   :  { %6920 = vmatpush1.bf16.msra.mxu1 %v11946_v17 }
 0x41b   :  { %6921 = vmatprep.subr.bf16.mxu1 %v11951_v18 }
 0x41e   :  { %6922 = vmatpush1.bf16.msra.mxu1 %v11949_v20  ;;  %v12000_v20 = vld [vmem:[%s16358_s7 + $0x160] ss:$28 sps:$4 sm:$0xff]  }
 0x41f   :  { %6923 = vmatprep.subr.bf16.mxu1 %v11954_v11  ;;  %v12006_v11 = vld [vmem:[%s16358_s7 + $0x19c] ss:$28 sps:$4 sm:$0xff]  }
 0x422   :  { %6924 = vmatpush1.bf16.msra.mxu1 %v11952_v21  ;;  %v12004_v21 = vld [vmem:[%s16358_s7 + $0x198] ss:$28 sps:$4 sm:$0xff]  }
 0x423   :  { %6925 = vmatprep.subr.bf16.mxu1 %v11957_v22  ;;  %v12010_v22 = vld [vmem:[%s16358_s7 + $0x1d4] ss:$28 sps:$4 sm:$0xff]  }
 0x426   :  { %6926 = vmatpush1.bf16.msra.mxu1 %v11955_v23  ;;  %v12008_v23 = vld [vmem:[%s16358_s7 + $0x1d0] ss:$28 sps:$4 sm:$0xff]  }
 0x427   :  { %6927 = vmatprep.subr.bf16.mxu1 %v11960_v24  ;;  %v12014_v24 = vld [vmem:[%s16358_s7 + $0x20c] ss:$28 sps:$4 sm:$0xff]  }
 0x42a   :  { %6928 = vmatpush1.bf16.msra.mxu1 %v11958_v26 }
 0x42b   :  { %6929 = vmatprep.subr.bf16.mxu1 %v11963_v27  ;;  %v12012_v27 = vld [vmem:[%s16358_s7 + $0x208] ss:$28 sps:$4 sm:$0xff]  }
 0x42e   :  { %6930 = vmatpush1.bf16.msra.mxu1 %v11961_v28 }
 0x42f   :  { %6931 = vmatprep.subr.bf16.mxu1 %v11966_v34 }
 0x432   :  { %6932 = vmatpush1.bf16.msra.mxu1 %v11964_v35  ;;  %v12018_v35 = vld [vmem:[%s16358_s7 + $0x244] ss:$28 sps:$4 sm:$0xff]  }
 0x433   :  { %6933 = vmatprep.subr.bf16.mxu1 %v11969_v36 }
 0x436   :  { %6934 = vmatpush1.bf16.msra.mxu1 %v11967_v37  ;;  %v12016_v37 = vld [vmem:[%s16358_s7 + $0x240] ss:$28 sps:$4 sm:$0xff]  }
 0x437   :  { %6935 = vmatprep.subr.bf16.mxu1 %v11972_v38  ;;  %v12019_v38 = vld [vmem:[%s16358_s7 + $0x8] ss:$28 sps:$4 sm:$0xff]  }
 0x43a   :  { %6936 = vmatpush1.bf16.msra.mxu1 %v11970_v39 }
 0x43b   :  { %6937 = vmatprep.subr.bf16.mxu1 %v11975_v40  ;;  %v12024_v40 = vld [vmem:[%s16358_s7 + $0x27c] ss:$28 sps:$4 sm:$0xff]  }
 0x43e   :  { %6938 = vmatpush1.bf16.msra.mxu1 %v11973_v41  ;;  %v12027_v41 = vld [vmem:[%s16358_s7 + $0x44] ss:$28 sps:$4 sm:$0xff]  }
 0x43f   :  { %6939 = vmatprep.subr.bf16.mxu1 %v11978_v42  ;;  %v12022_v42 = vld [vmem:[%s16358_s7 + $0x278] ss:$28 sps:$4 sm:$0xff]  }
 0x442   :  { %6940 = vmatpush1.bf16.msra.mxu1 %v11976_v43  ;;  %v12025_v43 = vld [vmem:[%s16358_s7 + $0x40] ss:$28 sps:$4 sm:$0xff]  }
 0x443   :  { %6950 = vmatprep.subr.bf16.mxu1 %v11981_v46  ;;  %v12030_v46 = vld [vmem:[%s16358_s7 + $0x2b4] ss:$28 sps:$4 sm:$0xff]  }
 0x445   :  { %6942 = vmatmul.mubr.bf16.vlgmr.msra.gmra.mrb[28].mxu1 %v13429_v19 }
 0x446   :  { %6951 = vmatpush1.bf16.msra.mxu1 %v11979_v47  ;;  %6982 = vmatprep.mubr.bf16.mxu1 %v12709_v25  ;;  %v12033_v47 = vld [vmem:[%s16358_s7 + $0x7c] ss:$28 sps:$4 sm:$0xff]  }
 0x447   :  { %7155 = vmatprep.subr.bf16.mxu1 %v11984_v52  ;;  %v12028_v52 = vld [vmem:[%s16358_s7 + $0x2b0] ss:$28 sps:$4 sm:$0xff]  }
 0x451   :  { %10425 = vmatmul.mubr.msk.bf16.vlgmr.msra.gmra.mrb[28].mxu1 %vm2270_vm0, %v13462_v30 }
 0x452   :  { %7156 = vmatpush1.bf16.msra.mxu1 %v11982_v54  ;;  %7187 = vmatprep.mubr.bf16.mxu1 %v12956_v48  ;;  %v12031_v54 = vld [vmem:[%s16358_s7 + $0x78] ss:$28 sps:$4 sm:$0xff]  }
 0x453   :  { %7157 = vmatprep.subr.bf16.mxu1 %v11987_v56  ;;  %v12036_v56 = vld [vmem:[%s16358_s7 + $0x2ec] ss:$28 sps:$4 sm:$0xff]  }
 0x456   :  { %7158 = vmatpush1.bf16.msra.mxu1 %v11985_v58  ;;  %v12039_v58 = vld [vmem:[%s16358_s7 + $0xb4] ss:$28 sps:$4 sm:$0xff]  }
 0x457   :  { %7159 = vmatprep.subr.bf16.mxu1 %v11990_v59  ;;  %v12034_v59 = vld [vmem:[%s16358_s7 + $0x2e8] ss:$28 sps:$4 sm:$0xff]  }
 0x458   :  { %v4539_v60 = vpop.f32.mrb[24].mxu1 }
 0x459   :  { %v10953_v61 = vpop.f32.mrb[25].mxu1 }
 0x45a   :  { %7160 = vmatpush1.bf16.msra.mxu1 %v11988_v51  ;;  %v4542_v62 = vpop.f32.mrb[26].mxu1  ;;  %v12037_v51 = vld [vmem:[%s16358_s7 + $0xb0] ss:$28 sps:$4 sm:$0xff]   ;;  %v12040_v61 = vld [vmem:[%s16358_s7 + $0x320] ss:$28 sps:$4 sm:$0xff]  }
 0x45b   :  { %v10954_v63 = vpop.f32.mrb[27].mxu1  ;;  %7161 = vmatprep.subr.bf16.mxu1 %v11993_v53  ;;  %v12042_v53 = vld [vmem:[%s16358_s7 + $0x324] ss:$28 sps:$4 sm:$0xff]  }
 0x45c   :  { %v12043_v62 = vld [vmem:[%s16358_s7 + $0xe8] ss:$28 sps:$4 sm:$0xff]  }
 0x45d   :  { %v12051_v63 = vld [vmem:[%s16358_s7 + $0x124] ss:$28 sps:$4 sm:$0xff]  }
 0x45e   :  { %7162 = vmatpush1.bf16.msra.mxu1 %v11991_v14  ;;  %v10819_v2 = vpop.f32.mrb[28].mxu0  ;;  %v12048_v14 = vld [vmem:[%s16358_s7 + $0x35c] ss:$28 sps:$4 sm:$0xff]  }
 0x45f   :  { %v10820_v6 = vpop.f32.mrb[29].mxu0  ;;  %7163 = vmatprep.subr.bf16.mxu1 %v11996_v1  ;;  %v12046_v1 = vld [vmem:[%s16358_s7 + $0x358] ss:$28 sps:$4 sm:$0xff]  }
 0x460   :  { %v10821_v7 = vadd.f32 %v10820_v6, %v10819_v2  ;;  %v10822_v8 = vpop.f32.mrb[30].mxu0  ;;  %v12049_v2 = vld [vmem:[%s16358_s7 + $0x120] ss:$28 sps:$4 sm:$0xff]   ;;  %v12052_v6 = vld [vmem:[%s16358_s7 + $0x390] ss:$28 sps:$4 sm:$0xff]  }
 0x461   :  { %v10823_v9 = vpop.f32.mrb[31].mxu0  ;;  %v12063_v8 = vld [vmem:[%s16358_s7 + $0x194] ss:$28 sps:$4 sm:$0xff]  }
 0x462   :  { %v4500_v12 = vadd.f32 %v10821_v7, %v10056_v5  ;;  %7164 = vmatpush1.bf16.msra.mxu1 %v11994_v3  ;;  %v12054_v3 = vld [vmem:[%s16358_s7 + $0x394] ss:$28 sps:$4 sm:$0xff]   ;;  %v12057_v5 = vld [vmem:[%s16358_s7 + $0x15c] ss:$28 sps:$4 sm:$0xff]   ;;  %v12060_v7 = vld [vmem:[%s16358_s7 + $0x3cc] ss:$28 sps:$4 sm:$0xff]  }
 0x463   :  { %7165 = vmatprep.subr.bf16.mxu1 %v11999_v45  ;;  %v12055_v45 = vld [vmem:[%s16358_s7 + $0x158] ss:$28 sps:$4 sm:$0xff]   ;;  %v12058_v9 = vld [vmem:[%s16358_s7 + $0x3c8] ss:$28 sps:$4 sm:$0xff]  }
 0x464   :  { %v4540_v17 = vadd.f32 %v4539_v60, %v4500_v12  ;;  %v12045_v60 = vld [vmem:[%s16358_s7 + $0xec] ss:$28 sps:$4 sm:$0xff]  }
 0x465   :  { %v12061_v12 = vld [vmem:[%s16358_s7 + $0x190] ss:$28 sps:$4 sm:$0xff]  }
 0x466   :  { %v4546_v18 = vmul.f32 0.70710677, %v4540_v17  ;;  %7166 = vmatpush1.bf16.msra.mxu1 %v11997_v13  ;;  %v4545_v28 = vmul.f32 0.5, %v4540_v17  ;;  %v12066_v13 = vld [vmem:[%s16358_s7 + $0x404] ss:$28 sps:$4 sm:$0xff]  }
 0x467   :  { %7167 = vmatprep.subr.bf16.mxu1 %v12002_v15  ;;  %v12069_v15 = vld [vmem:[%s16358_s7 + $0x1cc] ss:$28 sps:$4 sm:$0xff]   ;;  %v12064_v17 = vld [vmem:[%s16358_s7 + $0x400] ss:$28 sps:$4 sm:$0xff]  }
 0x468   :  { %12678 = verf.f32 %v4546_v18  ;;  %v12067_v18 = vld [vmem:[%s16358_s7 + $0x1c8] ss:$28 sps:$4 sm:$0xff]  }
 0x46a   :  { %7168 = vmatpush1.bf16.msra.mxu1 %v12000_v20  ;;  %v12072_v20 = vld [vmem:[%s16358_s7 + $0x43c] ss:$28 sps:$4 sm:$0xff]  }
 0x46b   :  { %7169 = vmatprep.subr.bf16.mxu1 %v12006_v11  ;;  %v12075_v11 = vld [vmem:[%s16358_s7 + $0x204] ss:$28 sps:$4 sm:$0xff]  }
 0x46e   :  { %7170 = vmatpush1.bf16.msra.mxu1 %v12004_v21  ;;  %v12070_v21 = vld [vmem:[%s16358_s7 + $0x438] ss:$28 sps:$4 sm:$0xff]  }
 0x46f   :  { %7171 = vmatprep.subr.bf16.mxu1 %v12010_v22  ;;  %v12073_v22 = vld [vmem:[%s16358_s7 + $0x200] ss:$28 sps:$4 sm:$0xff]  }
 0x472   :  { %v12679_v26 = vpop.eup %12678  ;;  %7172 = vmatpush1.bf16.msra.mxu1 %v12008_v23  ;;  %v12078_v23 = vld [vmem:[%s16358_s7 + $0x474] ss:$28 sps:$4 sm:$0xff]  }
 0x473   :  { %v4548_v34 = vadd.f32 1.0, %v12679_v26  ;;  %7173 = vmatprep.subr.bf16.mxu1 %v12014_v24  ;;  %v12081_v24 = vld [vmem:[%s16358_s7 + $0x23c] ss:$28 sps:$4 sm:$0xff]   ;;  %v12076_v26 = vld [vmem:[%s16358_s7 + $0x470] ss:$28 sps:$4 sm:$0xff]  }
 0x475   :  { %v4549_v36 = vmul.f32 %v4548_v34, %v4545_v28  ;;  %v12084_v28 = vld [vmem:[%s16358_s7 + $0x4ac] ss:$28 sps:$4 sm:$0xff]   ;;  %v12087_v34 = vld [vmem:[%s16358_s7 + $0x274] ss:$28 sps:$4 sm:$0xff]  }
 0x476   :  { %7174 = vmatpush1.bf16.msra.mxu1 %v12012_v27  ;;  %v12079_v27 = vld [vmem:[%s16358_s7 + $0x238] ss:$28 sps:$4 sm:$0xff]  }
 0x477   :  { %v4550_v39 = vpack.c.bf16 %v4549_v36, %v4549_v36  ;;  %7175 = vmatprep.subr.bf16.mxu1 %v12018_v35  ;;  %v12082_v35 = vld [vmem:[%s16358_s7 + $0x4a8] ss:$28 sps:$4 sm:$0xff]   ;;  %v12085_v36 = vld [vmem:[%s16358_s7 + $0x270] ss:$28 sps:$4 sm:$0xff]  }
 0x479   :  { %10964 = vmatmul.mubr.msk.bf16.vlgmr.msra.gmra.mrb[32].mxu0 %vm4590_vm3, %v4550_v39  ;;  %v12088_v39 = vld [vmem:[%s16358_s7 + $0x4e0] ss:$28 sps:$4 sm:$0xff]  }
 0x47a   :  { %7176 = vmatpush1.bf16.msra.mxu1 %v12016_v37  ;;  %6992 = vmatpush1.bf16.msra.mxu0 %v12019_v38  ;;  %v12090_v37 = vld [vmem:[%s16358_s7 + $0x4e4] ss:$28 sps:$4 sm:$0xff]   ;;  %v12093_v38 = vld [vmem:[%s16358_s7 + $0x2ac] ss:$28 sps:$4 sm:$0xff]  }
 0x47b   :  { %7177 = vmatprep.subr.bf16.mxu1 %v12024_v40  ;;  %6993 = vmatprep.subr.bf16.mxu0 %v12027_v41  ;;  %v12091_v40 = vld [vmem:[%s16358_s7 + $0x2a8] ss:$28 sps:$4 sm:$0xff]   ;;  %v12096_v41 = vld [vmem:[%s16358_s7 + $0x51c] ss:$28 sps:$4 sm:$0xff]  }
 0x47c   :  { %7023 = vmatprep.mubr.bf16.mxu0 %v12956_v48 }
 0x47e   :  { %7178 = vmatpush1.bf16.msra.mxu1 %v12022_v42  ;;  %6994 = vmatpush1.bf16.msra.mxu0 %v12025_v43  ;;  %v12099_v42 = vld [vmem:[%s16358_s7 + $0x2e4] ss:$28 sps:$4 sm:$0xff]   ;;  %v12094_v43 = vld [vmem:[%s16358_s7 + $0x518] ss:$28 sps:$4 sm:$0xff]  }
 0x47f   :  { %7179 = vmatprep.subr.bf16.mxu1 %v12030_v46  ;;  %6995 = vmatprep.subr.bf16.mxu0 %v12033_v47  ;;  %v12097_v46 = vld [vmem:[%s16358_s7 + $0x2e0] ss:$28 sps:$4 sm:$0xff]   ;;  %v12102_v47 = vld [vmem:[%s16358_s7 + $0x554] ss:$28 sps:$4 sm:$0xff]  }
 0x482   :  { %7180 = vmatpush1.bf16.msra.mxu1 %v12028_v52  ;;  %6996 = vmatpush1.bf16.msra.mxu0 %v12031_v54  ;;  %v12105_v52 = vld [vmem:[%s16358_s7 + $0x31c] ss:$28 sps:$4 sm:$0xff]   ;;  %v12100_v54 = vld [vmem:[%s16358_s7 + $0x550] ss:$28 sps:$4 sm:$0xff]  }
 0x483   :  { %7181 = vmatprep.subr.bf16.mxu1 %v12036_v56  ;;  %6997 = vmatprep.subr.bf16.mxu0 %v12039_v58  ;;  %v12103_v56 = vld [vmem:[%s16358_s7 + $0x318] ss:$28 sps:$4 sm:$0xff]   ;;  %v12108_v58 = vld [vmem:[%s16358_s7 + $0x58c] ss:$28 sps:$4 sm:$0xff]  }
 0x486   :  { %7182 = vmatpush1.bf16.msra.mxu1 %v12034_v59  ;;  %6998 = vmatpush1.bf16.msra.mxu0 %v12037_v51  ;;  %v12111_v59 = vld [vmem:[%s16358_s7 + $0x354] ss:$28 sps:$4 sm:$0xff]   ;;  %v12106_v51 = vld [vmem:[%s16358_s7 + $0x588] ss:$28 sps:$4 sm:$0xff]  }
 0x487   :  { %7183 = vmatprep.subr.bf16.mxu1 %v12042_v53  ;;  %6999 = vmatprep.subr.bf16.mxu0 %v12045_v60  ;;  %v12109_v53 = vld [vmem:[%s16358_s7 + $0x350] ss:$28 sps:$4 sm:$0xff]   ;;  %v12114_v60 = vld [vmem:[%s16358_s7 + $0x5c4] ss:$28 sps:$4 sm:$0xff]  }
 0x48a   :  { %7184 = vmatpush1.bf16.msra.mxu1 %v12040_v61  ;;  %7000 = vmatpush1.bf16.msra.mxu0 %v12043_v62  ;;  %v12117_v61 = vld [vmem:[%s16358_s7 + $0x38c] ss:$28 sps:$4 sm:$0xff]   ;;  %v12112_v62 = vld [vmem:[%s16358_s7 + $0x5c0] ss:$28 sps:$4 sm:$0xff]  }
 0x48b   :  { %7185 = vmatprep.subr.bf16.mxu1 %v12048_v14  ;;  %7001 = vmatprep.subr.bf16.mxu0 %v12051_v63  ;;  %v12115_v14 = vld [vmem:[%s16358_s7 + $0x388] ss:$28 sps:$4 sm:$0xff]   ;;  %v12120_v63 = vld [vmem:[%s16358_s7 + $0x5fc] ss:$28 sps:$4 sm:$0xff]  }
 0x48e   :  { %7186 = vmatpush1.bf16.msra.mxu1 %v12046_v1  ;;  %7002 = vmatpush1.bf16.msra.mxu0 %v12049_v2  ;;  %v12123_v1 = vld [vmem:[%s16358_s7 + $0x3c4] ss:$28 sps:$4 sm:$0xff]   ;;  %v12118_v2 = vld [vmem:[%s16358_s7 + $0x5f8] ss:$28 sps:$4 sm:$0xff]  }
 0x48f   :  { %7196 = vmatprep.subr.bf16.mxu1 %v12054_v3  ;;  %7003 = vmatprep.subr.bf16.mxu0 %v12057_v5  ;;  %v12121_v3 = vld [vmem:[%s16358_s7 + $0x3c0] ss:$28 sps:$4 sm:$0xff]   ;;  %v12126_v5 = vld [vmem:[%s16358_s7 + $0x634] ss:$28 sps:$4 sm:$0xff]  }
 0x491   :  { %7188 = vmatmul.mubr.bf16.vlgmr.msra.gmra.mrb[32].mxu1 %v13017_v4 }
 0x492   :  { %7197 = vmatpush1.bf16.msra.mxu1 %v12052_v6  ;;  %7004 = vmatpush1.bf16.msra.mxu0 %v12055_v45  ;;  %v12129_v6 = vld [vmem:[%s16358_s7 + $0x3fc] ss:$28 sps:$4 sm:$0xff]   ;;  %v12124_v45 = vld [vmem:[%s16358_s7 + $0x630] ss:$28 sps:$4 sm:$0xff]  }
 0x493   :  { %7198 = vmatprep.subr.bf16.mxu1 %v12060_v7  ;;  %7005 = vmatprep.subr.bf16.mxu0 %v12063_v8  ;;  %v12127_v7 = vld [vmem:[%s16358_s7 + $0x3f8] ss:$28 sps:$4 sm:$0xff]   ;;  %v12132_v8 = vld [vmem:[%s16358_s7 + $0x66c] ss:$28 sps:$4 sm:$0xff]  }
 0x494   :  { %7228 = vmatprep.mubr.bf16.mxu1 %v13102_v32 }
 0x496   :  { %7199 = vmatpush1.bf16.msra.mxu1 %v12058_v9  ;;  %7006 = vmatpush1.bf16.msra.mxu0 %v12061_v12  ;;  %v12135_v9 = vld [vmem:[%s16358_s7 + $0x434] ss:$28 sps:$4 sm:$0xff]   ;;  %v12130_v12 = vld [vmem:[%s16358_s7 + $0x668] ss:$28 sps:$4 sm:$0xff]  }
 0x497   :  { %7200 = vmatprep.subr.bf16.mxu1 %v12066_v13  ;;  %7007 = vmatprep.subr.bf16.mxu0 %v12069_v15  ;;  %v12133_v13 = vld [vmem:[%s16358_s7 + $0x430] ss:$28 sps:$4 sm:$0xff]   ;;  %v12138_v15 = vld [vmem:[%s16358_s7 + $0x6a4] ss:$28 sps:$4 sm:$0xff]  }
 0x49a   :  { %7201 = vmatpush1.bf16.msra.mxu1 %v12064_v17  ;;  %7008 = vmatpush1.bf16.msra.mxu0 %v12067_v18  ;;  %v12141_v17 = vld [vmem:[%s16358_s7 + $0x46c] ss:$28 sps:$4 sm:$0xff]   ;;  %v12136_v18 = vld [vmem:[%s16358_s7 + $0x6a0] ss:$28 sps:$4 sm:$0xff]  }
 0x49b   :  { %7202 = vmatprep.subr.bf16.mxu1 %v12072_v20  ;;  %7009 = vmatprep.subr.bf16.mxu0 %v12075_v11  ;;  %v12139_v20 = vld [vmem:[%s16358_s7 + $0x468] ss:$28 sps:$4 sm:$0xff]   ;;  %v12144_v11 = vld [vmem:[%s16358_s7 + $0x6dc] ss:$28 sps:$4 sm:$0xff]  }
 0x49e   :  { %7203 = vmatpush1.bf16.msra.mxu1 %v12070_v21  ;;  %7010 = vmatpush1.bf16.msra.mxu0 %v12073_v22  ;;  %v12147_v21 = vld [vmem:[%s16358_s7 + $0x4a4] ss:$28 sps:$4 sm:$0xff]   ;;  %v12142_v22 = vld [vmem:[%s16358_s7 + $0x6d8] ss:$28 sps:$4 sm:$0xff]  }
 0x49f   :  { %7204 = vmatprep.subr.bf16.mxu1 %v12078_v23  ;;  %7011 = vmatprep.subr.bf16.mxu0 %v12081_v24  ;;  %v12145_v23 = vld [vmem:[%s16358_s7 + $0x4a0] ss:$28 sps:$4 sm:$0xff]   ;;  %v12150_v24 = vld [vmem:[%s16358_s7 + $0x714] ss:$28 sps:$4 sm:$0xff]  }
 0x4a2   :  { %7205 = vmatpush1.bf16.msra.mxu1 %v12076_v26  ;;  %7012 = vmatpush1.bf16.msra.mxu0 %v12079_v27  ;;  %v12153_v26 = vld [vmem:[%s16358_s7 + $0x4dc] ss:$28 sps:$4 sm:$0xff]   ;;  %v12148_v27 = vld [vmem:[%s16358_s7 + $0x710] ss:$28 sps:$4 sm:$0xff]  }
 0x4a3   :  { %7206 = vmatprep.subr.bf16.mxu1 %v12084_v28  ;;  %7013 = vmatprep.subr.bf16.mxu0 %v12087_v34  ;;  %v12151_v28 = vld [vmem:[%s16358_s7 + $0x4d8] ss:$28 sps:$4 sm:$0xff]   ;;  %v12156_v34 = vld [vmem:[%s16358_s7 + $0x74c] ss:$28 sps:$4 sm:$0xff]  }
 0x4a6   :  { %7207 = vmatpush1.bf16.msra.mxu1 %v12082_v35  ;;  %7014 = vmatpush1.bf16.msra.mxu0 %v12085_v36  ;;  %v12159_v35 = vld [vmem:[%s16358_s7 + $0x514] ss:$28 sps:$4 sm:$0xff]   ;;  %v12154_v36 = vld [vmem:[%s16358_s7 + $0x748] ss:$28 sps:$4 sm:$0xff]  }
 0x4a7   :  { %7208 = vmatprep.subr.bf16.mxu1 %v12090_v37  ;;  %7015 = vmatprep.subr.bf16.mxu0 %v12093_v38  ;;  %v12157_v37 = vld [vmem:[%s16358_s7 + $0x510] ss:$28 sps:$4 sm:$0xff]   ;;  %v12162_v38 = vld [vmem:[%s16358_s7 + $0x784] ss:$28 sps:$4 sm:$0xff]  }
 0x4aa   :  { %7209 = vmatpush1.bf16.msra.mxu1 %v12088_v39  ;;  %7016 = vmatpush1.bf16.msra.mxu0 %v12091_v40  ;;  %v12165_v39 = vld [vmem:[%s16358_s7 + $0x54c] ss:$28 sps:$4 sm:$0xff]   ;;  %v12160_v40 = vld [vmem:[%s16358_s7 + $0x780] ss:$28 sps:$4 sm:$0xff]  }
 0x4ab   :  { %7210 = vmatprep.subr.bf16.mxu1 %v12096_v41  ;;  %7017 = vmatprep.subr.bf16.mxu0 %v12099_v42  ;;  %v12163_v41 = vld [vmem:[%s16358_s7 + $0x548] ss:$28 sps:$4 sm:$0xff]   ;;  %v12168_v42 = vld [vmem:[%s16358_s7 + $0x7bc] ss:$28 sps:$4 sm:$0xff]  }
 0x4ae   :  { %7211 = vmatpush1.bf16.msra.mxu1 %v12094_v43  ;;  %7018 = vmatpush1.bf16.msra.mxu0 %v12097_v46  ;;  %v12171_v43 = vld [vmem:[%s16358_s7 + $0x584] ss:$28 sps:$4 sm:$0xff]   ;;  %v12166_v46 = vld [vmem:[%s16358_s7 + $0x7b8] ss:$28 sps:$4 sm:$0xff]  }
 0x4af   :  { %7212 = vmatprep.subr.bf16.mxu1 %v12102_v47  ;;  %7019 = vmatprep.subr.bf16.mxu0 %v12105_v52  ;;  %v12169_v47 = vld [vmem:[%s16358_s7 + $0x580] ss:$28 sps:$4 sm:$0xff]   ;;  %v12174_v52 = vld [vmem:[%s16358_s7 + $0x7f4] ss:$28 sps:$4 sm:$0xff]  }
 0x4b2   :  { %7213 = vmatpush1.bf16.msra.mxu1 %v12100_v54  ;;  %7020 = vmatpush1.bf16.msra.mxu0 %v12103_v56  ;;  %v12177_v54 = vld [vmem:[%s16358_s7 + $0x5bc] ss:$28 sps:$4 sm:$0xff]   ;;  %v12172_v56 = vld [vmem:[%s16358_s7 + $0x7f0] ss:$28 sps:$4 sm:$0xff]  }
 0x4b3   :  { %7214 = vmatprep.subr.bf16.mxu1 %v12108_v58  ;;  %7021 = vmatprep.subr.bf16.mxu0 %v12111_v59  ;;  %v12175_v58 = vld [vmem:[%s16358_s7 + $0x5b8] ss:$28 sps:$4 sm:$0xff]   ;;  %v12180_v59 = vld [vmem:[%s16358_s7 + $0x82c] ss:$28 sps:$4 sm:$0xff]  }
 0x4b6   :  { %7215 = vmatpush1.bf16.msra.mxu1 %v12106_v51  ;;  %7022 = vmatpush1.bf16.msra.mxu0 %v12109_v53  ;;  %v12183_v51 = vld [vmem:[%s16358_s7 + $0x5f4] ss:$28 sps:$4 sm:$0xff]   ;;  %v12178_v53 = vld [vmem:[%s16358_s7 + $0x828] ss:$28 sps:$4 sm:$0xff]  }
 0x4b7   :  { %7216 = vmatprep.subr.bf16.mxu1 %v12114_v60  ;;  %7032 = vmatprep.subr.bf16.mxu0 %v12117_v61  ;;  %v12181_v60 = vld [vmem:[%s16358_s7 + $0x5f0] ss:$28 sps:$4 sm:$0xff]   ;;  %v12186_v61 = vld [vmem:[%s16358_s7 + $0x864] ss:$28 sps:$4 sm:$0xff]  }
 0x4b9   :  { %7024 = vmatmul.mubr.bf16.vlgmr.msra.gmra.mrb[36].mxu0 %v13017_v4 }
 0x4ba   :  { %7217 = vmatpush1.bf16.msra.mxu1 %v12112_v62  ;;  %7033 = vmatpush1.bf16.msra.mxu0 %v12115_v14  ;;  %v12189_v62 = vld [vmem:[%s16358_s7 + $0x62c] ss:$28 sps:$4 sm:$0xff]   ;;  %v12184_v14 = vld [vmem:[%s16358_s7 + $0x860] ss:$28 sps:$4 sm:$0xff]  }
 0x4bb   :  { %7218 = vmatprep.subr.bf16.mxu1 %v12120_v63  ;;  %7034 = vmatprep.subr.bf16.mxu0 %v12123_v1  ;;  %v12187_v63 = vld [vmem:[%s16358_s7 + $0x628] ss:$28 sps:$4 sm:$0xff]   ;;  %v12192_v1 = vld [vmem:[%s16358_s7 + $0x89c] ss:$28 sps:$4 sm:$0xff]  }
 0x4bc   :  { %7064 = vmatprep.mubr.bf16.mxu0 %v13102_v32 }
 0x4be   :  { %7219 = vmatpush1.bf16.msra.mxu1 %v12118_v2  ;;  %7035 = vmatpush1.bf16.msra.mxu0 %v12121_v3  ;;  %v12195_v2 = vld [vmem:[%s16358_s7 + $0x664] ss:$28 sps:$4 sm:$0xff]   ;;  %v12190_v3 = vld [vmem:[%s16358_s7 + $0x898] ss:$28 sps:$4 sm:$0xff]  }
 0x4bf   :  { %7220 = vmatprep.subr.bf16.mxu1 %v12126_v5  ;;  %7036 = vmatprep.subr.bf16.mxu0 %v12129_v6  ;;  %v12193_v5 = vld [vmem:[%s16358_s7 + $0x660] ss:$28 sps:$4 sm:$0xff]   ;;  %v12198_v6 = vld [vmem:[%s16358_s7 + $0x8d4] ss:$28 sps:$4 sm:$0xff]  }
 0x4c2   :  { %7221 = vmatpush1.bf16.msra.mxu1 %v12124_v45  ;;  %7037 = vmatpush1.bf16.msra.mxu0 %v12127_v7  ;;  %v12201_v45 = vld [vmem:[%s16358_s7 + $0x69c] ss:$28 sps:$4 sm:$0xff]   ;;  %v12196_v7 = vld [vmem:[%s16358_s7 + $0x8d0] ss:$28 sps:$4 sm:$0xff]  }
 0x4c3   :  { %7222 = vmatprep.subr.bf16.mxu1 %v12132_v8  ;;  %7038 = vmatprep.subr.bf16.mxu0 %v12135_v9  ;;  %v12199_v8 = vld [vmem:[%s16358_s7 + $0x698] ss:$28 sps:$4 sm:$0xff]   ;;  %v12204_v9 = vld [vmem:[%s16358_s7 + $0x90c] ss:$28 sps:$4 sm:$0xff]  }
 0x4c6   :  { %7223 = vmatpush1.bf16.msra.mxu1 %v12130_v12  ;;  %7039 = vmatpush1.bf16.msra.mxu0 %v12133_v13  ;;  %v12207_v12 = vld [vmem:[%s16358_s7 + $0x6d4] ss:$28 sps:$4 sm:$0xff]   ;;  %v12202_v13 = vld [vmem:[%s16358_s7 + $0x908] ss:$28 sps:$4 sm:$0xff]  }
 0x4c7   :  { %7224 = vmatprep.subr.bf16.mxu1 %v12138_v15  ;;  %7040 = vmatprep.subr.bf16.mxu0 %v12141_v17  ;;  %v12205_v15 = vld [vmem:[%s16358_s7 + $0x6d0] ss:$28 sps:$4 sm:$0xff]   ;;  %v12210_v17 = vld [vmem:[%s16358_s7 + $0x944] ss:$28 sps:$4 sm:$0xff]  }
 0x4ca   :  { %7225 = vmatpush1.bf16.msra.mxu1 %v12136_v18  ;;  %7041 = vmatpush1.bf16.msra.mxu0 %v12139_v20  ;;  %v12213_v18 = vld [vmem:[%s16358_s7 + $0x70c] ss:$28 sps:$4 sm:$0xff]   ;;  %v12208_v20 = vld [vmem:[%s16358_s7 + $0x940] ss:$28 sps:$4 sm:$0xff]  }
 0x4cb   :  { %7226 = vmatprep.subr.bf16.mxu1 %v12144_v11  ;;  %7042 = vmatprep.subr.bf16.mxu0 %v12147_v21  ;;  %v12211_v11 = vld [vmem:[%s16358_s7 + $0x708] ss:$28 sps:$4 sm:$0xff]   ;;  %v12216_v21 = vld [vmem:[%s16358_s7 + $0x97c] ss:$28 sps:$4 sm:$0xff]  }
 0x4ce   :  { %7227 = vmatpush1.bf16.msra.mxu1 %v12142_v22  ;;  %7043 = vmatpush1.bf16.msra.mxu0 %v12145_v23  ;;  %v12219_v22 = vld [vmem:[%s16358_s7 + $0x744] ss:$28 sps:$4 sm:$0xff]   ;;  %v12214_v23 = vld [vmem:[%s16358_s7 + $0x978] ss:$28 sps:$4 sm:$0xff]  }
 0x4cf   :  { %7237 = vmatprep.subr.bf16.mxu1 %v12150_v24  ;;  %7044 = vmatprep.subr.bf16.mxu0 %v12153_v26  ;;  %v12217_v24 = vld [vmem:[%s16358_s7 + $0x740] ss:$28 sps:$4 sm:$0xff]   ;;  %v12222_v26 = vld [vmem:[%s16358_s7 + $0x9b4] ss:$28 sps:$4 sm:$0xff]  }
 0x4d1   :  { %7229 = vmatmul.mubr.bf16.vlgmr.msra.gmra.mrb[32].mxu1 %v13223_v10 }
 0x4d2   :  { %7238 = vmatpush1.bf16.msra.mxu1 %v12148_v27  ;;  %7045 = vmatpush1.bf16.msra.mxu0 %v12151_v28  ;;  %v12225_v27 = vld [vmem:[%s16358_s7 + $0x77c] ss:$28 sps:$4 sm:$0xff]   ;;  %v12220_v28 = vld [vmem:[%s16358_s7 + $0x9b0] ss:$28 sps:$4 sm:$0xff]  }
 0x4d3   :  { %7239 = vmatprep.subr.bf16.mxu1 %v12156_v34  ;;  %7046 = vmatprep.subr.bf16.mxu0 %v12159_v35  ;;  %v12223_v34 = vld [vmem:[%s16358_s7 + $0x778] ss:$28 sps:$4 sm:$0xff]   ;;  %v12228_v35 = vld [vmem:[%s16358_s7 + $0x9ec] ss:$28 sps:$4 sm:$0xff]  }
 0x4d4   :  { %7269 = vmatprep.mubr.bf16.mxu1 %v13240_v16 }
 0x4d6   :  { %7240 = vmatpush1.bf16.msra.mxu1 %v12154_v36  ;;  %7047 = vmatpush1.bf16.msra.mxu0 %v12157_v37  ;;  %v12231_v36 = vld [vmem:[%s16358_s7 + $0x7b4] ss:$28 sps:$4 sm:$0xff]   ;;  %v12226_v37 = vld [vmem:[%s16358_s7 + $0x9e8] ss:$28 sps:$4 sm:$0xff]  }
 0x4d7   :  { %7241 = vmatprep.subr.bf16.mxu1 %v12162_v38  ;;  %7048 = vmatprep.subr.bf16.mxu0 %v12165_v39  ;;  %v12229_v38 = vld [vmem:[%s16358_s7 + $0x7b0] ss:$28 sps:$4 sm:$0xff]   ;;  %v12234_v39 = vld [vmem:[%s16358_s7 + $0xa24] ss:$28 sps:$4 sm:$0xff]  }
 0x4da   :  { %7242 = vmatpush1.bf16.msra.mxu1 %v12160_v40  ;;  %7049 = vmatpush1.bf16.msra.mxu0 %v12163_v41  ;;  %v12237_v40 = vld [vmem:[%s16358_s7 + $0x7ec] ss:$28 sps:$4 sm:$0xff]   ;;  %v12232_v41 = vld [vmem:[%s16358_s7 + $0xa20] ss:$28 sps:$4 sm:$0xff]  }
 0x4db   :  { %7243 = vmatprep.subr.bf16.mxu1 %v12168_v42  ;;  %7050 = vmatprep.subr.bf16.mxu0 %v12171_v43  ;;  %v12235_v42 = vld [vmem:[%s16358_s7 + $0x7e8] ss:$28 sps:$4 sm:$0xff]   ;;  %v12240_v43 = vld [vmem:[%s16358_s7 + $0xa5c] ss:$28 sps:$4 sm:$0xff]  }
 0x4de   :  { %7244 = vmatpush1.bf16.msra.mxu1 %v12166_v46  ;;  %7051 = vmatpush1.bf16.msra.mxu0 %v12169_v47  ;;  %v12243_v46 = vld [vmem:[%s16358_s7 + $0x824] ss:$28 sps:$4 sm:$0xff]   ;;  %v12238_v47 = vld [vmem:[%s16358_s7 + $0xa58] ss:$28 sps:$4 sm:$0xff]  }
 0x4df   :  { %7245 = vmatprep.subr.bf16.mxu1 %v12174_v52  ;;  %7052 = vmatprep.subr.bf16.mxu0 %v12177_v54  ;;  %v12241_v52 = vld [vmem:[%s16358_s7 + $0x820] ss:$28 sps:$4 sm:$0xff]  }
 0x4e0   :  { %v12246_v54 = vld [vmem:[%s16358_s7 + $0x85c] ss:$28 sps:$4 sm:$0xff]  }
 0x4e2   :  { %7246 = vmatpush1.bf16.msra.mxu1 %v12172_v56  ;;  %7053 = vmatpush1.bf16.msra.mxu0 %v12175_v58  ;;  %v12252_v56 = vld [vmem:[%s16358_s7 + $0xa94] ss:$28 sps:$4 sm:$0xff]  }
 0x4e3   :  { %7247 = vmatprep.subr.bf16.mxu1 %v12180_v59  ;;  %7054 = vmatprep.subr.bf16.mxu0 %v12183_v51  ;;  %v12244_v58 = vld [vmem:[%s16358_s7 + $0x858] ss:$28 sps:$4 sm:$0xff]   ;;  %v12250_v59 = vld [vmem:[%s16358_s7 + $0xa90] ss:$28 sps:$4 sm:$0xff]  }
 0x4e4   :  { %v12249_v51 = vld [vmem:[%s16358_s7 + $0x894] ss:$28 sps:$4 sm:$0xff]  }
 0x4e6   :  { %7248 = vmatpush1.bf16.msra.mxu1 %v12178_v53  ;;  %7055 = vmatpush1.bf16.msra.mxu0 %v12181_v60  ;;  %v12258_v53 = vld [vmem:[%s16361_s9 + $0xc] ss:$16 sps:$4 sm:$0xff]  }
 0x4e7   :  { %7249 = vmatprep.subr.bf16.mxu1 %v12186_v61  ;;  %7056 = vmatprep.subr.bf16.mxu0 %v12189_v62  ;;  %v12247_v60 = vld [vmem:[%s16358_s7 + $0x890] ss:$28 sps:$4 sm:$0xff]   ;;  %v12253_v62 = vld [vmem:[%s16358_s7 + $0x8c8] ss:$28 sps:$4 sm:$0xff]  }
 0x4e8   :  { %v12255_v61 = vld [vmem:[%s16358_s7 + $0x8cc] ss:$28 sps:$4 sm:$0xff]  }
 0x4ea   :  { %7250 = vmatpush1.bf16.msra.mxu1 %v12184_v14  ;;  %7057 = vmatpush1.bf16.msra.mxu0 %v12187_v63  ;;  %v12261_v14 = vld [vmem:[%s16358_s7 + $0x904] ss:$28 sps:$4 sm:$0xff]   ;;  %v12256_v63 = vld [vmem:[%s16361_s9 + $0x8] ss:$16 sps:$4 sm:$0xff]  }
 0x4eb   :  { %7251 = vmatprep.subr.bf16.mxu1 %v12192_v1  ;;  %7058 = vmatprep.subr.bf16.mxu0 %v12195_v2  ;;  %v12259_v1 = vld [vmem:[%s16358_s7 + $0x900] ss:$28 sps:$4 sm:$0xff]  }
 0x4ec   :  { %v12264_v2 = vld [vmem:[%s16361_s9 + $0x2c] ss:$16 sps:$4 sm:$0xff]  }
 0x4ee   :  { %7252 = vmatpush1.bf16.msra.mxu1 %v12190_v3  ;;  %7059 = vmatpush1.bf16.msra.mxu0 %v12193_v5  ;;  %v12267_v3 = vld [vmem:[%s16358_s7 + $0x93c] ss:$28 sps:$4 sm:$0xff]  }
 0x4ef   :  { %7253 = vmatprep.subr.bf16.mxu1 %v12198_v6  ;;  %7060 = vmatprep.subr.bf16.mxu0 %v12201_v45  ;;  %v12262_v5 = vld [vmem:[%s16361_s9 + $0x28] ss:$16 sps:$4 sm:$0xff]   ;;  %v12270_v45 = vld [vmem:[%s16361_s9 + $0x4c] ss:$16 sps:$4 sm:$0xff]  }
 0x4f0   :  { %v12265_v6 = vld [vmem:[%s16358_s7 + $0x938] ss:$28 sps:$4 sm:$0xff]  }
 0x4f2   :  { %7254 = vmatpush1.bf16.msra.mxu1 %v12196_v7  ;;  %7061 = vmatpush1.bf16.msra.mxu0 %v12199_v8  ;;  %v15389_v7 = vld [vmem:[%s16362_s8] sm:$0x7f]  ;;  %v12273_v8 = vld [vmem:[%s16358_s7 + $0x974] ss:$28 sps:$4 sm:$0xff]  }
 0x4f3   :  { %7255 = vmatprep.subr.bf16.mxu1 %v12204_v9  ;;  %7062 = vmatprep.subr.bf16.mxu0 %v12207_v12  ;;  %v12268_v9 = vld [vmem:[%s16361_s9 + $0x48] ss:$16 sps:$4 sm:$0xff]   ;;  %v5035_v12 = vrot.slane %v15389_v7, %v14020_v50 }
 0x4f6   :  { %7256 = vmatpush1.bf16.msra.mxu1 %v12202_v13  ;;  %7063 = vmatpush1.bf16.msra.mxu0 %v12205_v15  ;;  %v12271_v13 = vld [vmem:[%s16358_s7 + $0x970] ss:$28 sps:$4 sm:$0xff]  }
 0x4f7   :  { %7257 = vmatprep.subr.bf16.mxu1 %v12210_v17  ;;  %7073 = vmatprep.subr.bf16.mxu0 %v12213_v18  ;;  %v12276_v15 = vld [vmem:[%s16361_s9 + $0x6c] ss:$16 sps:$4 sm:$0xff]  }
 0x4f8   :  { %v12279_v17 = vld [vmem:[%s16358_s7 + $0x9ac] ss:$28 sps:$4 sm:$0xff]  }
 0x4f9   :  { %7065 = vmatmul.mubr.bf16.vlgmr.msra.gmra.mrb[36].mxu0 %v13223_v10 }
 0x4fa   :  { %7258 = vmatpush1.bf16.msra.mxu1 %v12208_v20  ;;  %7074 = vmatpush1.bf16.msra.mxu0 %v12211_v11 }
 0x4fb   :  { %7259 = vmatprep.subr.bf16.mxu1 %v12216_v21  ;;  %7075 = vmatprep.subr.bf16.mxu0 %v12219_v22  ;;  %v12274_v22 = vld [vmem:[%s16361_s9 + $0x68] ss:$16 sps:$4 sm:$0xff]  }
 0x4fc   :  { %7105 = vmatprep.mubr.bf16.mxu0 %v13240_v16 }
 0x4fe   :  { %7260 = vmatpush1.bf16.msra.mxu1 %v12214_v23  ;;  %7076 = vmatpush1.bf16.msra.mxu0 %v12217_v24  ;;  %v12277_v23 = vld [vmem:[%s16358_s7 + $0x9a8] ss:$28 sps:$4 sm:$0xff]  }
 0x4ff   :  { %7261 = vmatprep.subr.bf16.mxu1 %v12222_v26  ;;  %7077 = vmatprep.subr.bf16.mxu0 %v12225_v27  ;;  %v12282_v26 = vld [vmem:[%s16361_s9 + $0x8c] ss:$16 sps:$4 sm:$0xff]   ;;  %v12285_v27 = vld [vmem:[%s16358_s7 + $0x9e4] ss:$28 sps:$4 sm:$0xff]  }
 0x502   :  { %7262 = vmatpush1.bf16.msra.mxu1 %v12220_v28  ;;  %7078 = vmatpush1.bf16.msra.mxu0 %v12223_v34  ;;  %v12280_v34 = vld [vmem:[%s16361_s9 + $0x88] ss:$16 sps:$4 sm:$0xff]  }
 0x503   :  { %7263 = vmatprep.subr.bf16.mxu1 %v12228_v35  ;;  %7079 = vmatprep.subr.bf16.mxu0 %v12231_v36  ;;  %v12283_v35 = vld [vmem:[%s16358_s7 + $0x9e0] ss:$28 sps:$4 sm:$0xff]  }
 0x504   :  { %v12288_v36 = vld [vmem:[%s16361_s9 + $0xac] ss:$16 sps:$4 sm:$0xff]  }
 0x506   :  { %7264 = vmatpush1.bf16.msra.mxu1 %v12226_v37  ;;  %7080 = vmatpush1.bf16.msra.mxu0 %v12229_v38  ;;  %v12291_v37 = vld [vmem:[%s16358_s7 + $0xa1c] ss:$28 sps:$4 sm:$0xff]  }
 0x507   :  { %7265 = vmatprep.subr.bf16.mxu1 %v12234_v39  ;;  %7081 = vmatprep.subr.bf16.mxu0 %v12237_v40  ;;  %v12286_v38 = vld [vmem:[%s16361_s9 + $0xa8] ss:$16 sps:$4 sm:$0xff]   ;;  %v12294_v40 = vld [vmem:[%s16361_s9 + $0xcc] ss:$16 sps:$4 sm:$0xff]  }
 0x508   :  { %v12289_v39 = vld [vmem:[%s16358_s7 + $0xa18] ss:$28 sps:$4 sm:$0xff]  }
 0x50a   :  { %7266 = vmatpush1.bf16.msra.mxu1 %v12232_v41  ;;  %7082 = vmatpush1.bf16.msra.mxu0 %v12235_v42  ;;  %v12297_v41 = vld [vmem:[%s16358_s7 + $0xa54] ss:$28 sps:$4 sm:$0xff]   ;;  %v12292_v42 = vld [vmem:[%s16361_s9 + $0xc8] ss:$16 sps:$4 sm:$0xff]  }
 0x50b   :  { %7267 = vmatprep.subr.bf16.mxu1 %v12240_v43  ;;  %7083 = vmatprep.subr.bf16.mxu0 %v12243_v46  ;;  %v12295_v43 = vld [vmem:[%s16358_s7 + $0xa50] ss:$28 sps:$4 sm:$0xff]  }
 0x50c   :  { %v12300_v46 = vld [vmem:[%s16361_s9 + $0xec] ss:$16 sps:$4 sm:$0xff]  }
 0x50e   :  { %7268 = vmatpush1.bf16.msra.mxu1 %v12238_v47  ;;  %7084 = vmatpush1.bf16.msra.mxu0 %v12241_v52  ;;  %v12303_v47 = vld [vmem:[%s16358_s7 + $0xa8c] ss:$28 sps:$4 sm:$0xff]  }
 0x50f   :  { %7085 = vmatprep.subr.bf16.mxu0 %v12246_v54  ;;  %7278 = vmatprep.subr.bf16.mxu1 %v12252_v56 }
 0x511   :  { %7270 = vmatmul.mubr.bf16.vlgmr.msra.gmra.mrb[32].mxu1 %v13429_v19 }
 0x512   :  { %7086 = vmatpush1.bf16.msra.mxu0 %v12244_v58  ;;  %7279 = vmatpush1.bf16.msra.mxu1 %v12250_v59  ;;  %v12298_v58 = vld [vmem:[%s16361_s9 + $0xe8] ss:$16 sps:$4 sm:$0xff]  }
 0x513   :  { %7087 = vmatprep.subr.bf16.mxu0 %v12249_v51  ;;  %7310 = vmatprep.mubr.bf16.mxu1 %v12709_v25  ;;  %v12301_v59 = vld [vmem:[%s16358_s7 + $0xa88] ss:$28 sps:$4 sm:$0xff]   ;;  %v12306_v51 = vld [vmem:[%s16361_s9 + $0x10c] ss:$16 sps:$4 sm:$0xff]  }
 0x514   :  { %8886 = vmatprep.subr.bf16.mxu1 %v12258_v53 }
 0x516   :  { %7088 = vmatpush1.bf16.msra.mxu0 %v12247_v60  ;;  %v12313_v60 = vld [vmem:[%s16358_s7 + $0x1d8] ss:$28 sps:$4 sm:$0xff]  }
 0x517   :  { %7089 = vmatprep.subr.bf16.mxu0 %v12255_v61 }
 0x51a   :  { %7090 = vmatpush1.bf16.msra.mxu0 %v12253_v62  ;;  %v5031_v62 = vrot.slane %v15389_v7, %v14017_v49 }
 0x51b   :  { %7091 = vmatprep.subr.bf16.mxu0 %v12261_v14  ;;  %v12304_v14 = vld [vmem:[%s16361_s9 + $0x108] ss:$16 sps:$4 sm:$0xff]  }
 0x51d   :  { %10427 = vmatmul.mubr.msk.bf16.vlgmr.msra.gmra.mrb[32].mxu1 %vm2270_vm0, %v13462_v30 }
 0x51e   :  { %8887 = vmatpush1.bf16.msra.mxu1 %v12256_v63  ;;  %7092 = vmatpush1.bf16.msra.mxu0 %v12259_v1  ;;  %v12309_v63 = vld [vmem:[%s16361_s9 + $0x12c] ss:$16 sps:$4 sm:$0xff]  }
 0x51f   :  { %8888 = vmatprep.subr.bf16.mxu1 %v12264_v2  ;;  %7093 = vmatprep.subr.bf16.mxu0 %v12267_v3  ;;  %v12307_v2 = vld [vmem:[%s16361_s9 + $0x128] ss:$16 sps:$4 sm:$0xff]   ;;  %v12312_v3 = vld [vmem:[%s16361_s9 + $0x14c] ss:$16 sps:$4 sm:$0xff]  }
 0x522   :  { %8889 = vmatpush1.bf16.msra.mxu1 %v12262_v5  ;;  %7094 = vmatpush1.bf16.msra.mxu0 %v12265_v6  ;;  %v12310_v6 = vld [vmem:[%s16361_s9 + $0x148] ss:$16 sps:$4 sm:$0xff]  }
 0x523   :  { %8890 = vmatprep.subr.bf16.mxu1 %v12270_v45  ;;  %7095 = vmatprep.subr.bf16.mxu0 %v12273_v8  ;;  %v12314_v45 = vld [vmem:[%s16358_s7 + $0x18] ss:$28 sps:$4 sm:$0xff]   ;;  %v12317_v8 = vld [vmem:[%s16361_s9 + $0x16c] ss:$16 sps:$4 sm:$0xff]  }
 0x524   :  { %v6984_v18 = vpop.f32.mrb[28].mxu1 }
 0x525   :  { %v6986_v20 = vpop.f32.mrb[29].mxu1  ;;  %v11014_v1 = vadd.f32 %v6984_v18, %v5031_v62  ;;  %v12320_v18 = vld [vmem:[%s16361_s9 + $0x188] ss:$16 sps:$4 sm:$0xff]  }
 0x526   :  { %8891 = vmatpush1.bf16.msra.mxu1 %v12268_v9  ;;  %v11015_v11 = vadd.f32 %v6986_v20, %v5035_v12  ;;  %v6988_v21 = vpop.f32.mrb[30].mxu1  ;;  %7096 = vmatpush1.bf16.msra.mxu0 %v12271_v13  ;;  %v12318_v9 = vld [vmem:[%s16358_s7 + $0x210] ss:$28 sps:$4 sm:$0xff]   ;;  %v12315_v12 = vld [vmem:[%s16361_s9 + $0x168] ss:$16 sps:$4 sm:$0xff]  }
 0x527   :  { %v6989_v24 = vpop.f32.mrb[31].mxu1  ;;  %8892 = vmatprep.subr.bf16.mxu1 %v12276_v15  ;;  %7097 = vmatprep.subr.bf16.mxu0 %v12279_v17  ;;  %v7486_v5 = vmul.f32 0.70710677, %v11014_v1  ;;  %v12319_v13 = vld [vmem:[%s16358_s7 + $0x50] ss:$28 sps:$4 sm:$0xff]  }
 0x528   :  { %v7487_v28 = vmul.f32 0.70710677, %v11015_v11  ;;  %v7480_v54 = vmul.f32 0.5, %v11015_v11  ;;  %v12322_v15 = vld [vmem:[%s16361_s9 + $0x18c] ss:$16 sps:$4 sm:$0xff]  }
 0x529   :  { %v12323_v17 = vld [vmem:[%s16358_s7 + $0x248] ss:$28 sps:$4 sm:$0xff]   ;;  %v12327_v11 = vld [vmem:[%s16361_s9 + $0x1ac] ss:$16 sps:$4 sm:$0xff]  }
 0x52a   :  { %12680 = verf.f32 %v7487_v28  ;;  %8893 = vmatpush1.bf16.msra.mxu1 %v12274_v22  ;;  %7098 = vmatpush1.bf16.msra.mxu0 %v12277_v23  ;;  %v12324_v20 = vld [vmem:[%s16358_s7 + $0x88] ss:$28 sps:$4 sm:$0xff]   ;;  %v12332_v28 = vld [vmem:[%s16361_s9 + $0x1cc] ss:$16 sps:$4 sm:$0xff]  }
 0x52b   :  { %8894 = vmatprep.subr.bf16.mxu1 %v12282_v26  ;;  %7099 = vmatprep.subr.bf16.mxu0 %v12285_v27  ;;  %12682 = verf.f32 %v7486_v5  ;;  %v12325_v24 = vld [vmem:[%s16361_s9 + $0x1a8] ss:$16 sps:$4 sm:$0xff]   ;;  %v12329_v26 = vld [vmem:[%s16358_s7 + $0xc0] ss:$28 sps:$4 sm:$0xff]   ;;  %v12354_v5 = vld [vmem:[%s16358_s7 + $0x670] ss:$28 sps:$4 sm:$0xff]  }
 0x52c   :  { %v12348_v62 = vld [vmem:[%s16358_s7 + $0x5c8] ss:$28 sps:$4 sm:$0xff]  }
 0x52e   :  { %8895 = vmatpush1.bf16.msra.mxu1 %v12280_v34  ;;  %7100 = vmatpush1.bf16.msra.mxu0 %v12283_v35  ;;  %v12333_v34 = vld [vmem:[%s16358_s7 + $0x2b8] ss:$28 sps:$4 sm:$0xff]  }
 0x52f   :  { %8896 = vmatprep.subr.bf16.mxu1 %v12288_v36  ;;  %7101 = vmatprep.subr.bf16.mxu0 %v12291_v37  ;;  %v12330_v36 = vld [vmem:[%s16361_s9 + $0x1c8] ss:$16 sps:$4 sm:$0xff]  }
 0x530   :  { %v12334_v37 = vld [vmem:[%s16358_s7 + $0xf8] ss:$28 sps:$4 sm:$0xff]  }
 0x532   :  { %8897 = vmatpush1.bf16.msra.mxu1 %v12286_v38  ;;  %7102 = vmatpush1.bf16.msra.mxu0 %v12289_v39  ;;  %v12337_v39 = vld [vmem:[%s16361_s9 + $0x1ec] ss:$16 sps:$4 sm:$0xff]  }
 0x533   :  { %8898 = vmatprep.subr.bf16.mxu1 %v12294_v40  ;;  %7103 = vmatprep.subr.bf16.mxu0 %v12297_v41  ;;  %v12338_v40 = vld [vmem:[%s16358_s7 + $0x2f0] ss:$28 sps:$4 sm:$0xff]   ;;  %v7479_v41 = vmul.f32 0.5, %v11014_v1 }
 0x534   :  { %v12681_v52 = vpop.eup %12680  ;;  %v12430_v1 = vld [vmem:[%s16361_s9 + $0x20c] ss:$16 sps:$4 sm:$0xff]  }
 0x535   :  { %v7501_v56 = vadd.f32 1.0, %v12681_v52  ;;  %v12683_v35 = vpop.eup %12682  ;;  %v12341_v52 = vld [vmem:[%s16358_s7 + $0x168] ss:$28 sps:$4 sm:$0xff]  }
 0x536   :  { %8899 = vmatpush1.bf16.msra.mxu1 %v12292_v42  ;;  %7104 = vmatpush1.bf16.msra.mxu0 %v12295_v43  ;;  %v7500_v38 = vadd.f32 1.0, %v12683_v35  ;;  %v12335_v42 = vld [vmem:[%s16361_s9 + $0x1e8] ss:$16 sps:$4 sm:$0xff]   ;;  %v12339_v43 = vld [vmem:[%s16358_s7 + $0x130] ss:$28 sps:$4 sm:$0xff]  }
 0x537   :  { %8900 = vmatprep.subr.bf16.mxu1 %v12300_v46  ;;  %7114 = vmatprep.subr.bf16.mxu0 %v12303_v47  ;;  %v7508_v53 = vmul.f32 %v7501_v56, %v7480_v54  ;;  %v12340_v47 = vld [vmem:[%s16358_s7 + $0x328] ss:$28 sps:$4 sm:$0xff]   ;;  %v12342_v56 = vld [vmem:[%s16358_s7 + $0x360] ss:$28 sps:$4 sm:$0xff]   ;;  %v12363_v35 = vld [vmem:[%s16358_s7 + $0x750] ss:$28 sps:$4 sm:$0xff]  }
 0x538   :  { %v7507_v46 = vmul.f32 %v7500_v38, %v7479_v41  ;;  %v12366_v38 = vld [vmem:[%s16358_s7 + $0x980] ss:$28 sps:$4 sm:$0xff]  }
 0x539   :  { %7106 = vmatmul.mubr.bf16.vlgmr.msra.gmra.mrb[36].mxu0 %v13429_v19  ;;  %v15469_v61 = vpack.c.bf16 %v7508_v53, %v7508_v53  ;;  %v12346_v53 = vld [vmem:[%s16358_s7 + $0x590] ss:$28 sps:$4 sm:$0xff]   ;;  %v12367_v41 = vld [vmem:[%s16358_s7 + $0x7c0] ss:$28 sps:$4 sm:$0xff]  }
 0x53a   :  { %8901 = vmatpush1.bf16.msra.mxu1 %v12298_v58  ;;  %7115 = vmatpush1.bf16.msra.mxu0 %v12301_v59  ;;  %v15564_v54 = vpack.c.bf16 %v7507_v46, %v7507_v46  ;;  %v12343_v58 = vld [vmem:[%s16358_s7 + $0x1a0] ss:$28 sps:$4 sm:$0xff]   ;;  %v12344_v59 = vld [vmem:[%s16358_s7 + $0x558] ss:$28 sps:$4 sm:$0xff]  }
 0x53b   :  { %8902 = vmatprep.subr.bf16.mxu1 %v12306_v51  ;;  %8918 = vmatprep.mubr.bf16.mxu1 %v15469_v61  ;;  %v12345_v51 = vld [vmem:[%s16358_s7 + $0x398] ss:$28 sps:$4 sm:$0xff]   ;;  %v12484_v46 = vld [vmem:[%s16361_s9 + $0x32c] ss:$16 sps:$4 sm:$0xff]  }
 0x53c   :  { %7146 = vmatprep.mubr.bf16.mxu0 %v12709_v25  ;;  %10833 = vmatprep.subr.bf16.mxu0 %v12313_v60  ;;  %v12347_v60 = vld [vmem:[%s16358_s7 + $0x3d0] ss:$28 sps:$4 sm:$0xff]  }
 0x53e   :  { %8903 = vmatpush1.bf16.msra.mxu1 %v12304_v14  ;;  %v12349_v14 = vld [vmem:[%s16358_s7 + $0x408] ss:$28 sps:$4 sm:$0xff]  }
 0x53f   :  { %8904 = vmatprep.subr.bf16.mxu1 %v12309_v63  ;;  %v12352_v63 = vld [vmem:[%s16358_s7 + $0x638] ss:$28 sps:$4 sm:$0xff]  }
 0x542   :  { %8905 = vmatpush1.bf16.msra.mxu1 %v12307_v2  ;;  %v12428_v2 = vld [vmem:[%s16361_s9 + $0x208] ss:$16 sps:$4 sm:$0xff]  }
 0x543   :  { %8906 = vmatprep.subr.bf16.mxu1 %v12312_v3  ;;  %v12353_v3 = vld [vmem:[%s16358_s7 + $0x478] ss:$28 sps:$4 sm:$0xff]  }
 0x545   :  { %10426 = vmatmul.mubr.msk.bf16.vlgmr.msra.gmra.mrb[36].mxu0 %vm2270_vm0, %v13462_v30 }
 0x546   :  { %8907 = vmatpush1.bf16.msra.mxu1 %v12310_v6  ;;  %10834 = vmatpush3.bf16.msra.mxu0 %v12314_v45  ;;  %v12436_v6 = vld [vmem:[%s16361_s9 + $0x22c] ss:$16 sps:$4 sm:$0xff]   ;;  %v12434_v45 = vld [vmem:[%s16361_s9 + $0x228] ss:$16 sps:$4 sm:$0xff]  }
 0x547   :  { %8908 = vmatprep.subr.bf16.mxu1 %v12317_v8  ;;  %10835 = vmatprep.subr.bf16.mxu0 %v12318_v9  ;;  %v12355_v8 = vld [vmem:[%s16358_s7 + $0x4b0] ss:$28 sps:$4 sm:$0xff]   ;;  %v12356_v9 = vld [vmem:[%s16358_s7 + $0x6a8] ss:$28 sps:$4 sm:$0xff]  }
 0x548   :  { %7351 = vmatprep.mubr.bf16.mxu0 %v12956_v48  ;;  %v12328_v48 = vld [vmem:[%s16358_s7 + $0x280] ss:$28 sps:$4 sm:$0xff]  }
 0x54a   :  { %8909 = vmatpush1.bf16.msra.mxu1 %v12315_v12  ;;  %10836 = vmatpush3.bf16.msra.mxu0 %v12319_v13  ;;  %v12442_v12 = vld [vmem:[%s16361_s9 + $0x24c] ss:$16 sps:$4 sm:$0xff]   ;;  %v12440_v13 = vld [vmem:[%s16361_s9 + $0x248] ss:$16 sps:$4 sm:$0xff]  }
 0x54b   :  { %8910 = vmatprep.subr.bf16.mxu1 %v12322_v15  ;;  %10837 = vmatprep.subr.bf16.mxu0 %v12323_v17  ;;  %v12357_v15 = vld [vmem:[%s16358_s7 + $0x4e8] ss:$28 sps:$4 sm:$0xff]   ;;  %v12358_v17 = vld [vmem:[%s16358_s7 + $0x6e0] ss:$28 sps:$4 sm:$0xff]  }
 0x54c   :  { %v15526_v21 = vpop.f32.mrb[32].mxu0 }
 0x54d   :  { %v10965_v22 = vpop.f32.mrb[33].mxu0 }
 0x54e   :  { %8911 = vmatpush1.bf16.msra.mxu1 %v12320_v18  ;;  %10838 = vmatpush3.bf16.msra.mxu0 %v12324_v20  ;;  %v4631_v23 = vpop.f32.mrb[34].mxu0  ;;  %v12448_v18 = vld [vmem:[%s16361_s9 + $0x26c] ss:$16 sps:$4 sm:$0xff]   ;;  %v12446_v20 = vld [vmem:[%s16361_s9 + $0x268] ss:$16 sps:$4 sm:$0xff]  }
 0x54f   :  { %8912 = vmatprep.subr.bf16.mxu1 %v12327_v11  ;;  %v10966_v27 = vpop.f32.mrb[35].mxu0  ;;  %10839 = vmatprep.subr.bf16.mxu0 %v12328_v48  ;;  %v12359_v11 = vld [vmem:[%s16358_s7 + $0x520] ss:$28 sps:$4 sm:$0xff]   ;;  %v12360_v48 = vld [vmem:[%s16358_s7 + $0x8d8] ss:$28 sps:$4 sm:$0xff]  }
 0x550   :  { %v12454_v22 = vld [vmem:[%s16361_s9 + $0x28c] ss:$16 sps:$4 sm:$0xff]   ;;  %v12452_v23 = vld [vmem:[%s16361_s9 + $0x288] ss:$16 sps:$4 sm:$0xff]  }
 0x551   :  { %v12460_v27 = vld [vmem:[%s16361_s9 + $0x2ac] ss:$16 sps:$4 sm:$0xff]  }
 0x552   :  { %8913 = vmatpush1.bf16.msra.mxu1 %v12325_v24  ;;  %10840 = vmatpush3.bf16.msra.mxu0 %v12329_v26  ;;  %v12361_v24 = vld [vmem:[%s16358_s7 + $0x718] ss:$28 sps:$4 sm:$0xff]   ;;  %v12362_v26 = vld [vmem:[%s16358_s7 + $0x910] ss:$28 sps:$4 sm:$0xff]  }
 0x553   :  { %8914 = vmatprep.subr.bf16.mxu1 %v12332_v28  ;;  %10841 = vmatprep.subr.bf16.mxu0 %v12333_v34  ;;  %v12458_v28 = vld [vmem:[%s16361_s9 + $0x2a8] ss:$16 sps:$4 sm:$0xff]   ;;  %v12466_v34 = vld [vmem:[%s16361_s9 + $0x2cc] ss:$16 sps:$4 sm:$0xff]  }
 0x556   :  { %8915 = vmatpush1.bf16.msra.mxu1 %v12330_v36  ;;  %10842 = vmatpush3.bf16.msra.mxu0 %v12334_v37  ;;  %v12364_v36 = vld [vmem:[%s16358_s7 + $0x948] ss:$28 sps:$4 sm:$0xff]   ;;  %v12472_v37 = vld [vmem:[%s16361_s9 + $0x2ec] ss:$16 sps:$4 sm:$0xff]  }
 0x557   :  { %8916 = vmatprep.subr.bf16.mxu1 %v12337_v39  ;;  %10843 = vmatprep.subr.bf16.mxu0 %v12338_v40  ;;  %v12470_v39 = vld [vmem:[%s16361_s9 + $0x2e8] ss:$16 sps:$4 sm:$0xff]   ;;  %v12478_v40 = vld [vmem:[%s16361_s9 + $0x30c] ss:$16 sps:$4 sm:$0xff]  }
 0x55a   :  { %8917 = vmatpush1.bf16.msra.mxu1 %v12335_v42  ;;  %10844 = vmatpush3.bf16.msra.mxu0 %v12339_v43  ;;  %v12368_v42 = vld [vmem:[%s16358_s7 + $0x9b8] ss:$28 sps:$4 sm:$0xff]  }
 0x55b   :  { %10845 = vmatprep.subr.bf16.mxu0 %v12340_v47  ;;  %8927 = vmatprep.subr.bf16.mxu1 %v12430_v1  ;;  %v12476_v43 = vld [vmem:[%s16361_s9 + $0x308] ss:$16 sps:$4 sm:$0xff]  }
 0x55c   :  { %v12369_v47 = vld [vmem:[%s16358_s7 + $0x7f8] ss:$28 sps:$4 sm:$0xff]  }
 0x55d   :  { %8919 = vmatmul.mubr.bf16.vlgmr.msra.gmra.mrb[36].mxu1 %v15564_v54  ;;  %v12500_v1 = vld [vmem:[%s16361_s9 + $0x388] ss:$16 sps:$4 sm:$0xff]  }
 0x55e   :  { %10846 = vmatpush3.bf16.msra.mxu0 %v12341_v52  ;;  %8928 = vmatpush1.bf16.msra.mxu1 %v12428_v2  ;;  %v12370_v52 = vld [vmem:[%s16358_s7 + $0x9f0] ss:$28 sps:$4 sm:$0xff]   ;;  %v12376_v2 = vld [vmem:[%s16358_s7 + $0xa98] ss:$28 sps:$4 sm:$0xff]  }
 0x55f   :  { %10847 = vmatprep.subr.bf16.mxu0 %v12342_v56  ;;  %8929 = vmatprep.subr.bf16.mxu1 %v12436_v6  ;;  %v12482_v56 = vld [vmem:[%s16361_s9 + $0x328] ss:$16 sps:$4 sm:$0xff]  }
 0x560   :  { %v12506_v6 = vld [vmem:[%s16361_s9 + $0x3a8] ss:$16 sps:$4 sm:$0xff]  }
 0x562   :  { %10848 = vmatpush3.bf16.msra.mxu0 %v12343_v58  ;;  %8930 = vmatpush1.bf16.msra.mxu1 %v12434_v45  ;;  %v12490_v58 = vld [vmem:[%s16361_s9 + $0x34c] ss:$16 sps:$4 sm:$0xff]  }
 0x563   :  { %10855 = vmatprep.subr.bf16.mxu0 %v12344_v59  ;;  %8931 = vmatprep.subr.bf16.mxu1 %v12442_v12  ;;  %v12371_v59 = vld [vmem:[%s16358_s7 + $0x830] ss:$28 sps:$4 sm:$0xff]  }
 0x564   :  { %v12514_v45 = vld [vmem:[%s16361_s9 + $0x3cc] ss:$16 sps:$4 sm:$0xff]  }
 0x565   :  { %7352 = vmatmul.mubr.bf16.vlgmr.msra.gmra.mrb[40].mxu0 %v13017_v4  ;;  %v12350_v4 = vld [vmem:[%s16358_s7 + $0x600] ss:$28 sps:$4 sm:$0xff]  }
 0x566   :  { %10856 = vmatpush3.bf16.msra.mxu0 %v12345_v51  ;;  %7391 = vmatprep.mubr.bf16.mxu0 %v13102_v32  ;;  %v12351_v32 = vld [vmem:[%s16358_s7 + $0x440] ss:$28 sps:$4 sm:$0xff]   ;;  %v12372_v51 = vld [vmem:[%s16358_s7 + $0xa28] ss:$28 sps:$4 sm:$0xff]  }
 0x567   :  { %10857 = vmatprep.subr.bf16.mxu0 %v12346_v53  ;;  %8932 = vmatpush1.bf16.msra.mxu1 %v12440_v13  ;;  %v12488_v53 = vld [vmem:[%s16361_s9 + $0x348] ss:$16 sps:$4 sm:$0xff]   ;;  %v12520_v12 = vld [vmem:[%s16361_s9 + $0x3ec] ss:$16 sps:$4 sm:$0xff]  }
 0x568   :  { %8933 = vmatprep.subr.bf16.mxu1 %v12448_v18  ;;  %v12518_v13 = vld [vmem:[%s16361_s9 + $0x3e8] ss:$16 sps:$4 sm:$0xff]   ;;  %v12526_v18 = vld [vmem:[%s16361_s9 + $0x40c] ss:$16 sps:$4 sm:$0xff]  }
 0x56a   :  { %10858 = vmatpush3.bf16.msra.mxu0 %v12347_v60  ;;  %v12373_v60 = vld [vmem:[%s16358_s7 + $0x868] ss:$28 sps:$4 sm:$0xff]  }
 0x56b   :  { %10859 = vmatprep.subr.bf16.mxu0 %v12348_v62  ;;  %8934 = vmatpush1.bf16.msra.mxu1 %v12446_v20  ;;  %v12374_v62 = vld [vmem:[%s16358_s7 + $0xa60] ss:$28 sps:$4 sm:$0xff]  }
 0x56c   :  { %8935 = vmatprep.subr.bf16.mxu1 %v12454_v22  ;;  %v12386_v20 = vld [vmem:[%s16361_s9 + $0x60] ss:$16 sps:$4 sm:$0xff]   ;;  %v12394_v22 = vld [vmem:[%s16361_s9 + $0xa4] ss:$16 sps:$4 sm:$0xff]  }
 0x56e   :  { %10860 = vmatpush3.bf16.msra.mxu0 %v12349_v14  ;;  %v12496_v14 = vld [vmem:[%s16361_s9 + $0x36c] ss:$16 sps:$4 sm:$0xff]  }
 0x56f   :  { %10861 = vmatprep.subr.bf16.mxu0 %v12350_v4  ;;  %8936 = vmatpush1.bf16.msra.mxu1 %v12452_v23  ;;  %v12494_v4 = vld [vmem:[%s16361_s9 + $0x368] ss:$16 sps:$4 sm:$0xff]   ;;  %v12392_v23 = vld [vmem:[%s16361_s9 + $0xa0] ss:$16 sps:$4 sm:$0xff]  }
 0x570   :  { %8937 = vmatprep.subr.bf16.mxu1 %v12460_v27  ;;  %v12400_v27 = vld [vmem:[%s16361_s9 + $0xe4] ss:$16 sps:$4 sm:$0xff]  }
 0x572   :  { %10862 = vmatpush3.bf16.msra.mxu0 %v12351_v32  ;;  %v12375_v32 = vld [vmem:[%s16358_s7 + $0x8a0] ss:$28 sps:$4 sm:$0xff]  }
 0x573   :  { %10863 = vmatprep.subr.bf16.mxu0 %v12352_v63  ;;  %8938 = vmatpush1.bf16.msra.mxu1 %v12458_v28  ;;  %v12502_v63 = vld [vmem:[%s16361_s9 + $0x38c] ss:$16 sps:$4 sm:$0xff]   ;;  %v12398_v28 = vld [vmem:[%s16361_s9 + $0xe0] ss:$16 sps:$4 sm:$0xff]  }
 0x574   :  { %8939 = vmatprep.subr.bf16.mxu1 %v12466_v34  ;;  %v12403_v34 = vld [vmem:[%s16361_s9 + $0x104] ss:$16 sps:$4 sm:$0xff]  }
 0x576   :  { %10864 = vmatpush3.bf16.msra.mxu0 %v12353_v3  ;;  %v12379_v3 = vld [vmem:[%s16361_s9 + $0x4] ss:$16 sps:$4 sm:$0xff]  }
 0x577   :  { %10865 = vmatprep.subr.bf16.mxu0 %v12354_v5  ;;  %v12508_v5 = vld [vmem:[%s16361_s9 + $0x3ac] ss:$16 sps:$4 sm:$0xff]  }
 0x57a   :  { %10866 = vmatpush3.bf16.msra.mxu0 %v12355_v8  ;;  %v12512_v8 = vld [vmem:[%s16361_s9 + $0x3c8] ss:$16 sps:$4 sm:$0xff]  }
 0x57b   :  { %10867 = vmatprep.subr.bf16.mxu0 %v12356_v9  ;;  %v12382_v9 = vld [vmem:[%s16361_s9 + $0x24] ss:$16 sps:$4 sm:$0xff]  }
 0x57e   :  { %10868 = vmatpush3.bf16.msra.mxu0 %v12357_v15  ;;  %v12380_v15 = vld [vmem:[%s16361_s9 + $0x20] ss:$16 sps:$4 sm:$0xff]  }
 0x57f   :  { %10869 = vmatprep.subr.bf16.mxu0 %v12358_v17  ;;  %v12385_v17 = vld [vmem:[%s16361_s9 + $0x44] ss:$16 sps:$4 sm:$0xff]  }
 0x582   :  { %10870 = vmatpush3.bf16.msra.mxu0 %v12359_v11  ;;  %v12391_v11 = vld [vmem:[%s16361_s9 + $0x84] ss:$16 sps:$4 sm:$0xff]  }
 0x583   :  { %10877 = vmatprep.subr.bf16.mxu0 %v12360_v48  ;;  %v12389_v48 = vld [vmem:[%s16361_s9 + $0x80] ss:$16 sps:$4 sm:$0xff]  }
 0x585   :  { %7392 = vmatmul.mubr.bf16.vlgmr.msra.gmra.mrb[44].mxu0 %v13223_v10  ;;  %v12464_v10 = vld [vmem:[%s16361_s9 + $0x2c8] ss:$16 sps:$4 sm:$0xff]  }
 0x586   :  { %10878 = vmatpush3.bf16.msra.mxu0 %v12361_v24  ;;  %7431 = vmatprep.mubr.bf16.mxu0 %v13240_v16  ;;  %v12365_v16 = vld [vmem:[%s16358_s7 + $0x788] ss:$28 sps:$4 sm:$0xff]  }
 0x587   :  { %10879 = vmatprep.subr.bf16.mxu0 %v12362_v26  ;;  %8940 = vmatpush1.bf16.msra.mxu1 %v12464_v10  ;;  %v12397_v24 = vld [vmem:[%s16361_s9 + $0xc4] ss:$16 sps:$4 sm:$0xff]   ;;  %v12395_v26 = vld [vmem:[%s16361_s9 + $0xc0] ss:$16 sps:$4 sm:$0xff]  }
 0x588   :  { %8941 = vmatprep.subr.bf16.mxu1 %v12472_v37  ;;  %v12404_v10 = vld [vmem:[%s16361_s9 + $0x120] ss:$16 sps:$4 sm:$0xff]   ;;  %v12409_v37 = vld [vmem:[%s16361_s9 + $0x144] ss:$16 sps:$4 sm:$0xff]  }
 0x58a   :  { %10880 = vmatpush3.bf16.msra.mxu0 %v12363_v35  ;;  %v12401_v35 = vld [vmem:[%s16361_s9 + $0x100] ss:$16 sps:$4 sm:$0xff]  }
 0x58b   :  { %10881 = vmatprep.subr.bf16.mxu0 %v12364_v36  ;;  %8942 = vmatpush1.bf16.msra.mxu1 %v12470_v39  ;;  %v12406_v36 = vld [vmem:[%s16361_s9 + $0x124] ss:$16 sps:$4 sm:$0xff]   ;;  %v12410_v39 = vld [vmem:[%s16361_s9 + $0x160] ss:$16 sps:$4 sm:$0xff]  }
 0x58c   :  { %8943 = vmatprep.subr.bf16.mxu1 %v12478_v40  ;;  %v12415_v40 = vld [vmem:[%s16361_s9 + $0x184] ss:$16 sps:$4 sm:$0xff]  }
 0x58e   :  { %10882 = vmatpush3.bf16.msra.mxu0 %v12365_v16  ;;  %v12407_v16 = vld [vmem:[%s16361_s9 + $0x140] ss:$16 sps:$4 sm:$0xff]  }
 0x58f   :  { %10883 = vmatprep.subr.bf16.mxu0 %v12366_v38  ;;  %8944 = vmatpush1.bf16.msra.mxu1 %v12476_v43  ;;  %v12412_v38 = vld [vmem:[%s16361_s9 + $0x164] ss:$16 sps:$4 sm:$0xff]   ;;  %v12416_v43 = vld [vmem:[%s16361_s9 + $0x1a0] ss:$16 sps:$4 sm:$0xff]  }
 0x590   :  { %8945 = vmatprep.subr.bf16.mxu1 %v12484_v46  ;;  %v12421_v46 = vld [vmem:[%s16361_s9 + $0x1c4] ss:$16 sps:$4 sm:$0xff]  }
 0x592   :  { %10884 = vmatpush3.bf16.msra.mxu0 %v12367_v41  ;;  %v12413_v41 = vld [vmem:[%s16361_s9 + $0x180] ss:$16 sps:$4 sm:$0xff]  }
 0x593   :  { %10885 = vmatprep.subr.bf16.mxu0 %v12368_v42  ;;  %8946 = vmatpush1.bf16.msra.mxu1 %v12482_v56  ;;  %v12418_v42 = vld [vmem:[%s16361_s9 + $0x1a4] ss:$16 sps:$4 sm:$0xff]   ;;  %v12422_v56 = vld [vmem:[%s16361_s9 + $0x1e0] ss:$16 sps:$4 sm:$0xff]  }
 0x594   :  { %8947 = vmatprep.subr.bf16.mxu1 %v12490_v58  ;;  %v12427_v58 = vld [vmem:[%s16361_s9 + $0x204] ss:$16 sps:$4 sm:$0xff]  }
 0x596   :  { %10886 = vmatpush3.bf16.msra.mxu0 %v12369_v47  ;;  %v12419_v47 = vld [vmem:[%s16361_s9 + $0x1c0] ss:$16 sps:$4 sm:$0xff]  }
 0x597   :  { %10887 = vmatprep.subr.bf16.mxu0 %v12370_v52  ;;  %8948 = vmatpush1.bf16.msra.mxu1 %v12488_v53  ;;  %v12424_v52 = vld [vmem:[%s16361_s9 + $0x1e4] ss:$16 sps:$4 sm:$0xff]   ;;  %v12431_v53 = vld [vmem:[%s16361_s9 + $0x220] ss:$16 sps:$4 sm:$0xff]  }
 0x598   :  { %8949 = vmatprep.subr.bf16.mxu1 %v12496_v14 }
 0x59a   :  { %10888 = vmatpush3.bf16.msra.mxu0 %v12371_v59  ;;  %v12425_v59 = vld [vmem:[%s16361_s9 + $0x200] ss:$16 sps:$4 sm:$0xff]  }
 0x59b   :  { %10889 = vmatprep.subr.bf16.mxu0 %v12372_v51  ;;  %8950 = vmatpush1.bf16.msra.mxu1 %v12494_v4  ;;  %v12433_v51 = vld [vmem:[%s16361_s9 + $0x224] ss:$16 sps:$4 sm:$0xff]  }
 0x59c   :  { %8951 = vmatprep.subr.bf16.mxu1 %v12502_v63  ;;  %v12445_v63 = vld [vmem:[%s16361_s9 + $0x264] ss:$16 sps:$4 sm:$0xff]  }
 0x59e   :  { %10890 = vmatpush3.bf16.msra.mxu0 %v12373_v60  ;;  %v12439_v60 = vld [vmem:[%s16361_s9 + $0x244] ss:$16 sps:$4 sm:$0xff]  }
 0x59f   :  { %10891 = vmatprep.subr.bf16.mxu0 %v12374_v62  ;;  %8952 = vmatpush1.bf16.msra.mxu1 %v12500_v1  ;;  %v12443_v1 = vld [vmem:[%s16361_s9 + $0x260] ss:$16 sps:$4 sm:$0xff]  }
 0x5a0   :  { %8953 = vmatprep.subr.bf16.mxu1 %v12508_v5  ;;  %v12457_v5 = vld [vmem:[%s16361_s9 + $0x2a4] ss:$16 sps:$4 sm:$0xff]  }
 0x5a2   :  { %10892 = vmatpush3.bf16.msra.mxu0 %v12375_v32  ;;  %v12437_v32 = vld [vmem:[%s16361_s9 + $0x240] ss:$16 sps:$4 sm:$0xff]  }
 0x5a3   :  { %10967 = vmatprep.subr.bf16.mxu0 %v12710_v0  ;;  %8954 = vmatpush1.bf16.msra.mxu1 %v12506_v6  ;;  %v12455_v6 = vld [vmem:[%s16361_s9 + $0x2a0] ss:$16 sps:$4 sm:$0xff]  }
 0x5a4   :  { %8955 = vmatprep.subr.bf16.mxu1 %v12514_v45  ;;  %v12463_v45 = vld [vmem:[%s16361_s9 + $0x2c4] ss:$16 sps:$4 sm:$0xff]  }
 0x5a5   :  { %7432 = vmatmul.mubr.bf16.vlgmr.msra.gmra.mrb[48].mxu0 %v13429_v19  ;;  %v12377_v19 = vld [vmem:[%s16361_s9] ss:$16 sps:$4 sm:$0xff]  }
 0x5a6   :  { %10968 = vmatpush3.bf16.msra.mxu0 %v12376_v2  ;;  %10969 = vmatprep.mubr.msk.bf16.mxu0 %vm12711_vm1, %v12710_v0  ;;  %v12451_v2 = vld [vmem:[%s16361_s9 + $0x284] ss:$16 sps:$4 sm:$0xff]  }
 0x5a7   :  { %8722 = vmatprep.subr.bf16.mxu0 %v12379_v3  ;;  %8956 = vmatpush1.bf16.msra.mxu1 %v12512_v8  ;;  %v12449_v3 = vld [vmem:[%s16361_s9 + $0x280] ss:$16 sps:$4 sm:$0xff]  }
 0x5a8   :  { %8957 = vmatprep.subr.bf16.mxu1 %v12520_v12  ;;  %v12461_v8 = vld [vmem:[%s16361_s9 + $0x2c0] ss:$16 sps:$4 sm:$0xff]  }
 0x5a9   :  { %v12467_v12 = vld [vmem:[%s16361_s9 + $0x2e0] ss:$16 sps:$4 sm:$0xff]  }
 0x5ab   :  { %8958 = vmatpush1.bf16.msra.mxu1 %v12518_v13  ;;  %v12475_v13 = vld [vmem:[%s16361_s9 + $0x304] ss:$16 sps:$4 sm:$0xff]  }
 0x5ac   :  { %8968 = vmatprep.subr.bf16.mxu1 %v12526_v18 }
 0x5ad   :  { %10970 = vmatmul.mubr.msk.bf16.vlgmr.msra.gmra.mrb[52].mxu0 %vm2270_vm0, %v13462_v30  ;;  %v12383_v30 = vld [vmem:[%s16361_s9 + $0x40] ss:$16 sps:$4 sm:$0xff]  }
 0x5ae   :  { %8723 = vmatpush1.bf16.msra.mxu0 %v12377_v19  ;;  %8754 = vmatprep.mubr.bf16.mxu0 %v15469_v61  ;;  %v12388_v61 = vld [vmem:[%s16361_s9 + $0x64] ss:$16 sps:$4 sm:$0xff]  }
 0x5af   :  { %8724 = vmatprep.subr.bf16.mxu0 %v12382_v9  ;;  %v12469_v19 = vld [vmem:[%s16361_s9 + $0x2e4] ss:$16 sps:$4 sm:$0xff]   ;;  %v5051_v9 = vrot.slane %v15389_v7, %v493_v33 }
 0x5b0   :  { %v12481_v33 = vld [vmem:[%s16361_s9 + $0x324] ss:$16 sps:$4 sm:$0xff]  }
 0x5b2   :  { %8725 = vmatpush1.bf16.msra.mxu0 %v12380_v15 }
 0x5b3   :  { %8726 = vmatprep.subr.bf16.mxu0 %v12385_v17  ;;  %v12473_v17 = vld [vmem:[%s16361_s9 + $0x300] ss:$16 sps:$4 sm:$0xff]  }
 0x5b6   :  { %8727 = vmatpush1.bf16.msra.mxu0 %v12383_v30  ;;  %v12479_v30 = vld [vmem:[%s16361_s9 + $0x320] ss:$16 sps:$4 sm:$0xff]  }
 0x5b7   :  { %8728 = vmatprep.subr.bf16.mxu0 %v12388_v61  ;;  %v12487_v61 = vld [vmem:[%s16361_s9 + $0x344] ss:$16 sps:$4 sm:$0xff]  }
 0x5ba   :  { %8729 = vmatpush1.bf16.msra.mxu0 %v12386_v20  ;;  %v12485_v20 = vld [vmem:[%s16361_s9 + $0x340] ss:$16 sps:$4 sm:$0xff]  }
 0x5bb   :  { %8730 = vmatprep.subr.bf16.mxu0 %v12391_v11  ;;  %v12493_v11 = vld [vmem:[%s16361_s9 + $0x364] ss:$16 sps:$4 sm:$0xff]  }
 0x5be   :  { %8731 = vmatpush1.bf16.msra.mxu0 %v12389_v48  ;;  %v5039_v48 = vrot.slane %v15389_v7, %v14035_v55 }
 0x5bf   :  { %8732 = vmatprep.subr.bf16.mxu0 %v12394_v22  ;;  %v5043_v22 = vrot.slane %v15389_v7, %v14041_v57  ;;  %v12505_v7 = vld [vmem:[%s16361_s9 + $0x3a4] ss:$16 sps:$4 sm:$0xff]  }
 0x5c2   :  { %8733 = vmatpush1.bf16.msra.mxu0 %v12392_v23  ;;  %v12491_v23 = vld [vmem:[%s16361_s9 + $0x360] ss:$16 sps:$4 sm:$0xff]  }
 0x5c3   :  { %8734 = vmatprep.subr.bf16.mxu0 %v12397_v24  ;;  %v12499_v24 = vld [vmem:[%s16361_s9 + $0x384] ss:$16 sps:$4 sm:$0xff]  }
 0x5c6   :  { %8735 = vmatpush1.bf16.msra.mxu0 %v12395_v26 }
 0x5c7   :  { %8736 = vmatprep.subr.bf16.mxu0 %v12400_v27  ;;  %v12497_v27 = vld [vmem:[%s16361_s9 + $0x380] ss:$16 sps:$4 sm:$0xff]  }
 0x5ca   :  { %8737 = vmatpush1.bf16.msra.mxu0 %v12398_v28 }
 0x5cb   :  { %8738 = vmatprep.subr.bf16.mxu0 %v12403_v34 }
 0x5ce   :  { %8739 = vmatpush1.bf16.msra.mxu0 %v12401_v35 }
 0x5cf   :  { %8740 = vmatprep.subr.bf16.mxu0 %v12406_v36 }
 0x5d2   :  { %8741 = vmatpush1.bf16.msra.mxu0 %v12404_v10 }
 0x5d3   :  { %8742 = vmatprep.subr.bf16.mxu0 %v12409_v37 }
 0x5d6   :  { %8743 = vmatpush1.bf16.msra.mxu0 %v12407_v16 }
 0x5d7   :  { %8744 = vmatprep.subr.bf16.mxu0 %v12412_v38 }
 0x5da   :  { %8745 = vmatpush1.bf16.msra.mxu0 %v12410_v39  ;;  %v12503_v39 = vld [vmem:[%s16361_s9 + $0x3a0] ss:$16 sps:$4 sm:$0xff]  }
 0x5db   :  { %8746 = vmatprep.subr.bf16.mxu0 %v12415_v40 }
 0x5de   :  { %8747 = vmatpush1.bf16.msra.mxu0 %v12413_v41 }
 0x5df   :  { %8748 = vmatprep.subr.bf16.mxu0 %v12418_v42  ;;  %v12511_v42 = vld [vmem:[%s16361_s9 + $0x3c4] ss:$16 sps:$4 sm:$0xff]  }
 0x5e2   :  { %8749 = vmatpush1.bf16.msra.mxu0 %v12416_v43  ;;  %v12509_v43 = vld [vmem:[%s16361_s9 + $0x3c0] ss:$16 sps:$4 sm:$0xff]  }
 0x5e3   :  { %8750 = vmatprep.subr.bf16.mxu0 %v12421_v46  ;;  %v12517_v46 = vld [vmem:[%s16361_s9 + $0x3e4] ss:$16 sps:$4 sm:$0xff]  }
 0x5e6   :  { %8751 = vmatpush1.bf16.msra.mxu0 %v12419_v47  ;;  %v12515_v47 = vld [vmem:[%s16361_s9 + $0x3e0] ss:$16 sps:$4 sm:$0xff]  }
 0x5e7   :  { %8752 = vmatprep.subr.bf16.mxu0 %v12424_v52  ;;  %v12523_v52 = vld [vmem:[%s16361_s9 + $0x404] ss:$16 sps:$4 sm:$0xff]  }
 0x5ea   :  { %8753 = vmatpush1.bf16.msra.mxu0 %v12422_v56 }
 0x5eb   :  { %8763 = vmatprep.subr.bf16.mxu0 %v12427_v58 }
 0x5ed   :  { %8755 = vmatmul.mubr.bf16.vlgmr.msra.gmra.mrb[56].mxu0 %v15564_v54 }
 0x5ee   :  { %8764 = vmatpush1.bf16.msra.mxu0 %v12425_v59 }
 0x5ef   :  { %8765 = vmatprep.subr.bf16.mxu0 %v12433_v51 }
 0x5f0   :  { %v15894_v62 = vpop.f32.mrb[32].mxu1 }
 0x5f1   :  { %v7314_v14 = vpop.f32.mrb[33].mxu1 }
 0x5f2   :  { %v7316_v4 = vpop.f32.mrb[34].mxu1  ;;  %8766 = vmatpush1.bf16.msra.mxu0 %v12431_v53  ;;  %v11019_v15 = vadd.f32 %v7314_v14, %v5051_v9  ;;  %v12538_v9 = vld [vmem:[%s16361_s9 + $0x44c] ss:$16 sps:$4 sm:$0xff]  }
 0x5f3   :  { %v7317_v54 = vpop.f32.mrb[35].mxu1  ;;  %8767 = vmatprep.subr.bf16.mxu0 %v12439_v60 }
 0x5f4   :  { %v7491_v18 = vmul.f32 0.70710677, %v11019_v15  ;;  %v7484_v40 = vmul.f32 0.5, %v11019_v15  ;;  %v12541_v15 = vld [vmem:[%s16361_s9 + $0x464] ss:$16 sps:$4 sm:$0xff]  }
 0x5f6   :  { %8768 = vmatpush1.bf16.msra.mxu0 %v12437_v32  ;;  %12684 = verf.f32 %v7491_v18 }
 0x5f7   :  { %8769 = vmatprep.subr.bf16.mxu0 %v12445_v63  ;;  %v12521_v63 = vld [vmem:[%s16361_s9 + $0x400] ss:$16 sps:$4 sm:$0xff]  }
 0x5fa   :  { %8770 = vmatpush1.bf16.msra.mxu0 %v12443_v1  ;;  %v12524_v1 = vld [vmem:[%s16361_s9 + $0x408] ss:$16 sps:$4 sm:$0xff]  }
 0x5fb   :  { %8771 = vmatprep.subr.bf16.mxu0 %v12451_v2 }
 0x5fe   :  { %8772 = vmatpush1.bf16.msra.mxu0 %v12449_v3  ;;  %v12529_v3 = vld [vmem:[%s16361_s9 + $0x424] ss:$16 sps:$4 sm:$0xff]  }
 0x5ff   :  { %8773 = vmatprep.subr.bf16.mxu0 %v12457_v5  ;;  %v12532_v5 = vld [vmem:[%s16361_s9 + $0x42c] ss:$16 sps:$4 sm:$0xff]  }
 0x600   :  { %v12685_v35 = vpop.eup %12684 }
 0x601   :  { %v7505_v41 = vadd.f32 1.0, %v12685_v35  ;;  %v12559_v35 = vld [vmem:[%s16361_s9 + $0x4c4] ss:$16 sps:$4 sm:$0xff]  }
 0x602   :  { %8774 = vmatpush1.bf16.msra.mxu0 %v12455_v6 }
 0x603   :  { %8775 = vmatprep.subr.bf16.mxu0 %v12463_v45  ;;  %v7512_v32 = vmul.f32 %v7505_v41, %v7484_v40  ;;  %v12527_v45 = vld [vmem:[%s16361_s9 + $0x420] ss:$16 sps:$4 sm:$0xff]   ;;  %v12566_v40 = vld [vmem:[%s16361_s9 + $0x4e8] ss:$16 sps:$4 sm:$0xff]   ;;  %v12571_v41 = vld [vmem:[%s16361_s9 + $0x504] ss:$16 sps:$4 sm:$0xff]  }
 0x605   :  { %v7519_v6 = vpack.c.bf16 %v7512_v32, %v7512_v32 }
 0x606   :  { %8776 = vmatpush1.bf16.msra.mxu0 %v12461_v8  ;;  %v12530_v8 = vld [vmem:[%s16361_s9 + $0x428] ss:$16 sps:$4 sm:$0xff]  }
 0x607   :  { %8777 = vmatprep.subr.bf16.mxu0 %v12469_v19  ;;  %v12535_v19 = vld [vmem:[%s16361_s9 + $0x444] ss:$16 sps:$4 sm:$0xff]  }
 0x60a   :  { %8778 = vmatpush1.bf16.msra.mxu0 %v12467_v12  ;;  %v12533_v12 = vld [vmem:[%s16361_s9 + $0x440] ss:$16 sps:$4 sm:$0xff]  }
 0x60b   :  { %8779 = vmatprep.subr.bf16.mxu0 %v12475_v13  ;;  %v12536_v13 = vld [vmem:[%s16361_s9 + $0x448] ss:$16 sps:$4 sm:$0xff]  }
 0x60e   :  { %8780 = vmatpush1.bf16.msra.mxu0 %v12473_v17  ;;  %v12544_v17 = vld [vmem:[%s16361_s9 + $0x46c] ss:$16 sps:$4 sm:$0xff]  }
 0x60f   :  { %8781 = vmatprep.subr.bf16.mxu0 %v12481_v33 }
 0x612   :  { %8782 = vmatpush1.bf16.msra.mxu0 %v12479_v30  ;;  %v12539_v30 = vld [vmem:[%s16361_s9 + $0x460] ss:$16 sps:$4 sm:$0xff]  }
 0x613   :  { %8783 = vmatprep.subr.bf16.mxu0 %v12487_v61  ;;  %v12542_v61 = vld [vmem:[%s16361_s9 + $0x468] ss:$16 sps:$4 sm:$0xff]  }
 0x616   :  { %8784 = vmatpush1.bf16.msra.mxu0 %v12485_v20 }
 0x617   :  { %8785 = vmatprep.subr.bf16.mxu0 %v12493_v11 }
 0x618   :  { %v7148_v26 = vpop.f32.mrb[36].mxu0 }
 0x619   :  { %v11016_v28 = vadd.f32 %v7148_v26, %v5039_v48  ;;  %v7150_v34 = vpop.f32.mrb[37].mxu0  ;;  %v12547_v48 = vld [vmem:[%s16361_s9 + $0x484] ss:$16 sps:$4 sm:$0xff]   ;;  %v12548_v26 = vld [vmem:[%s16361_s9 + $0x488] ss:$16 sps:$4 sm:$0xff]  }
 0x61a   :  { %v11017_v36 = vadd.f32 %v7150_v34, %v5043_v22  ;;  %v7152_v10 = vpop.f32.mrb[38].mxu0  ;;  %8786 = vmatpush1.bf16.msra.mxu0 %v12491_v23  ;;  %v12550_v22 = vld [vmem:[%s16361_s9 + $0x48c] ss:$16 sps:$4 sm:$0xff]   ;;  %v12551_v34 = vld [vmem:[%s16361_s9 + $0x4a0] ss:$16 sps:$4 sm:$0xff]  }
 0x61b   :  { %v7488_v37 = vmul.f32 0.70710677, %v11016_v28  ;;  %v7153_v16 = vpop.f32.mrb[39].mxu0  ;;  %8787 = vmatprep.subr.bf16.mxu0 %v12499_v24  ;;  %v7481_v59 = vmul.f32 0.5, %v11016_v28  ;;  %v12545_v24 = vld [vmem:[%s16361_s9 + $0x480] ss:$16 sps:$4 sm:$0xff]  }
 0x61c   :  { %v7489_v38 = vmul.f32 0.70710677, %v11017_v36  ;;  %v7482_v53 = vmul.f32 0.5, %v11017_v36  ;;  %v12556_v28 = vld [vmem:[%s16361_s9 + $0x4ac] ss:$16 sps:$4 sm:$0xff]  }
 0x61d   :  { %12686 = verf.f32 %v7488_v37  ;;  %v12562_v36 = vld [vmem:[%s16361_s9 + $0x4cc] ss:$16 sps:$4 sm:$0xff]   ;;  %v12557_v10 = vld [vmem:[%s16361_s9 + $0x4c0] ss:$16 sps:$4 sm:$0xff]   ;;  %v12560_v37 = vld [vmem:[%s16361_s9 + $0x4c8] ss:$16 sps:$4 sm:$0xff]  }
 0x61e   :  { %12688 = verf.f32 %v7489_v38  ;;  %8788 = vmatpush1.bf16.msra.mxu0 %v12497_v27  ;;  %v12553_v27 = vld [vmem:[%s16361_s9 + $0x4a4] ss:$16 sps:$4 sm:$0xff]   ;;  %v12568_v38 = vld [vmem:[%s16361_s9 + $0x4ec] ss:$16 sps:$4 sm:$0xff]  }
 0x61f   :  { %8789 = vmatprep.subr.bf16.mxu0 %v12505_v7  ;;  %v12554_v7 = vld [vmem:[%s16361_s9 + $0x4a8] ss:$16 sps:$4 sm:$0xff]   ;;  %v12565_v16 = vld [vmem:[%s16361_s9 + $0x4e4] ss:$16 sps:$4 sm:$0xff]  }
 0x622   :  { %8790 = vmatpush1.bf16.msra.mxu0 %v12503_v39  ;;  %v12563_v39 = vld [vmem:[%s16361_s9 + $0x4e0] ss:$16 sps:$4 sm:$0xff]  }
 0x623   :  { %8791 = vmatprep.subr.bf16.mxu0 %v12511_v42  ;;  %v12574_v42 = vld [vmem:[%s16361_s9 + $0x50c] ss:$16 sps:$4 sm:$0xff]  }
 0x626   :  { %8792 = vmatpush1.bf16.msra.mxu0 %v12509_v43  ;;  %v12708_v43 = vld [vmem:[%s16362_s8] sm:$0x7f] }
 0x627   :  { %v12687_v56 = vpop.eup %12686  ;;  %8793 = vmatprep.subr.bf16.mxu0 %v12517_v46  ;;  %v5047_v46 = vrot.slane %v12708_v43, %v489_v31  ;;  %v12580_v31 = vld [vmem:[%s16361_s9 + $0x52c] ss:$16 sps:$4 sm:$0xff]   ;;  %v5055_v32 = vrot.slane %v12708_v43, %v497_v29  ;;  %v12590_v29 = vld [vmem:[%s16361_s9 + $0x568] ss:$16 sps:$4 sm:$0xff]  }
 0x628   :  { %v12689_v58 = vpop.eup %12688  ;;  %v7502_v51 = vadd.f32 1.0, %v12687_v56  ;;  %v12577_v56 = vld [vmem:[%s16361_s9 + $0x524] ss:$16 sps:$4 sm:$0xff]  }
 0x629   :  { %v7503_v60 = vadd.f32 1.0, %v12689_v58  ;;  %v11018_v58 = vadd.f32 %v15894_v62, %v5047_v46  ;;  %v12586_v62 = vld [vmem:[%s16361_s9 + $0x54c] ss:$16 sps:$4 sm:$0xff]  }
 0x62a   :  { %v7509_v14 = vmul.f32 %v7502_v51, %v7481_v59  ;;  %8794 = vmatpush1.bf16.msra.mxu0 %v12515_v47  ;;  %v12569_v47 = vld [vmem:[%s16361_s9 + $0x500] ss:$16 sps:$4 sm:$0xff]   ;;  %v12578_v51 = vld [vmem:[%s16361_s9 + $0x528] ss:$16 sps:$4 sm:$0xff]  }
 0x62b   :  { %v7510_v4 = vmul.f32 %v7503_v60, %v7482_v53  ;;  %8804 = vmatprep.subr.bf16.mxu0 %v12523_v52  ;;  %v12572_v52 = vld [vmem:[%s16361_s9 + $0x508] ss:$16 sps:$4 sm:$0xff]   ;;  %v12575_v59 = vld [vmem:[%s16361_s9 + $0x520] ss:$16 sps:$4 sm:$0xff]   ;;  %v12583_v53 = vld [vmem:[%s16361_s9 + $0x544] ss:$16 sps:$4 sm:$0xff]  }
 0x62c   :  { %v7516_v2 = vpack.c.bf16 %v7509_v14, %v7509_v14  ;;  %v7490_v60 = vmul.f32 0.70710677, %v11018_v58  ;;  %v12581_v14 = vld [vmem:[%s16361_s9 + $0x540] ss:$16 sps:$4 sm:$0xff]  }
 0x62d   :  { %v7517_v54 = vpack.c.bf16 %v7510_v4, %v7510_v4  ;;  %v12584_v4 = vld [vmem:[%s16361_s9 + $0x548] ss:$16 sps:$4 sm:$0xff]  }
 0x62e   :  { %12690 = verf.f32 %v7490_v60  ;;  %v12624_v60 = vld [vmem:[%s16363_s13] sm:$0xff]  }
 0x62f   :  { %8795 = vmatprep.mubr.bf16.mxu0 %v7517_v54  ;;  %8959 = vmatprep.mubr.bf16.mxu1 %v7517_v54  ;;  %v12589_v54 = vld [vmem:[%s16361_s9 + $0x564] ss:$16 sps:$4 sm:$0xff]  }
 0x630   :  { %8796 = vmatmul.mubr.bf16.vlgmr.msra.gmra.mrb[56].mxu0 %v7516_v2  ;;  %8960 = vmatmul.mubr.bf16.vlgmr.msra.gmra.mrb[36].mxu1 %v7516_v2 }
 0x631   :  { %8805 = vmatpush1.bf16.msra.mxu0 %v12521_v63  ;;  %8969 = vmatpush1.bf16.msra.mxu1 %v12524_v1  ;;  %v12592_v63 = vld [vmem:[%s16361_s9 + $0x56c] ss:$16 sps:$4 sm:$0xff]  }
 0x632   :  { %8836 = vmatprep.mubr.bf16.mxu0 %v7519_v6  ;;  %9000 = vmatprep.mubr.bf16.mxu1 %v7519_v6 }
 0x633   :  { %8806 = vmatprep.subr.bf16.mxu0 %v12529_v3  ;;  %8970 = vmatprep.subr.bf16.mxu1 %v12532_v5 }
 0x635   :  { %8807 = vmatpush1.bf16.msra.mxu0 %v12527_v45  ;;  %8971 = vmatpush1.bf16.msra.mxu1 %v12530_v8  ;;  %v12595_v45 = vld [vmem:[%s16361_s9 + $0x584] ss:$16 sps:$4 sm:$0xff]   ;;  %v12598_v8 = vld [vmem:[%s16361_s9 + $0x58c] ss:$16 sps:$4 sm:$0xff]  }
 0x636   :  { %8808 = vmatprep.subr.bf16.mxu0 %v12535_v19  ;;  %8972 = vmatprep.subr.bf16.mxu1 %v12538_v9 }
 0x638   :  { %v10849_v33 = vpop.f32.mrb[40].mxu0 }
 0x639   :  { %v10850_v18 = vpop.f32.mrb[41].mxu0  ;;  %8809 = vmatpush1.bf16.msra.mxu0 %v12533_v12  ;;  %8973 = vmatpush1.bf16.msra.mxu1 %v12536_v13  ;;  %v12593_v12 = vld [vmem:[%s16361_s9 + $0x580] ss:$16 sps:$4 sm:$0xff]   ;;  %v12596_v13 = vld [vmem:[%s16361_s9 + $0x588] ss:$16 sps:$4 sm:$0xff]  }
 0x63a   :  { %v16029_v20 = vadd.f32 %v10850_v18, %v10849_v33  ;;  %v10852_v11 = vpop.f32.mrb[42].mxu0  ;;  %8810 = vmatprep.subr.bf16.mxu0 %v12541_v15  ;;  %8974 = vmatprep.subr.bf16.mxu1 %v12544_v17  ;;  %v12601_v15 = vld [vmem:[%s16361_s9 + $0x5a4] ss:$16 sps:$4 sm:$0xff]   ;;  %v12604_v17 = vld [vmem:[%s16361_s9 + $0x5ac] ss:$16 sps:$4 sm:$0xff]  }
 0x63b   :  { %v10853_v23 = vpop.f32.mrb[43].mxu0  ;;  %v12599_v33 = vld [vmem:[%s16361_s9 + $0x5a0] ss:$16 sps:$4 sm:$0xff]   ;;  %v12602_v18 = vld [vmem:[%s16361_s9 + $0x5a8] ss:$16 sps:$4 sm:$0xff]  }
 0x63c   :  { %v7354_v3 = vadd.f32 %v16029_v20, %v5055_v32  ;;  %v12691_v20 = vpop.eup %12690  ;;  %v12605_v11 = vld [vmem:[%s16361_s9 + $0x5c0] ss:$16 sps:$4 sm:$0xff]   ;;  %v12613_v23 = vld [vmem:[%s16361_s9 + $0x5e4] ss:$16 sps:$4 sm:$0xff]   ;;  %v12626_v32 = vld [vmem:[%s16363_s13 + $0x8] sm:$0xff]  }
 0x63d   :  { %8811 = vmatpush1.bf16.msra.mxu0 %v12539_v30  ;;  %8975 = vmatpush1.bf16.msra.mxu1 %v12542_v61  ;;  %v12607_v30 = vld [vmem:[%s16361_s9 + $0x5c4] ss:$16 sps:$4 sm:$0xff]   ;;  %v12610_v61 = vld [vmem:[%s16361_s9 + $0x5cc] ss:$16 sps:$4 sm:$0xff]  }
 0x63e   :  { %8812 = vmatprep.subr.bf16.mxu0 %v12547_v48  ;;  %8976 = vmatprep.subr.bf16.mxu1 %v12550_v22  ;;  %v12608_v48 = vld [vmem:[%s16361_s9 + $0x5c8] ss:$16 sps:$4 sm:$0xff]   ;;  %v7504_v22 = vadd.f32 1.0, %v12691_v20 }
 0x641   :  { %8813 = vmatpush1.bf16.msra.mxu0 %v12545_v24  ;;  %8977 = vmatpush1.bf16.msra.mxu1 %v12548_v26  ;;  %v12616_v24 = vld [vmem:[%s16361_s9 + $0x5ec] ss:$16 sps:$4 sm:$0xff]   ;;  %v7483_v26 = vmul.f32 0.5, %v11018_v58 }
 0x642   :  { %8814 = vmatprep.subr.bf16.mxu0 %v12553_v27  ;;  %8978 = vmatprep.subr.bf16.mxu1 %v12556_v28  ;;  %v12611_v27 = vld [vmem:[%s16361_s9 + $0x5e0] ss:$16 sps:$4 sm:$0xff]   ;;  %v12614_v28 = vld [vmem:[%s16361_s9 + $0x5e8] ss:$16 sps:$4 sm:$0xff]  }
 0x645   :  { %8815 = vmatpush1.bf16.msra.mxu0 %v12551_v34  ;;  %8979 = vmatpush1.bf16.msra.mxu1 %v12554_v7  ;;  %v7511_v34 = vmul.f32 %v7504_v22, %v7483_v26  ;;  %v12619_v7 = vld [vmem:[%s16361_s9 + $0x604] ss:$16 sps:$4 sm:$0xff]  }
 0x646   :  { %8816 = vmatprep.subr.bf16.mxu0 %v12559_v35  ;;  %8980 = vmatprep.subr.bf16.mxu1 %v12562_v36  ;;  %v12622_v35 = vld [vmem:[%s16361_s9 + $0x60c] ss:$16 sps:$4 sm:$0xff]   ;;  %v12617_v36 = vld [vmem:[%s16361_s9 + $0x600] ss:$16 sps:$4 sm:$0xff]  }
 0x649   :  { %8817 = vmatpush1.bf16.msra.mxu0 %v12557_v10  ;;  %8981 = vmatpush1.bf16.msra.mxu1 %v12560_v37  ;;  %v12620_v10 = vld [vmem:[%s16361_s9 + $0x608] ss:$16 sps:$4 sm:$0xff]   ;;  %v7518_v37 = vpack.c.bf16 %v7511_v34, %v7511_v34 }
 0x64a   :  { %8818 = vmatprep.subr.bf16.mxu0 %v12565_v16  ;;  %8982 = vmatprep.subr.bf16.mxu1 %v12568_v38  ;;  %v12623_v16 = vld [vmem:[%s16363_s13 + $0x40] sm:$0xff]  }
 0x64d   :  { %8819 = vmatpush1.bf16.msra.mxu0 %v12563_v39  ;;  %8983 = vmatpush1.bf16.msra.mxu1 %v12566_v40 }
 0x64e   :  { %8820 = vmatprep.subr.bf16.mxu0 %v12571_v41  ;;  %8984 = vmatprep.subr.bf16.mxu1 %v12574_v42 }
 0x651   :  { %8821 = vmatpush1.bf16.msra.mxu0 %v12569_v47  ;;  %8985 = vmatpush1.bf16.msra.mxu1 %v12572_v52 }
 0x652   :  { %8822 = vmatprep.subr.bf16.mxu0 %v12577_v56  ;;  %8986 = vmatprep.subr.bf16.mxu1 %v12580_v31 }
 0x655   :  { %8823 = vmatpush1.bf16.msra.mxu0 %v12575_v59  ;;  %8987 = vmatpush1.bf16.msra.mxu1 %v12578_v51 }
 0x656   :  { %8824 = vmatprep.subr.bf16.mxu0 %v12583_v53  ;;  %8988 = vmatprep.subr.bf16.mxu1 %v12586_v62 }
 0x658   :  { %v10871_v1 = vpop.f32.mrb[44].mxu0 }
 0x659   :  { %v10872_v2 = vpop.f32.mrb[45].mxu0  ;;  %8825 = vmatpush1.bf16.msra.mxu0 %v12581_v14  ;;  %8989 = vmatpush1.bf16.msra.mxu1 %v12584_v4  ;;  %v12625_v4 = vld [vmem:[%s16363_s13 + $0x48] sm:$0xff]  }
 0x65a   :  { %v10873_v5 = vadd.f32 %v10872_v2, %v10871_v1  ;;  %v10874_v6 = vpop.f32.mrb[46].mxu0  ;;  %8826 = vmatprep.subr.bf16.mxu0 %v12589_v54  ;;  %8990 = vmatprep.subr.bf16.mxu1 %v12592_v63  ;;  %v12627_v54 = vld [vmem:[%s16363_s13 + $0x50] sm:$0xff]   ;;  %v12629_v1 = vld [vmem:[%s16363_s13 + $0x58] sm:$0xff]  }
 0x65b   :  { %v10875_v19 = vpop.f32.mrb[47].mxu0  ;;  %v12628_v63 = vld [vmem:[%s16363_s13 + $0x10] sm:$0xff]   ;;  %v12630_v2 = vld [vmem:[%s16363_s13 + $0x18] sm:$0xff]  }
 0x65c   :  { %v7394_v9 = vadd.f32 %v10873_v5, %v7354_v3  ;;  %v12633_v3 = vld [vmem:[%s16363_s13 + $0x68] sm:$0xff]   ;;  %v12635_v6 = vld [vmem:[%s16363_s13 + $0x70] sm:$0xff]   ;;  %v12638_v19 = vld [vmem:[%s16363_s13 + $0x38] sm:$0xff]  }
 0x65d   :  { %8827 = vmatpush1.bf16.msra.mxu0 %v12587_v44  ;;  %8991 = vmatpush1.bf16.msra.mxu1 %v12590_v29  ;;  %v12631_v44 = vld [vmem:[%s16363_s13 + $0x60] sm:$0xff]   ;;  %v12634_v5 = vld [vmem:[%s16363_s13 + $0x28] sm:$0xff]  }
 0x65e   :  { %8828 = vmatprep.subr.bf16.mxu0 %v12595_v45  ;;  %8992 = vmatprep.subr.bf16.mxu1 %v12598_v8  ;;  %v12632_v29 = vld [vmem:[%s16363_s13 + $0x20] sm:$0xff]   ;;  %v12636_v45 = vld [vmem:[%s16363_s13 + $0x30] sm:$0xff]   ;;  %v12637_v8 = vld [vmem:[%s16363_s13 + $0x78] sm:$0xff]  }
 0x661   :  { %8829 = vmatpush1.bf16.msra.mxu0 %v12593_v12  ;;  %8993 = vmatpush1.bf16.msra.mxu1 %v12596_v13 }
 0x662   :  { %8830 = vmatprep.subr.bf16.mxu0 %v12601_v15  ;;  %8994 = vmatprep.subr.bf16.mxu1 %v12604_v17 }
 0x665   :  { %8831 = vmatpush1.bf16.msra.mxu0 %v12599_v33  ;;  %8995 = vmatpush1.bf16.msra.mxu1 %v12602_v18 }
 0x666   :  { %8832 = vmatprep.subr.bf16.mxu0 %v12607_v30  ;;  %8996 = vmatprep.subr.bf16.mxu1 %v12610_v61 }
 0x669   :  { %8833 = vmatpush1.bf16.msra.mxu0 %v12605_v11  ;;  %8997 = vmatpush1.bf16.msra.mxu1 %v12608_v48 }
 0x66a   :  { %8834 = vmatprep.subr.bf16.mxu0 %v12613_v23  ;;  %8998 = vmatprep.subr.bf16.mxu1 %v12616_v24 }
 0x66d   :  { %8835 = vmatpush1.bf16.msra.mxu0 %v12611_v27  ;;  %8999 = vmatpush1.bf16.msra.mxu1 %v12614_v28 }
 0x66e   :  { %8845 = vmatprep.subr.bf16.mxu0 %v12619_v7  ;;  %9009 = vmatprep.subr.bf16.mxu1 %v12622_v35 }
 0x670   :  { %8837 = vmatmul.mubr.bf16.vlgmr.msra.gmra.mrb[56].mxu0 %v7518_v37  ;;  %9001 = vmatmul.mubr.bf16.vlgmr.msra.gmra.mrb[36].mxu1 %v7518_v37 }
 0x671   :  { %8846 = vmatpush1.bf16.msra.mxu0 %v12617_v36  ;;  %9010 = vmatpush1.bf16.msra.mxu1 %v12620_v10 }
 0x672   :  { %8877 = vmatprep.mubr.bf16.mxu0 %v12709_v25  ;;  %9041 = vmatprep.mubr.bf16.mxu1 %v12709_v25 }
 0x673   :  { %10901 = vmatprep.subr.bf16.mxu0 %v12623_v16  ;;  %10973 = vmatprep.subr.bf16.mxu1 %v12710_v0 }
 0x678   :  { %v10893_v38 = vpop.f32.mrb[48].mxu0 }
 0x679   :  { %v10894_v39 = vpop.f32.mrb[49].mxu0 }
 0x67a   :  { %v10895_v40 = vadd.f32 %v10894_v39, %v10893_v38  ;;  %v10896_v41 = vpop.f32.mrb[50].mxu0 }
 0x67b   :  { %v10897_v42 = vpop.f32.mrb[51].mxu0  ;;  %v12639_v41 = vld [vmem:[%s16363_s13 + $0x80] sm:$0xff]  }
 0x67c   :  { %v7434_v43 = vadd.f32 %v10895_v40, %v7394_v9  ;;  %v7717_v9 = vld [vmem:[%s16364_s10] sm:$0xf] }
 0x67d   :  { %v7722_v12 = vrot.slane %v7717_v9, %v14017_v49  ;;  %v7726_v13 = vrot.slane %v7717_v9, %v14020_v50  ;;  %v7734_v15 = vrot.slane %v7717_v9, %v14041_v57 }
 0x680   :  { %v7473_v46 = vpop.f32.mrb[52].mxu0 }
 0x681   :  { %v7474_v47 = vadd.f32 %v7473_v46, %v7434_v43  ;;  %v10971_v52 = vpop.f32.mrb[53].mxu0  ;;  %v7730_v46 = vrot.slane %v7717_v9, %v14035_v55  ;;  %v12642_v55 = vld [vmem:[%s16363_s13 + $0x98] sm:$0xff]  }
 0x682   :  { %v7476_v56 = vpop.f32.mrb[54].mxu0 }
 0x683   :  { %v7492_v31 = vmul.f32 0.70710677, %v7474_v47  ;;  %v10972_v58 = vpop.f32.mrb[55].mxu0  ;;  %v7485_v51 = vmul.f32 0.5, %v7474_v47  ;;  %v12640_v47 = vld [vmem:[%s16363_s13 + $0x88] sm:$0xff]   ;;  %v12641_v56 = vld [vmem:[%s16363_s13 + $0x90] sm:$0xff]  }
 0x684   :  { %v12643_v58 = vld [vmem:[%s16363_s13 + $0xa0] sm:$0xff]  }
 0x685   :  { %12692 = verf.f32 %v7492_v31 }
 0x68f   :  { %v12693_v59 = vpop.eup %12692 }
 0x690   :  { %v7506_v53 = vadd.f32 1.0, %v12693_v59  ;;  %v12644_v59 = vld [vmem:[%s16363_s13 + $0xa8] sm:$0xff]  }
 0x692   :  { %v7513_v62 = vmul.f32 %v7506_v53, %v7485_v51  ;;  %v12645_v51 = vld [vmem:[%s16363_s13 + $0xb0] sm:$0xff]  }
 0x694   :  { %v7520_v14 = vpack.c.bf16 %v7513_v62, %v7513_v62  ;;  %v12646_v62 = vld [vmem:[%s16363_s13 + $0xb8] sm:$0xff]  }
 0x696   :  { %10625 = vmatmul.mubr.msk.bf16.vlgmr.msra.gmra.mrb[56].mxu0 %vm2270_vm0, %v7520_v14  ;;  %10626 = vmatmul.mubr.msk.bf16.vlgmr.msra.gmra.mrb[36].mxu1 %vm2270_vm0, %v7520_v14  ;;  %v12647_v14 = vld [vmem:[%s16363_s13 + $0xc0] ss:$0 sps:$4 sm:$0xff]  }
 0x697   :  { %10902 = vmatpush3.bf16.msra.mxu0 %v12624_v60  ;;  %10989 = vmatprep.mubr.msk.bf16.mxu1 %vm12711_vm1, %v12710_v0 }
 0x698   :  { %10903 = vmatprep.subr.bf16.mxu0 %v12625_v4 }
 0x69b   :  { %10904 = vmatpush3.bf16.msra.mxu0 %v12626_v32 }
 0x69c   :  { %10905 = vmatprep.subr.bf16.mxu0 %v12627_v54  ;;  %v9283_v54 = vsel %vm9281_vm5, %v12647_v14, 0 }
 0x69f   :  { %10906 = vmatpush3.bf16.msra.mxu0 %v12628_v63 }
 0x6a0   :  { %10907 = vmatprep.subr.bf16.mxu0 %v12629_v1  ;;  %v12648_v1 = vld [vmem:[%s16365_s15] sm:$0xff]  }
 0x6a1   :  { %10974 = vmatpush3.bf16.msra.mxu1 %v12648_v1 }
 0x6a2   :  { %10975 = vmatprep.subr.bf16.mxu1 %v12710_v0 }
 0x6a3   :  { %10908 = vmatpush3.bf16.msra.mxu0 %v12630_v2  ;;  %v12649_v2 = vld [vmem:[%s16365_s15 + $0x8] sm:$0xff]  }
 0x6a4   :  { %10909 = vmatprep.subr.bf16.mxu0 %v12631_v44  ;;  %v12651_v44 = vld [vmem:[%s16365_s15 + $0x18] sm:$0xff]  }
 0x6a5   :  { %10976 = vmatpush3.bf16.msra.mxu1 %v12649_v2 }
 0x6a6   :  { %10977 = vmatprep.subr.bf16.mxu1 %v12710_v0 }
 0x6a7   :  { %10910 = vmatpush3.bf16.msra.mxu0 %v12632_v29  ;;  %v12652_v29 = vld [vmem:[%s16365_s15 + $0x20] sm:$0xff]  }
 0x6a8   :  { %10911 = vmatprep.subr.bf16.mxu0 %v12633_v3  ;;  %v12653_v3 = vld [vmem:[%s16365_s15 + $0x28] sm:$0xff]  }
 0x6ab   :  { %10912 = vmatpush3.bf16.msra.mxu0 %v12634_v5  ;;  %v12654_v5 = vld [vmem:[%s16365_s15 + $0x30] sm:$0xff]  }
 0x6ac   :  { %10913 = vmatprep.subr.bf16.mxu0 %v12635_v6  ;;  %v12655_v6 = vld [vmem:[%s16365_s15 + $0x38] sm:$0xff]  }
 0x6af   :  { %10914 = vmatpush3.bf16.msra.mxu0 %v12636_v45  ;;  %v12656_v45 = vld [vmem:[%s16366_s17] sm:$0xff]  }
 0x6b0   :  { %10915 = vmatprep.subr.bf16.mxu0 %v12637_v8 }
 0x6b3   :  { %10916 = vmatpush3.bf16.msra.mxu0 %v12638_v19 }
 0x6b4   :  { %9325 = vmatprep.subr.bf16.mxu0 %v12709_v25 }
 0x769   :  { %v8879_v17 = vpop.f32.mrb[56].mxu0  ;;  %v9043_v33 = vpop.f32.mrb[36].mxu1 }
 0x76a   :  { %v11020_v18 = vadd.f32 %v8879_v17, %v7722_v12  ;;  %v8881_v30 = vpop.f32.mrb[57].mxu0  ;;  %v9045_v61 = vpop.f32.mrb[37].mxu1  ;;  %v11022_v52 = vadd.f32 %v9043_v33, %v7730_v46 }
 0x76b   :  { %v11021_v20 = vadd.f32 %v8881_v30, %v7726_v13  ;;  %v11023_v11 = vadd.f32 %v9045_v61, %v7734_v15  ;;  %v8883_v48 = vpop.f32.mrb[58].mxu0  ;;  %v9047_v22 = vpop.f32.mrb[38].mxu1  ;;  %v10627_v15 = vld [vmem:[%s16367_s14] ss:$0 sm:$0xff] }
 0x76c   :  { %v9054_v23 = vmul.f32 0.70710677, %v11020_v18  ;;  %v8884_v27 = vpop.f32.mrb[59].mxu0  ;;  %v9048_v28 = vpop.f32.mrb[39].mxu1  ;;  %v9050_v34 = vmul.f32 0.5, %v11020_v18  ;;  %v9052_v4 = vmul.f32 0.5, %v11022_v52 }
 0x76d   :  { %v9055_v24 = vmul.f32 0.70710677, %v11021_v20  ;;  %v9057_v26 = vmul.f32 0.70710677, %v11023_v11  ;;  %v9051_v35 = vmul.f32 0.5, %v11021_v20  ;;  %v9053_v37 = vmul.f32 0.5, %v11023_v11 }
 0x76e   :  { %12694 = verf.f32 %v9054_v23  ;;  %v9056_v31 = vmul.f32 0.70710677, %v11022_v52  ;;  %v10076_v22 = vld [vmem:[%s16368_s12] ss:$0 sm:$0xff] }
 0x76f   :  { %12696 = verf.f32 %v9055_v24  ;;  %v4629_v23 = vadd.f32 %v10076_v22, %v15526_v21  ;;  %v10654_v24 = vld [vmem:[%s16369_s16] ss:$0 sm:$0xff] }
 0x770   :  { %12698 = verf.f32 %v9057_v26 }
 0x771   :  { %12700 = verf.f32 %v9056_v31  ;;  %v11012_v26 = vadd.f32 %v10654_v24, %v4629_v23 }
 0x778   :  { %v12695_v49 = vpop.eup %12694 }
 0x779   :  { %v9062_v50 = vadd.f32 1.0, %v12695_v49  ;;  %v12697_v57 = vpop.eup %12696 }
 0x77a   :  { %v12699_v7 = vpop.eup %12698  ;;  %v9063_v36 = vadd.f32 1.0, %v12697_v57 }
 0x77b   :  { %v9066_v10 = vmul.f32 %v9062_v50, %v9050_v34  ;;  %v9065_v16 = vadd.f32 1.0, %v12699_v7  ;;  %v12701_v53 = vpop.eup %12700  ;;  %v10663_v7 = vld [vmem:[%s16370_s18] ss:$0 sm:$0xff] }
 0x77c   :  { %v9067_v38 = vmul.f32 %v9063_v36, %v9051_v35  ;;  %v9064_v60 = vadd.f32 1.0, %v12701_v53 }
 0x77d   :  { %v9069_v39 = vmul.f32 %v9065_v16, %v9053_v37  ;;  %v9070_v42 = vpack.c.bf16 %v9066_v10, %v9066_v10 }
 0x77e   :  { %v9071_v40 = vpack.c.bf16 %v9067_v38, %v9067_v38  ;;  %v9068_v32 = vmul.f32 %v9064_v60, %v9052_v4 }
 0x77f   :  { %v9073_v43 = vpack.c.bf16 %v9069_v39, %v9069_v39 }
 0x780   :  { %9317 = vmatprep.mubr.bf16.mxu0 %v9071_v40  ;;  %v9072_v63 = vpack.c.bf16 %v9068_v32, %v9068_v32 }
 0x781   :  { %9318 = vmatmul.mubr.bf16.vlgmr.msra.gmra.mrb[60].mxu0 %v9070_v42 }
 0x782   :  { %9326 = vmatpush1.bf16.msra.mxu0 %v12639_v41  ;;  %10653 = vmatprep.mubr.msk.bf16.mxu0 %vm9277_vm4, %v9073_v43 }
 0x783   :  { %9327 = vmatprep.subr.bf16.mxu0 %v12709_v25 }
 0x786   :  { %9328 = vmatpush1.bf16.msra.mxu0 %v12640_v47 }
 0x787   :  { %9329 = vmatprep.subr.bf16.mxu0 %v12709_v25 }
 0x78a   :  { %9330 = vmatpush1.bf16.msra.mxu0 %v12641_v56 }
 0x78b   :  { %9331 = vmatprep.subr.bf16.mxu0 %v12709_v25 }
 0x78e   :  { %9332 = vmatpush1.bf16.msra.mxu0 %v12642_v55 }
 0x78f   :  { %9333 = vmatprep.subr.bf16.mxu0 %v12709_v25 }
 0x792   :  { %9334 = vmatpush1.bf16.msra.mxu0 %v12643_v58 }
 0x793   :  { %9335 = vmatprep.subr.bf16.mxu0 %v12709_v25 }
 0x796   :  { %9336 = vmatpush1.bf16.msra.mxu0 %v12644_v59 }
 0x797   :  { %9337 = vmatprep.subr.bf16.mxu0 %v12709_v25 }
 0x79a   :  { %9338 = vmatpush1.bf16.msra.mxu0 %v12645_v51 }
 0x79b   :  { %9339 = vmatprep.subr.bf16.mxu0 %v12709_v25 }
 0x79e   :  { %9340 = vmatpush1.bf16.msra.mxu0 %v12646_v62 }
 0x79f   :  { %9341 = vmatprep.subr.bf16.mxu0 %v12709_v25  ;;  %v12650_v25 = vld [vmem:[%s16365_s15 + $0x10] sm:$0xff]  }
 0x7a0   :  { %10978 = vmatpush3.bf16.msra.mxu1 %v12650_v25 }
 0x7a1   :  { %10979 = vmatprep.subr.bf16.mxu1 %v12710_v0 }
 0x7a2   :  { %9342 = vmatpush1.bf16.msra.mxu0 %v9283_v54 }
 0x7a3   :  { %10993 = vmatprep.subr.bf16.mxu0 %v12710_v0 }
 0x7a4   :  { %10980 = vmatpush3.bf16.msra.mxu1 %v12651_v44 }
 0x7a5   :  { %9358 = vmatmul.mubr.bf16.vlgmr.msra.gmra.mrb[64].mxu0 %v9072_v63  ;;  %10981 = vmatprep.subr.bf16.mxu1 %v12710_v0 }
 0x7a6   :  { %10997 = vmatprep.mubr.msk.bf16.mxu0 %vm12711_vm1, %v12710_v0  ;;  %10994 = vmatpush3.bf16.msra.mxu0 %v12656_v45 }
 0x7a7   :  { %10995 = vmatprep.subr.bf16.mxu0 %v12710_v0 }
 0x7a8   :  { %10982 = vmatpush3.bf16.msra.mxu1 %v12652_v29 }
 0x7a9   :  { %10983 = vmatprep.subr.bf16.mxu1 %v12710_v0 }
 0x7ac   :  { %10984 = vmatpush3.bf16.msra.mxu1 %v12653_v3 }
 0x7ad   :  { %10985 = vmatprep.subr.bf16.mxu1 %v12710_v0 }
 0x7b0   :  { %10986 = vmatpush3.bf16.msra.mxu1 %v12654_v5 }
 0x7b1   :  { %10987 = vmatprep.subr.bf16.mxu1 %v12710_v0  ;;  %v12657_v0 = vld [vmem:[%s16366_s17 + $0x8] sm:$0xff]  }
 0x7b2   :  { %10996 = vmatpush3.bf16.msra.mxu0 %v12657_v0 }
 0x7b4   :  { %10988 = vmatpush3.bf16.msra.mxu1 %v12655_v6 }
 0x854   :  { %v10917_v8 = vpop.f32.mrb[60].mxu0 }
 0x855   :  { %v10918_v19 = vpop.f32.mrb[61].mxu0 }
 0x856   :  { %v10919_v9 = vadd.f32 %v10918_v19, %v10917_v8  ;;  %v10920_v12 = vpop.f32.mrb[62].mxu0 }
 0x857   :  { %v10921_v13 = vpop.f32.mrb[63].mxu0 }
 0x858   :  { %v9320_v17 = vadd.f32 %v10919_v9, %v10627_v15 }
 0x878   :  { %v9359_v33 = vpop.f32.mrb[64].mxu0 }
 0x879   :  { %v9360_v18 = vadd.f32 %v9359_v33, %v9320_v17  ;;  %v9361_v30 = vpop.f32.mrb[65].mxu0 }
 0x87a   :  { %v9362_v61 = vpop.f32.mrb[66].mxu0 }
 0x87b   :  { %12702 = vtanh.f32 %v9360_v18  ;;  %v9363_v20 = vpop.f32.mrb[67].mxu0 }
 0x885   :  { %v12703_v11 = vpop.eup %12702 }
 0x886   :  { %v9366_v48 = vpack.c.bf16 %v12703_v11, %v12703_v11 }
 0x888   :  { %10990 = vmatmul.mubr.bf16.vlgmr.msra.gmra.mrb[40].mxu1 %v9366_v48 }
 0x95b   :  { %v9472_v27 = vpop.f32.mrb[40].mxu1 }
 0x95c   :  { %v11013_v28 = vadd.f32 %v11012_v26, %v9472_v27  ;;  %v10991_v49 = vpop.f32.mrb[41].mxu1 }
 0x95d   :  { %v9475_v50 = vpop.f32.mrb[42].mxu1 }
 0x95e   :  { %v9479_v57 = vpack.c.bf16 %v11013_v28, %v11013_v28  ;;  %v10992_v34 = vpop.f32.mrb[43].mxu1 }
 0x960   :  { %10998 = vmatmul.mubr.msk.bf16.vlgmr.msra.gmra.mrb[68].mxu0 %vm4461_vm2, %v9479_v57 }
 0xa33   :  { %v9540_v35 = vpop.f32.mrb[68].mxu0 }
 0xa34   :  { %v9541_v36 = vadd.f32 %v10663_v7, %v9540_v35  ;;  %v10999_v21 = vpop.f32.mrb[69].mxu0 }
 0xa35   :  { %v9543_v10 = vpop.f32.mrb[70].mxu0 }
 0xa36   :  { %9546 = vmax.xlane.f32.xlu0 %v9541_v36  ;;  %v11000_v37 = vpop.f32.mrb[71].mxu0 }
 0xac3   :  { %v9547_v16 = vpop.xlane.xlu0 %9546 }
 0xac4   :  { %v9548_v38 = vsub.f32 %v9541_v36, %v9547_v16 }
 0xac6   :  { %v9549_v39 = vmul.f32 1.442695, %v9548_v38 }
 0xac8   :  { %12704 = vpow2.f32 %v9549_v39 }
 0xad2   :  { %v12705_v40 = vpop.eup %12704 }
 0xad3   :  { %9551 = vadd.xlane.f32.xlu0 %v12705_v40 }
 0xb60   :  { %v9552_v41 = vpop.xlane.xlu0 %9551 }
 0xb61   :  { %12706 = vrcp.f32 %v9552_v41 }
 0xb6b   :  { %v12707_v42 = vpop.eup %12706 }
 0xb6c   :  { %v9554_v43 = vmul.f32 %v12707_v42, %v12705_v40 }
 0xb6e   :  { %9555 = vst [vmem:[%s16371_s19] sm:$0xff] %v9554_v43 }

</bundles_post_ra>
